<compile_context>
chip_gen: v7x
topology: tpu7x:2x2x1
jax: 0.10.0
libtpu: 0.0.40
codegen_flags: <defaults>
</compile_context>

<pallas_src>
import functools

import jax
import jax.numpy as jnp
import numpy as np
from jax.experimental import pallas as pl
from jax.experimental.pallas import tpu as pltpu


# ----------------------------------------------------------------------------
# Fused kernel: num_layers x (3x3 conv + bias + ReLU + BN affine) + 1x1 conv
# ----------------------------------------------------------------------------
def _conv_head_kernel(x_ref, w3_ref, aff_ref, w1_ref, b1_ref, o_ref,
                      pbuf_ref, col_ref, *, num_layers):
    # x_ref:    (1, H, W, C)   NHWC input tile (one batch element)
    # w3_ref:   (L, 9*C, C)    3x3 weights, HWIO flattened to im2col K order
    # aff_ref:  (L, 3, C)      per layer: [conv bias, bn_scale, bn_shift]
    # w1_ref:   (C, Co)        final 1x1 conv weight
    # b1_ref:   (1, Co)        final 1x1 conv bias
    # o_ref:    (1, H, W, Co)
    # pbuf_ref: (H+2, W+2, C)  zero-padded activation scratch (VMEM, resident)
    # col_ref:  (H*W, 9*C)     im2col scratch (VMEM, resident)
    H, W, C = x_ref.shape[1], x_ref.shape[2], x_ref.shape[3]
    Co = o_ref.shape[3]

    # Zero the pad buffer once; the border stays zero across layers, only the
    # interior is rewritten each layer.
    pbuf_ref[...] = jnp.zeros_like(pbuf_ref)

    act = x_ref[0]                                        # (H, W, C) float32
    for l in range(num_layers):
        pbuf_ref[1:H + 1, 1:W + 1, :] = act
        # Build im2col: stripe t holds tap (dy, dx) of the padded activation,
        # matching the (dy, dx, ci) flattening of the weights.
        for t in range(9):
            dy, dx = t // 3, t % 3
            col_ref[:, t * C:(t + 1) * C] = (
                pbuf_ref[dy:dy + H, dx:dx + W, :].reshape(H * W, C))
        # Single K=9C matmul on the MXU (bf16 operands, f32 accumulation).
        y = jnp.dot(col_ref[...].astype(jnp.bfloat16),
                    w3_ref[l].astype(jnp.bfloat16),
                    preferred_element_type=jnp.float32)   # (H*W, C)
        lp = aff_ref[l]                                   # (3, C)
        bias, scale, shift = lp[0:1, :], lp[1:2, :], lp[2:3, :]
        y = jnp.maximum(y + bias, 0.0) * scale + shift    # bias -> ReLU -> BN
        act = y.reshape(H, W, C)

    # Final 1x1 conv == pointwise channel matmul (+ bias).
    out = jnp.dot(act.reshape(H * W, C).astype(jnp.bfloat16),
                  w1_ref[...].astype(jnp.bfloat16),
                  preferred_element_type=jnp.float32) + b1_ref[...]
    o_ref[...] = out.reshape(1, H, W, Co).astype(o_ref.dtype)


def conv_head_forward(x_nchw, params):
    """PyTorch-facing forward: NCHW in -> NCHW out, one fused pallas_call."""
    x = jnp.transpose(x_nchw, (0, 2, 3, 1))               # NCHW -> NHWC
    N, H, W, C = x.shape
    w3 = params["w3_stack"]                                # (L, 9C, C)
    aff = params["affine"]                                 # (L, 3, C)
    w1 = params["w_final"]                                 # (C, Co)
    b1 = params["b_final"].reshape(1, -1)                  # (1, Co)
    L = w3.shape[0]
    Co = w1.shape[1]

    out = pl.pallas_call(
        functools.partial(_conv_head_kernel, num_layers=L),
        out_shape=jax.ShapeDtypeStruct((N, H, W, Co), x.dtype),
        grid_spec=pltpu.PrefetchScalarGridSpec(
            num_scalar_prefetch=0,
            grid=(N,),
            in_specs=[
                pl.BlockSpec((1, H, W, C), lambda n: (n, 0, 0, 0)),
                pl.BlockSpec((L, 9 * C, C), lambda n: (0, 0, 0)),
                pl.BlockSpec((L, 3, C), lambda n: (0, 0, 0)),
                pl.BlockSpec((C, Co), lambda n: (0, 0)),
                pl.BlockSpec((1, Co), lambda n: (0, 0)),
            ],
            out_specs=pl.BlockSpec((1, H, W, Co), lambda n: (n, 0, 0, 0)),
            scratch_shapes=[
                pltpu.VMEM((H + 2, W + 2, C), jnp.float32),   # padded act
                pltpu.VMEM((H * W, 9 * C), jnp.float32),      # im2col buffer
            ],
        ),
        compiler_params=pltpu.CompilerParams(
            dimension_semantics=("parallel",)),               # dual TC on v7x
    )(x, w3, aff, w1, b1)
    return jnp.transpose(out, (0, 3, 1, 2))                   # NHWC -> NCHW


conv_head_forward_jit = jax.jit(conv_head_forward)


# ----------------------------------------------------------------------------
# Deterministic parameter construction (mimics Conv2d / BatchNorm2d shapes)
# ----------------------------------------------------------------------------
def make_params(key, in_channels, out_channels, num_layers, kernel_size=3):
    assert kernel_size == 3, "fused kernel implements the module default k=3"
    eps = 1e-5
    C = in_channels
    w3_list, aff_list, w_oihw_list = [], [], []
    for _ in range(num_layers):
        key, k1, k2, k3, k4, k5, k6 = jax.random.split(key, 7)
        # PyTorch Conv2d weight is OIHW; transpose to HWIO, flatten to (9C, C).
        w_oihw = 0.1 * jax.random.normal(k1, (C, C, 3, 3), jnp.float32)
        w_hwio = jnp.transpose(w_oihw, (2, 3, 1, 0))
        w3_list.append(w_hwio.reshape(9 * C, C))
        w_oihw_list.append(w_oihw)
        b = 0.1 * jax.random.normal(k2, (C,), jnp.float32)
        gamma = 1.0 + 0.1 * jax.random.normal(k3, (C,), jnp.float32)
        beta = 0.1 * jax.random.normal(k4, (C,), jnp.float32)
        running_mean = 0.1 * jax.random.normal(k5, (C,), jnp.float32)
        running_var = 1.0 + 0.1 * jax.random.uniform(k6, (C,), jnp.float32)
        scale = gamma / jnp.sqrt(running_var + eps)
        shift = beta - running_mean * scale
        aff_list.append(jnp.stack([b, scale, shift], axis=0))   # (3, C)
    key, k7, k8 = jax.random.split(key, 3)
    w_final_oihw = 0.1 * jax.random.normal(
        k7, (out_channels, C, 1, 1), jnp.float32)
    w_final = jnp.transpose(w_final_oihw[:, :, 0, 0], (1, 0))   # (C, Co)
    b_final = 0.1 * jax.random.normal(k8, (out_channels,), jnp.float32)
    return dict(
        w3_stack=jnp.stack(w3_list, axis=0),      # (L, 9C, C)
        affine=jnp.stack(aff_list, axis=0),       # (L, 3, C)
        w_oihw=jnp.stack(w_oihw_list, axis=0),    # (L, C, C, 3, 3) for reference
        w_final=w_final,
        b_final=b_final,
    )


# ----------------------------------------------------------------------------
# Pure-JAX reference (lax.conv, f32) for correctness check
# ----------------------------------------------------------------------------
def reference_forward(x_nchw, params):
    y = x_nchw
    L = params["w3_stack"].shape[0]
    for l in range(L):
        w_oihw = params["w_oihw"][l]
        b, scale, shift = (params["affine"][l][0], params["affine"][l][1],
                           params["affine"][l][2])
        y = jax.lax.conv_general_dilated(
            y, w_oihw, window_strides=(1, 1), padding=((1, 1), (1, 1)),
            dimension_numbers=("NCHW", "OIHW", "NCHW"))
        y = y + b.reshape(1, -1, 1, 1)
        y = jnp.maximum(y, 0.0)
        y = y * scale.reshape(1, -1, 1, 1) + shift.reshape(1, -1, 1, 1)
    w1_oihw = jnp.transpose(params["w_final"], (1, 0))[:, :, None, None]
    y = jax.lax.conv_general_dilated(
        y, w1_oihw, window_strides=(1, 1), padding=((0, 0), (0, 0)),
        dimension_numbers=("NCHW", "OIHW", "NCHW"))
    return y + params["b_final"].reshape(1, -1, 1, 1)


if __name__ == "__main__":
    # Module-consistent small shapes: N=2, in_channels=32, H=W=16, out_channels=8
    N, C_IN, H, W = 2, 32, 16, 16
    C_OUT = 8

    for num_layers in (1, 2):   # 1 = module default; 2 exercises the fused loop
        key = jax.random.PRNGKey(0)
        key, kx = jax.random.split(key)
        x = jax.random.normal(kx, (N, C_IN, H, W), jnp.float32)  # NCHW
        params = make_params(key, C_IN, C_OUT, num_layers)

        out = jax.block_until_ready(conv_head_forward_jit(x, params))
        ref = jax.block_until_ready(reference_forward(x, params))

        assert out.shape == (N, C_OUT, H, W), out.shape
        # Tolerance relaxed vs. 1e-4 because matmul operands are bf16 on the MXU
        # (accumulation stays f32); reference is full f32.
        np.testing.assert_allclose(np.asarray(out), np.asarray(ref),
                                   rtol=3e-2, atol=3e-2)
    print("KERNEL_OK")
</pallas_src>

<mosaic_0001>
module attributes {stable_mosaic.version = 11 : i64} {
  func.func @_conv_head_kernel(%arg0: i32, %arg1: memref<1x16x16x32xf32, #tpu.memory_space<vmem>>, %arg2: memref<1x288x32xf32, #tpu.memory_space<vmem>>, %arg3: memref<1x3x32xf32, #tpu.memory_space<vmem>>, %arg4: memref<32x8xf32, #tpu.memory_space<vmem>>, %arg5: memref<1x8xf32, #tpu.memory_space<vmem>>, %arg6: memref<1x16x16x8xf32, #tpu.memory_space<vmem>>, %arg7: memref<18x18x32xf32, #tpu.memory_space<vmem>>, %arg8: memref<256x288xf32, #tpu.memory_space<vmem>>) attributes {dimension_semantics = [#tpu.dimension_semantics<parallel>], iteration_bounds = array<i64: 2>, scalar_prefetch = 0 : i64, scratch_operands = 2 : i64, tpu.core_type = #tpu.core_type<tc>, window_params = [{transform_indices = @transform_0, window_bounds = array<i64: 1, 16, 16, 32>}, {pipeline_mode = #tpu.pipeline_mode<synchronous>, transform_indices = @transform_1, window_bounds = array<i64: 1, 288, 32>}, {pipeline_mode = #tpu.pipeline_mode<synchronous>, transform_indices = @transform_2, window_bounds = array<i64: 1, 3, 32>}, {pipeline_mode = #tpu.pipeline_mode<synchronous>, transform_indices = @transform_3, window_bounds = array<i64: 32, 8>}, {pipeline_mode = #tpu.pipeline_mode<synchronous>, transform_indices = @transform_4, window_bounds = array<i64: 1, 8>}, {transform_indices = @transform_5, window_bounds = array<i64: 1, 16, 16, 8>}]} {
    %cst = arith.constant 0.000000e+00 : f32
    %0 = vector.broadcast %cst : f32 to vector<18x18x32xf32>
    %c0 = arith.constant 0 : index
    %c0_0 = arith.constant 0 : index
    %c0_1 = arith.constant 0 : index
    %1 = vector.load %arg7[%c0, %c0_0, %c0_1] : memref<18x18x32xf32, #tpu.memory_space<vmem>>, vector<18x18x32xf32>
    tpu.vector_store %arg7[%c0, %c0_0, %c0_1], %0 {strides = array<i32>} : memref<18x18x32xf32, #tpu.memory_space<vmem>>, vector<18x18x32xf32>,
    %c0_2 = arith.constant 0 : index
    %c0_3 = arith.constant 0 : index
    %c0_4 = arith.constant 0 : index
    %c0_5 = arith.constant 0 : index
    %2 = vector.load %arg1[%c0_2, %c0_3, %c0_4, %c0_5] : memref<1x16x16x32xf32, #tpu.memory_space<vmem>>, vector<1x16x16x32xf32>
    %3 = vector.shape_cast %2 : vector<1x16x16x32xf32> to vector<16x16x32xf32>
    %c1 = arith.constant 1 : index
    %c1_6 = arith.constant 1 : index
    %c0_7 = arith.constant 0 : index
    %4 = vector.load %arg7[%c1, %c1_6, %c0_7] : memref<18x18x32xf32, #tpu.memory_space<vmem>>, vector<16x16x32xf32>
    tpu.vector_store %arg7[%c1, %c1_6, %c0_7], %3 {strides = array<i32>} : memref<18x18x32xf32, #tpu.memory_space<vmem>>, vector<16x16x32xf32>,
    %c0_8 = arith.constant 0 : index
    %c0_9 = arith.constant 0 : index
    %c0_10 = arith.constant 0 : index
    %5 = vector.load %arg7[%c0_8, %c0_9, %c0_10] : memref<18x18x32xf32, #tpu.memory_space<vmem>>, vector<16x16x32xf32>
    %6 = vector.shape_cast %5 : vector<16x16x32xf32> to vector<256x32xf32>
    %c0_11 = arith.constant 0 : index
    %c0_12 = arith.constant 0 : index
    %7 = vector.load %arg8[%c0_11, %c0_12] : memref<256x288xf32, #tpu.memory_space<vmem>>, vector<256x32xf32>
    tpu.vector_store %arg8[%c0_11, %c0_12], %6 {strides = array<i32>} : memref<256x288xf32, #tpu.memory_space<vmem>>, vector<256x32xf32>,
    %c0_13 = arith.constant 0 : index
    %c1_14 = arith.constant 1 : index
    %c0_15 = arith.constant 0 : index
    %8 = vector.load %arg7[%c0_13, %c1_14, %c0_15] : memref<18x18x32xf32, #tpu.memory_space<vmem>>, vector<16x16x32xf32>
    %9 = vector.shape_cast %8 : vector<16x16x32xf32> to vector<256x32xf32>
    %c0_16 = arith.constant 0 : index
    %c32 = arith.constant 32 : index
    %10 = vector.load %arg8[%c0_16, %c32] : memref<256x288xf32, #tpu.memory_space<vmem>>, vector<256x32xf32>
    tpu.vector_store %arg8[%c0_16, %c32], %9 {strides = array<i32>} : memref<256x288xf32, #tpu.memory_space<vmem>>, vector<256x32xf32>,
    %c0_17 = arith.constant 0 : index
    %c2 = arith.constant 2 : index
    %c0_18 = arith.constant 0 : index
    %11 = vector.load %arg7[%c0_17, %c2, %c0_18] : memref<18x18x32xf32, #tpu.memory_space<vmem>>, vector<16x16x32xf32>
    %12 = vector.shape_cast %11 : vector<16x16x32xf32> to vector<256x32xf32>
    %c0_19 = arith.constant 0 : index
    %c64 = arith.constant 64 : index
    %13 = vector.load %arg8[%c0_19, %c64] : memref<256x288xf32, #tpu.memory_space<vmem>>, vector<256x32xf32>
    tpu.vector_store %arg8[%c0_19, %c64], %12 {strides = array<i32>} : memref<256x288xf32, #tpu.memory_space<vmem>>, vector<256x32xf32>,
    %c1_20 = arith.constant 1 : index
    %c0_21 = arith.constant 0 : index
    %c0_22 = arith.constant 0 : index
    %14 = vector.load %arg7[%c1_20, %c0_21, %c0_22] : memref<18x18x32xf32, #tpu.memory_space<vmem>>, vector<16x16x32xf32>
    %15 = vector.shape_cast %14 : vector<16x16x32xf32> to vector<256x32xf32>
    %c0_23 = arith.constant 0 : index
    %c96 = arith.constant 96 : index
    %16 = vector.load %arg8[%c0_23, %c96] : memref<256x288xf32, #tpu.memory_space<vmem>>, vector<256x32xf32>
    tpu.vector_store %arg8[%c0_23, %c96], %15 {strides = array<i32>} : memref<256x288xf32, #tpu.memory_space<vmem>>, vector<256x32xf32>,
    %c1_24 = arith.constant 1 : index
    %c1_25 = arith.constant 1 : index
    %c0_26 = arith.constant 0 : index
    %17 = vector.load %arg7[%c1_24, %c1_25, %c0_26] : memref<18x18x32xf32, #tpu.memory_space<vmem>>, vector<16x16x32xf32>
    %18 = vector.shape_cast %17 : vector<16x16x32xf32> to vector<256x32xf32>
    %c0_27 = arith.constant 0 : index
    %c128 = arith.constant 128 : index
    %19 = vector.load %arg8[%c0_27, %c128] : memref<256x288xf32, #tpu.memory_space<vmem>>, vector<256x32xf32>
    tpu.vector_store %arg8[%c0_27, %c128], %18 {strides = array<i32>} : memref<256x288xf32, #tpu.memory_space<vmem>>, vector<256x32xf32>,
    %c1_28 = arith.constant 1 : index
    %c2_29 = arith.constant 2 : index
    %c0_30 = arith.constant 0 : index
    %20 = vector.load %arg7[%c1_28, %c2_29, %c0_30] : memref<18x18x32xf32, #tpu.memory_space<vmem>>, vector<16x16x32xf32>
    %21 = vector.shape_cast %20 : vector<16x16x32xf32> to vector<256x32xf32>
    %c0_31 = arith.constant 0 : index
    %c160 = arith.constant 160 : index
    %22 = vector.load %arg8[%c0_31, %c160] : memref<256x288xf32, #tpu.memory_space<vmem>>, vector<256x32xf32>
    tpu.vector_store %arg8[%c0_31, %c160], %21 {strides = array<i32>} : memref<256x288xf32, #tpu.memory_space<vmem>>, vector<256x32xf32>,
    %c2_32 = arith.constant 2 : index
    %c0_33 = arith.constant 0 : index
    %c0_34 = arith.constant 0 : index
    %23 = vector.load %arg7[%c2_32, %c0_33, %c0_34] : memref<18x18x32xf32, #tpu.memory_space<vmem>>, vector<16x16x32xf32>
    %24 = vector.shape_cast %23 : vector<16x16x32xf32> to vector<256x32xf32>
    %c0_35 = arith.constant 0 : index
    %c192 = arith.constant 192 : index
    %25 = vector.load %arg8[%c0_35, %c192] : memref<256x288xf32, #tpu.memory_space<vmem>>, vector<256x32xf32>
    tpu.vector_store %arg8[%c0_35, %c192], %24 {strides = array<i32>} : memref<256x288xf32, #tpu.memory_space<vmem>>, vector<256x32xf32>,
    %c2_36 = arith.constant 2 : index
    %c1_37 = arith.constant 1 : index
    %c0_38 = arith.constant 0 : index
    %26 = vector.load %arg7[%c2_36, %c1_37, %c0_38] : memref<18x18x32xf32, #tpu.memory_space<vmem>>, vector<16x16x32xf32>
    %27 = vector.shape_cast %26 : vector<16x16x32xf32> to vector<256x32xf32>
    %c0_39 = arith.constant 0 : index
    %c224 = arith.constant 224 : index
    %28 = vector.load %arg8[%c0_39, %c224] : memref<256x288xf32, #tpu.memory_space<vmem>>, vector<256x32xf32>
    tpu.vector_store %arg8[%c0_39, %c224], %27 {strides = array<i32>} : memref<256x288xf32, #tpu.memory_space<vmem>>, vector<256x32xf32>,
    %c2_40 = arith.constant 2 : index
    %c2_41 = arith.constant 2 : index
    %c0_42 = arith.constant 0 : index
    %29 = vector.load %arg7[%c2_40, %c2_41, %c0_42] : memref<18x18x32xf32, #tpu.memory_space<vmem>>, vector<16x16x32xf32>
    %30 = vector.shape_cast %29 : vector<16x16x32xf32> to vector<256x32xf32>
    %c0_43 = arith.constant 0 : index
    %c256 = arith.constant 256 : index
    %31 = vector.load %arg8[%c0_43, %c256] : memref<256x288xf32, #tpu.memory_space<vmem>>, vector<256x32xf32>
    tpu.vector_store %arg8[%c0_43, %c256], %30 {strides = array<i32>} : memref<256x288xf32, #tpu.memory_space<vmem>>, vector<256x32xf32>,
    %c0_44 = arith.constant 0 : index
    %c0_45 = arith.constant 0 : index
    %32 = vector.load %arg8[%c0_44, %c0_45] : memref<256x288xf32, #tpu.memory_space<vmem>>, vector<256x288xf32>
    %33 = arith.truncf %32 : vector<256x288xf32> to vector<256x288xbf16>
    %c0_46 = arith.constant 0 : index
    %c0_47 = arith.constant 0 : index
    %c0_48 = arith.constant 0 : index
    %34 = vector.load %arg2[%c0_46, %c0_47, %c0_48] : memref<1x288x32xf32, #tpu.memory_space<vmem>>, vector<1x288x32xf32>
    %35 = vector.shape_cast %34 : vector<1x288x32xf32> to vector<288x32xf32>
    %36 = arith.truncf %35 : vector<288x32xf32> to vector<288x32xbf16>
    %cst_49 = arith.constant dense<0.000000e+00> : vector<256x32xf32>
    %37 = tpu.matmul %33, %36, %cst_49 {dimension_numbers = #tpu.dot_dimension_numbers<[1], [0], [0], [1], [0, 0, 1, 1], [], []>} : vector<256x288xbf16>, vector<288x32xbf16>, vector<256x32xf32> -> vector<256x32xf32>
    %c0_50 = arith.constant 0 : index
    %c0_51 = arith.constant 0 : index
    %c0_52 = arith.constant 0 : index
    %38 = vector.load %arg3[%c0_50, %c0_51, %c0_52] : memref<1x3x32xf32, #tpu.memory_space<vmem>>, vector<1x3x32xf32>
    %39 = vector.shape_cast %38 : vector<1x3x32xf32> to vector<3x32xf32>
    %40 = vector.extract_strided_slice %39 {offsets = [0, 0], sizes = [1, 32], strides = [1, 1]} : vector<3x32xf32> to vector<1x32xf32>
    %41 = vector.extract_strided_slice %39 {offsets = [1, 0], sizes = [1, 32], strides = [1, 1]} : vector<3x32xf32> to vector<1x32xf32>
    %42 = vector.extract_strided_slice %39 {offsets = [2, 0], sizes = [1, 32], strides = [1, 1]} : vector<3x32xf32> to vector<1x32xf32>
    %43 = vector.broadcast %40 : vector<1x32xf32> to vector<256x32xf32>
    %44 = arith.addf %37, %43 : vector<256x32xf32>
    %cst_53 = arith.constant 0.000000e+00 : f32
    %45 = vector.broadcast %cst_53 : f32 to vector<256x32xf32>
    %46 = arith.maximumf %44, %45 : vector<256x32xf32>
    %47 = vector.broadcast %41 : vector<1x32xf32> to vector<256x32xf32>
    %48 = arith.mulf %46, %47 : vector<256x32xf32>
    %49 = vector.broadcast %42 : vector<1x32xf32> to vector<256x32xf32>
    %50 = arith.addf %48, %49 : vector<256x32xf32>
    %51 = vector.shape_cast %50 : vector<256x32xf32> to vector<16x16x32xf32>
    %52 = vector.shape_cast %51 : vector<16x16x32xf32> to vector<256x32xf32>
    %53 = arith.truncf %52 : vector<256x32xf32> to vector<256x32xbf16>
    %c0_54 = arith.constant 0 : index
    %c0_55 = arith.constant 0 : index
    %54 = vector.load %arg4[%c0_54, %c0_55] : memref<32x8xf32, #tpu.memory_space<vmem>>, vector<32x8xf32>
    %55 = arith.truncf %54 : vector<32x8xf32> to vector<32x8xbf16>
    %cst_56 = arith.constant dense<0.000000e+00> : vector<256x8xf32>
    %56 = tpu.matmul %53, %55, %cst_56 {dimension_numbers = #tpu.dot_dimension_numbers<[1], [0], [0], [1], [0, 0, 1, 1], [], []>} : vector<256x32xbf16>, vector<32x8xbf16>, vector<256x8xf32> -> vector<256x8xf32>
    %c0_57 = arith.constant 0 : index
    %c0_58 = arith.constant 0 : index
    %57 = vector.load %arg5[%c0_57, %c0_58] : memref<1x8xf32, #tpu.memory_space<vmem>>, vector<1x8xf32>
    %58 = vector.broadcast %57 : vector<1x8xf32> to vector<256x8xf32>
    %59 = arith.addf %56, %58 : vector<256x8xf32>
    %60 = vector.shape_cast %59 : vector<256x8xf32> to vector<1x16x16x8xf32>
    %c0_59 = arith.constant 0 : index
    %c0_60 = arith.constant 0 : index
    %c0_61 = arith.constant 0 : index
    %c0_62 = arith.constant 0 : index
    %61 = vector.load %arg6[%c0_59, %c0_60, %c0_61, %c0_62] : memref<1x16x16x8xf32, #tpu.memory_space<vmem>>, vector<1x16x16x8xf32>
    tpu.vector_store %arg6[%c0_59, %c0_60, %c0_61, %c0_62], %60 {strides = array<i32>} : memref<1x16x16x8xf32, #tpu.memory_space<vmem>>, vector<1x16x16x8xf32>,
    return
  }
  func.func @transform_0(%arg0: i32) -> (i32, i32, i32, i32) {
    %c0_i32 = arith.constant 0 : i32
    %c0_i32_0 = arith.constant 0 : i32
    %c0_i32_1 = arith.constant 0 : i32
    %c0_i32_2 = arith.constant 0 : i32
    return %arg0, %c0_i32, %c0_i32_0, %c0_i32_1 : i32, i32, i32, i32
  }
  func.func @transform_1(%arg0: i32) -> (i32, i32, i32) {
    %c0_i32 = arith.constant 0 : i32
    %c0_i32_0 = arith.constant 0 : i32
    %c0_i32_1 = arith.constant 0 : i32
    %c0_i32_2 = arith.constant 0 : i32
    return %c0_i32, %c0_i32_0, %c0_i32_1 : i32, i32, i32
  }
  func.func @transform_2(%arg0: i32) -> (i32, i32, i32) {
    %c0_i32 = arith.constant 0 : i32
    %c0_i32_0 = arith.constant 0 : i32
    %c0_i32_1 = arith.constant 0 : i32
    %c0_i32_2 = arith.constant 0 : i32
    return %c0_i32, %c0_i32_0, %c0_i32_1 : i32, i32, i32
  }
  func.func @transform_3(%arg0: i32) -> (i32, i32) {
    %c0_i32 = arith.constant 0 : i32
    %c0_i32_0 = arith.constant 0 : i32
    %c0_i32_1 = arith.constant 0 : i32
    return %c0_i32, %c0_i32_0 : i32, i32
  }
  func.func @transform_4(%arg0: i32) -> (i32, i32) {
    %c0_i32 = arith.constant 0 : i32
    %c0_i32_0 = arith.constant 0 : i32
    %c0_i32_1 = arith.constant 0 : i32
    return %c0_i32, %c0_i32_0 : i32, i32
  }
  func.func @transform_5(%arg0: i32) -> (i32, i32, i32, i32) {
    %c0_i32 = arith.constant 0 : i32
    %c0_i32_0 = arith.constant 0 : i32
    %c0_i32_1 = arith.constant 0 : i32
    %c0_i32_2 = arith.constant 0 : i32
    return %arg0, %c0_i32, %c0_i32_0, %c0_i32_1 : i32, i32, i32, i32
  }
}

</mosaic_0001>

<bundles_post_ra>
// kernel: conv_head_forward.1
= control target key start
LH: loop header
LB: loop body
LE: loop exit
PB: predicated region body
PF: predicated region fallthrough
CT: control target
= control target key end

     0   :  { %10 = vsyncpa [#allocation5], 0  ;;  %s4761_s0 = inlined_call_operand.hbm [shape: f32[2,16,16,32], index: 0, kind: input, shape index: {}]   ;;  %s4762_s1 = inlined_call_operand.vmem [shape: f32[1,288,32], index: 1, kind: input, shape index: {}]   ;;  %s4763_s2 = inlined_call_operand.vmem [shape: f32[1,3,32], index: 2, kind: input, shape index: {}]   ;;  %s4764_s3 = inlined_call_operand.vmem [shape: f32[32,8], index: 3, kind: input, shape index: {}]   ;;  %s4765_s4 = inlined_call_operand.vmem [shape: f32[1,8], index: 4, kind: input, shape index: {}]   ;;  %s4766_s5 = inlined_call_operand.vmem [shape: f32[2,16,16,8], index: 5, kind: output, shape index: {}]  }
   0x1   :  { %12 = vsyncpa [#allocation5 + $0x1], 0  ;;  %s3145_s18 = smov 0   ;;  %s3147_s19 = smov 0  }
   0x2   :  { %s3149_s20 = smov 0   ;;  %s3151_s21 = smov 0  }
   0x3 LB: > { %s3164_s22 = sadd.s32 4294967295, %s3106_s21   ;;  %s3167_s23 = sadd.s32 1, %s3106_s21   ;;  %s3106_s21 = sphi %s3151_s21, %s4773_s21   ;;  %s3102_s20 = sphi %s3149_s20, %s4772_s20   ;;  %s3098_s19 = sphi %s3147_s19, %s4771_s19   ;;  %s3094_s18 = sphi %s3145_s18, %s4770_s18  }
   0x4   : > { %s22_s24 = ssub.s32 %s3106_s21, %s3167_s23  ;;  %s25_s25 = sadd.s32 1, %s3102_s20 }
   0x5   : > { %p23_p0 = scmp.eq.s32.totalorder %s22_s24, 0  ;;  %p32_p1 = scmp.ne.s32.totalorder %s3102_s20, %s3098_s19 }
   0x6   : > { %p33_p2 = scmp.eq.s32.totalorder %s3106_s21, 0  ;;  %p38_p3 = scmp.ne.s32.totalorder %s3098_s19, %s3094_s18 }
   0x7   : > { %s3177_s26 = scalar_select %p23_p0, %s3102_s20, %s25_s25  }
   0x8   : > { %p34_p4 = por %p33_p2, %p32_p1  ;;  %p39_p5 = scmp.eq.s32.totalorder %s3164_s22, 0 }
   0x9   : > { %p3003_p6 = scmp.lt.s32.totalorder %s3106_s21, 2  ;;  %s184_s28 = sand.u32 1, %s3102_s20  }
   0xa   : > { %p3181_p7 = por %p39_p5, %p38_p3  ;;  %s2733_s29 = sshll.u32 %s184_s28, 8 }
   0xb   : > { %s2775_s30 = sshll.u32 %s3106_s21, 12  ;;  %s188_s9 = scalar_lea.vmem [#allocation4], %s2733_s29 }
   0xc   : > { %s3190_s8 = scalar_lea.hbm %s4761_s0, %s2775_s30  ;;  %s195_s10 = sshll.u32 %s188_s9, 4  ;;  %s3192_s10 = int_to_ptr.vmem [resolvable:$true] %s195_s10 }
   0xd   : > { %p3194_p8 = pnand %p3003_p6, %p34_p4  ;;  %s3199_s12 = scalar_lea.sflag [#allocation5], %s184_s28 }
   0xe   : > { %s3042_s13 = scalar_lea.hbm %s3190_s8, 4096  ;;  %s3047_s16 = scalar_lea.hbm %s4761_s0, 8192 }
   0xf   : > { %p3043_p10 = scmp.ne.s32.totalorder %s3190_s8, %s3042_s13  ;;  %p3044_p11 = pneg %p3194_p8 }
  0x10   : > { %p3048_p0 = scmp.lt.u32.totalorder %s3190_s8, %s4761_s0  ;;  %p3049_p1 = scmp.lt.u32.totalorder %s3047_s16, %s3042_s13 }
  0x11   : > { %p3045_p12 = pnand %p3044_p11, %p3043_p10  ;;  %p3051_p3 = scmp.lt.u32.totalorder %s3042_s13, %s3190_s8 }
  0x12   : > { %p3050_p2 = por %p3049_p1, %p3048_p0 }
  0x13   : > { %p3046_p13 = pneg %p3045_p12 }
  0x14   : > { %p3052_p4 = por %p3051_p3, %p3050_p2 }
  0x16   : > { %p3053_p5 = pnand %p3052_p4, %p3046_p13 }
  0x18   : > { %3056 = shalt.err (!%p3053_p5)
}
  0x19   : > { %s3057_s24 = scalar_lea.vmem %s3192_s10, 4096  ;;  %s3108_s25 = smov [#allocation4]  }
  0x1a   : > { %p3058_p6 = scmp.ne.s32.totalorder %s3192_s10, %s3057_s24  ;;  %s3062_s28 = sshll.u32 %s3108_s25, 4  ;;  %s3063_s28 = int_to_ptr.vmem [resolvable:$false] %s3062_s28 }
  0x1b   : > { %s3064_s29 = scalar_lea.vmem %s3063_s28, 8192  ;;  %p3065_p9 = scmp.lt.s32.totalorder %s3192_s10, %s3063_s28 }
  0x1c   : > { %p3060_p10 = pnand %p3058_p6, %p3044_p11  ;;  %p3066_p0 = scmp.lt.s32.totalorder %s3064_s29, %s3057_s24 }
  0x1e   : > { %p3061_p12 = pneg %p3060_p10  ;;  %p3067_p1 = por %p3066_p0, %p3065_p9 }
  0x20   : > { %p3068_p2 = pnand %p3067_p1, %p3061_p12 }
  0x22   : > { %3071 = shalt.err (!%p3068_p2)
}
  0x23   : > { %s3109_s30 = smov 128   ;;  %s3110_s6 = smov 8  }
  0x24   : > { %3002 = dma.hbm_to_vmem [thread:$0]  (!%p3194_p8), %s3190_s8, 4096, %s3192_s10, %s3199_s12, %s3109_s30, %s3109_s30, %s3110_s6  }
  0x25   : > { %p203_p11 = scmp.lt.s32.totalorder %s3106_s21, 3  ;;  %p4769_p13 = scmp.ge.s32.totalorder %s3106_s21, 1 }
  0x27   : > { %p204_p3 = pnand %p4769_p13, %p203_p11 }
  0x28   : > { %s209_s7 = sand.u32 (!%p204_p3), 1, %s3098_s19  }
  0x29   : > { %207 = sbr.rel (%p204_p3) target bundleno = 1033 (0x409), region = 40  ;;  %s2737_s9 = sshll.u32 (!%p204_p3), %s209_s7, 8 }
  0x2a   : > { %s210_s13 = scalar_lea.sflag (!%p204_p3), [#allocation5], %s209_s7  ;;  %s3231_s14 = scalar_lea.vmem (!%p204_p3), [#allocation4], %s2737_s9 }
  0x30   : > { %3089 = dma.done.wait (%p3181_p7), %s210_s13, 4096  }
  0x31   : > { %3091 = vsyncadd (%p3181_p7), %s210_s13, 4294963200  ;;  %vm246_vm0 = vcmask 261120   ;;  %vm249_vm1 = vcmask 254976   ;;  %v3111_v0 = vmov 0.0   ;;  %v302_v1 = vld [vmem:[%s3231_s14] sm:$0xff]  ;;  %v303_v2 = vld [vmem:[%s3231_s14 + $0x8] sm:$0xff] }
  0x32   : > { %247 = vst.msk [vmem:[#allocation2] sm:$0xff] %vm246_vm0, %v3111_v0  ;;  %248 = vst.msk [vmem:[#allocation2 + $0x8] sm:$0xff] %vm246_vm0, %v3111_v0  ;;  %v304_v3 = vld [vmem:[%s3231_s14 + $0x10] sm:$0xff]  ;;  %s3112_s21 = smov 32   ;;  %s3113_s27 = smov 64   ;;  %v305_v7 = vld [vmem:[%s3231_s14 + $0x18] sm:$0xff] }
  0x33   : > { %251 = vst.msk [vmem:[#allocation2 + $0x18] sm:$0xff] %vm246_vm0, %v3111_v0  ;;  %252 = vst.msk [vmem:[#allocation2 + $0x20] sm:$0xff] %vm246_vm0, %v3111_v0  ;;  %v306_v8 = vld [vmem:[%s3231_s14 + $0x20] sm:$0xff]  ;;  %v307_v9 = vld [vmem:[%s3231_s14 + $0x28] sm:$0xff]  ;;  %s3114_s7 = smov 96   ;;  %vm591_vm2 = vcmask 523520  }
  0x34   : > { %254 = vst.msk [vmem:[#allocation2 + $0x30] sm:$0xff] %vm246_vm0, %v3111_v0  ;;  %255 = vst.msk [vmem:[#allocation2 + $0x38] sm:$0xff] %vm246_vm0, %v3111_v0  ;;  %v308_v10 = vld [vmem:[%s3231_s14 + $0x30] sm:$0xff]  ;;  %v309_v11 = vld [vmem:[%s3231_s14 + $0x38] sm:$0xff]  ;;  %vm784_vm3 = vcmask 785920   ;;  %vm977_vm4 = vcmask 1048320  }
  0x35   : > { %257 = vst.msk [vmem:[#allocation2 + $0x48] sm:$0xff] %vm246_vm0, %v3111_v0  ;;  %258 = vst.msk [vmem:[#allocation2 + $0x50] sm:$0xff] %vm246_vm0, %v3111_v0  ;;  %v310_v12 = vld [vmem:[%s3231_s14 + $0x40] sm:$0xff]  ;;  %v311_v13 = vld [vmem:[%s3231_s14 + $0x48] sm:$0xff]  ;;  %p240_p7 = scmp.lt.s32.totalorder %s3164_s22, 1  ;;  %vm2630_vm5 = vcmask 64512  }
  0x36   : > { %260 = vst.msk [vmem:[#allocation2 + $0x60] sm:$0xff] %vm246_vm0, %v3111_v0  ;;  %261 = vst.msk [vmem:[#allocation2 + $0x68] sm:$0xff] %vm246_vm0, %v3111_v0  ;;  %v312_v14 = vld [vmem:[%s3231_s14 + $0x50] sm:$0xff]  ;;  %v313_v15 = vld [vmem:[%s3231_s14 + $0x58] sm:$0xff] }
  0x37   : > { %263 = vst.msk [vmem:[#allocation2 + $0x78] sm:$0xff] %vm246_vm0, %v3111_v0  ;;  %264 = vst.msk [vmem:[#allocation2 + $0x80] sm:$0xff] %vm246_vm0, %v3111_v0  ;;  %v1875_v16 = vld [vmem:[%s4762_s1 + $0x80] sm:$0xff]  ;;  %v1876_v17 = vld [vmem:[%s4762_s1 + $0x88] sm:$0xff]  ;;  %s4775_s22 = smov (!%p240_p7, %s3164_s22), 1 }
  0x38   : > { %266 = vst.msk [vmem:[#allocation2 + $0x90] sm:$0xff] %vm246_vm0, %v3111_v0  ;;  %267 = vst.msk [vmem:[#allocation2 + $0x98] sm:$0xff] %vm246_vm0, %v3111_v0  ;;  %v1903_v18 = vpack.c.bf16 %v1876_v17, %v1875_v16  ;;  %v1859_v20 = vld [vmem:[%s4762_s1] sm:$0xff]  ;;  %v1860_v21 = vld [vmem:[%s4762_s1 + $0x8] sm:$0xff] }
  0x39   : > { %269 = vst.msk [vmem:[#allocation2 + $0xa8] sm:$0xff] %vm246_vm0, %v3111_v0  ;;  %270 = vst.msk [vmem:[#allocation2 + $0xb0] sm:$0xff] %vm246_vm0, %v3111_v0  ;;  %v431_v4 = vld [vmem:[#allocation2 + $0x1] sm:$0xff]  ;;  %v1895_v23 = vpack.c.bf16 %v1860_v21, %v1859_v20  ;;  %v1877_v24 = vld [vmem:[%s4762_s1 + $0x90] sm:$0xff] }
  0x3a   : > { %272 = vst.msk [vmem:[#allocation2 + $0xc0] sm:$0xff] %vm246_vm0, %v3111_v0  ;;  %273 = vst.msk [vmem:[#allocation2 + $0xc8] sm:$0xff] %vm246_vm0, %v3111_v0  ;;  %v624_v5 = vld [vmem:[#allocation2 + $0x2] sm:$0xff]  ;;  %495 = vrot.lane.b32.xlu1 %v431_v4, %s3112_s21  ;;  %v1878_v25 = vld [vmem:[%s4762_s1 + $0x98] sm:$0xff]  ;;  %2777 = vmatprep.subr.bf16.mxu0 %v1903_v18 }
  0x3b   : > { %275 = vst.msk [vmem:[#allocation2 + $0xd8] sm:$0xff] %vm246_vm0, %v3111_v0  ;;  %276 = vst.msk [vmem:[#allocation2 + $0xe0] sm:$0xff] %vm246_vm0, %v3111_v0  ;;  %688 = vrot.lane.b32.xlu0 %v624_v5, %s3113_s27  ;;  %v367_v19 = vld [vmem:[#allocation2] sm:$0xff]  ;;  %v1904_v29 = vpack.c.bf16 %v1878_v25, %v1877_v24  ;;  %2778 = vmatpush3.bf16.msra.mxu0 %v1895_v23  ;;  %v1861_v51 = vld [vmem:[%s4762_s1 + $0x10] sm:$0xff] }
  0x3c   : > { %278 = vst.msk [vmem:[#allocation2 + $0xf0] sm:$0xff] %vm246_vm0, %v3111_v0  ;;  %279 = vst.msk [vmem:[#allocation2 + $0xf8] sm:$0xff] %vm246_vm0, %v3111_v0  ;;  %v1862_v60 = vld [vmem:[%s4762_s1 + $0x18] sm:$0xff]  ;;  %v368_v61 = vld [vmem:[#allocation2 + $0x8] sm:$0xff] }
  0x3d   : > { %281 = vst.msk [vmem:[#allocation2 + $0x108] sm:$0xff] %vm246_vm0, %v3111_v0  ;;  %282 = vst.msk [vmem:[#allocation2 + $0x110] sm:$0xff] %vm246_vm0, %v3111_v0  ;;  %2779 = vmatprep.subr.bf16.mxu0 %v1904_v29  ;;  %v1896_v62 = vpack.c.bf16 %v1862_v60, %v1861_v51  ;;  %v1864_v4 = vld [vmem:[%s4762_s1 + $0x28] sm:$0xff]  ;;  %v1867_v18 = vld [vmem:[%s4762_s1 + $0x40] sm:$0xff] }
  0x3e   : > { %284 = vst.msk [vmem:[#allocation2 + $0x120] sm:$0xff] %vm246_vm0, %v3111_v0  ;;  %285 = vst.msk [vmem:[#allocation2 + $0x128] sm:$0xff] %vm246_vm0, %v3111_v0  ;;  %v1885_v20 = vld [vmem:[%s4762_s1 + $0xd0] sm:$0xff]  ;;  %v1886_v21 = vld [vmem:[%s4762_s1 + $0xd8] sm:$0xff] }
  0x3f   : > { %287 = vst.msk [vmem:[#allocation2 + $0x138] sm:$0xff] %vm246_vm0, %v3111_v0  ;;  %288 = vst.msk [vmem:[#allocation2 + $0x140] sm:$0xff] %vm246_vm0, %v3111_v0  ;;  %2780 = vmatpush3.bf16.msra.mxu0 %v1896_v62  ;;  %v1869_v23 = vld [vmem:[%s4762_s1 + $0x50] sm:$0xff]  ;;  %v1870_v24 = vld [vmem:[%s4762_s1 + $0x58] sm:$0xff] }
  0x40   : > { %290 = vst.msk [vmem:[#allocation2 + $0x150] sm:$0xff] %vm246_vm0, %v3111_v0  ;;  %291 = vst.msk [vmem:[#allocation2 + $0x158] sm:$0xff] %vm246_vm0, %v3111_v0  ;;  %v1892_v25 = vld [vmem:[%s4762_s1 + $0x108] sm:$0xff]  ;;  %v1893_v51 = vld [vmem:[%s4762_s1 + $0x110] sm:$0xff] }
  0x41   : > { %293 = vst.msk [vmem:[#allocation2 + $0x168] sm:$0xff] %vm246_vm0, %v3111_v0  ;;  %294 = vst.msk [vmem:[#allocation2 + $0x170] sm:$0xff] %vm246_vm0, %v3111_v0  ;;  %v1894_v60 = vld [vmem:[%s4762_s1 + $0x118] sm:$0xff] }
  0x42   : > { %296 = vst.msk [vmem:[#allocation2 + $0x180] sm:$0xff] %vm246_vm0, %v3111_v0  ;;  %297 = vst.msk [vmem:[#allocation2 + $0x188] sm:$0xff] %vm246_vm0, %v3111_v0 }
  0x43   : > { %299 = vst.msk [vmem:[#allocation2 + $0x198] sm:$0xff] %vm246_vm0, %v3111_v0  ;;  %300 = vst.msk [vmem:[#allocation2 + $0x1a0] sm:$0xff] %vm246_vm0, %v3111_v0 }
  0x44   : > { %253 = vst.msk [vmem:[#allocation2 + $0x28] sm:$0x3] %vm249_vm1, %v3111_v0  ;;  %250 = vst.msk [vmem:[#allocation2 + $0x10] sm:$0x3] %vm249_vm1, %v3111_v0 }
  0x45   : > { %256 = vst.msk [vmem:[#allocation2 + $0x40] sm:$0x3] %vm249_vm1, %v3111_v0  ;;  %259 = vst.msk [vmem:[#allocation2 + $0x58] sm:$0x3] %vm249_vm1, %v3111_v0 }
  0x46   : > { %262 = vst.msk [vmem:[#allocation2 + $0x70] sm:$0x3] %vm249_vm1, %v3111_v0  ;;  %265 = vst.msk [vmem:[#allocation2 + $0x88] sm:$0x3] %vm249_vm1, %v3111_v0 }
  0x47   : > { %268 = vst.msk [vmem:[#allocation2 + $0xa0] sm:$0x3] %vm249_vm1, %v3111_v0  ;;  %271 = vst.msk [vmem:[#allocation2 + $0xb8] sm:$0x3] %vm249_vm1, %v3111_v0 }
  0x48   : > { %274 = vst.msk [vmem:[#allocation2 + $0xd0] sm:$0x3] %vm249_vm1, %v3111_v0  ;;  %277 = vst.msk [vmem:[#allocation2 + $0xe8] sm:$0x3] %vm249_vm1, %v3111_v0 }
  0x49   : > { %280 = vst.msk [vmem:[#allocation2 + $0x100] sm:$0x3] %vm249_vm1, %v3111_v0  ;;  %283 = vst.msk [vmem:[#allocation2 + $0x118] sm:$0x3] %vm249_vm1, %v3111_v0 }
  0x4a   : > { %286 = vst.msk [vmem:[#allocation2 + $0x130] sm:$0x3] %vm249_vm1, %v3111_v0  ;;  %289 = vst.msk [vmem:[#allocation2 + $0x148] sm:$0x3] %vm249_vm1, %v3111_v0 }
  0x4b   : > { %292 = vst.msk [vmem:[#allocation2 + $0x160] sm:$0x3] %vm249_vm1, %v3111_v0  ;;  %295 = vst.msk [vmem:[#allocation2 + $0x178] sm:$0x3] %vm249_vm1, %v3111_v0  ;;  %v432_v6 = vld [vmem:[#allocation2 + $0x9] sm:$0xff] }
  0x4c   : > { %298 = vst.msk [vmem:[#allocation2 + $0x190] sm:$0x3] %vm249_vm1, %v3111_v0  ;;  %301 = vst.msk [vmem:[#allocation2 + $0x1a8] sm:$0x3] %vm249_vm1, %v3111_v0  ;;  %497 = vrot.lane.b32.xlu1 %v432_v6, %s3112_s21  ;;  %v625_v22 = vld [vmem:[#allocation2 + $0xa] sm:$0xff] }
  0x4d   : > { %335 = vst.msk [vmem:[#allocation2 + $0x19] sm:$0xff] %vm246_vm0, %v302_v1  ;;  %336 = vst.msk [vmem:[#allocation2 + $0x21] sm:$0xff] %vm246_vm0, %v303_v2  ;;  %v1879_v1 = vld [vmem:[%s4762_s1 + $0xa0] sm:$0xff]  ;;  %v1880_v2 = vld [vmem:[%s4762_s1 + $0xa8] sm:$0xff] }
  0x4e   : > { %337 = vst.msk [vmem:[#allocation2 + $0x31] sm:$0xff] %vm246_vm0, %v304_v3  ;;  %338 = vst.msk [vmem:[#allocation2 + $0x39] sm:$0xff] %vm246_vm0, %v305_v7  ;;  %v1863_v3 = vld [vmem:[%s4762_s1 + $0x20] sm:$0xff]  ;;  %v1905_v5 = vpack.c.bf16 %v1880_v2, %v1879_v1  ;;  %v1881_v7 = vld [vmem:[%s4762_s1 + $0xb0] sm:$0xff]  ;;  %v1912_v1 = vpack.c.bf16 %v1894_v60, %v1893_v51 }
  0x4f   : > { %339 = vst.msk [vmem:[#allocation2 + $0x49] sm:$0xff] %vm246_vm0, %v306_v8  ;;  %340 = vst.msk [vmem:[#allocation2 + $0x51] sm:$0xff] %vm246_vm0, %v307_v9  ;;  %v1897_v6 = vpack.c.bf16 %v1864_v4, %v1863_v3  ;;  %v1882_v8 = vld [vmem:[%s4762_s1 + $0xb8] sm:$0xff]  ;;  %v1865_v9 = vld [vmem:[%s4762_s1 + $0x30] sm:$0xff] }
  0x50   : > { %341 = vst.msk [vmem:[#allocation2 + $0x61] sm:$0xff] %vm246_vm0, %v308_v10  ;;  %342 = vst.msk [vmem:[#allocation2 + $0x69] sm:$0xff] %vm246_vm0, %v309_v11  ;;  %690 = vrot.lane.b32.xlu1 %v625_v22, %s3113_s27  ;;  %v1906_v10 = vpack.c.bf16 %v1882_v8, %v1881_v7  ;;  %v1866_v11 = vld [vmem:[%s4762_s1 + $0x38] sm:$0xff]  ;;  %2781 = vmatprep.subr.bf16.mxu0 %v1905_v5  ;;  %v1891_v22 = vld [vmem:[%s4762_s1 + $0x100] sm:$0xff] }
  0x51   : > { %343 = vst.msk [vmem:[#allocation2 + $0x79] sm:$0xff] %vm246_vm0, %v310_v12  ;;  %344 = vst.msk [vmem:[#allocation2 + $0x81] sm:$0xff] %vm246_vm0, %v311_v13  ;;  %v314_v12 = vld [vmem:[%s3231_s14 + $0x60] sm:$0xff]  ;;  %v315_v13 = vld [vmem:[%s3231_s14 + $0x68] sm:$0xff]  ;;  %2782 = vmatpush3.bf16.msra.mxu0 %v1897_v6  ;;  %v1898_v16 = vpack.c.bf16 %v1866_v11, %v1865_v9  ;;  %v1900_v9 = vpack.c.bf16 %v1870_v24, %v1869_v23 }
  0x52   : > { %345 = vst.msk [vmem:[#allocation2 + $0x91] sm:$0xff] %vm246_vm0, %v312_v14  ;;  %346 = vst.msk [vmem:[#allocation2 + $0x99] sm:$0xff] %vm246_vm0, %v313_v15  ;;  %v1883_v14 = vld [vmem:[%s4762_s1 + $0xc0] sm:$0xff]  ;;  %v1884_v15 = vld [vmem:[%s4762_s1 + $0xc8] sm:$0xff]  ;;  %2783 = vmatprep.subr.bf16.mxu0 %v1906_v10 }
  0x53   : > { %399 = vst.msk [vmem:[#allocation3] sm:$0xff] %vm246_vm0, %v367_v19  ;;  %400 = vst.msk [vmem:[#allocation3 + $0x18] sm:$0xff] %vm246_vm0, %v368_v61  ;;  %v1907_v17 = vpack.c.bf16 %v1884_v15, %v1883_v14  ;;  %v1868_v19 = vld [vmem:[%s4762_s1 + $0x48] sm:$0xff]  ;;  %v1908_v61 = vpack.c.bf16 %v1886_v21, %v1885_v20  ;;  %v1889_v15 = vld [vmem:[%s4762_s1 + $0xf0] sm:$0xff] }
  0x54   : > { %v3337_v26 = vld [vmem:[#allocation2 + $0x1a] sm:$0xff]  ;;  %v3339_v27 = vld [vmem:[#allocation2 + $0x22] sm:$0xff]  ;;  %347 = vst.msk [vmem:[#allocation2 + $0xa9] sm:$0xff] %vm246_vm0, %v314_v12  ;;  %348 = vst.msk [vmem:[#allocation2 + $0xb1] sm:$0xff] %vm246_vm0, %v315_v13  ;;  %v1899_v29 = vpack.c.bf16 %v1868_v19, %v1867_v18 }
  0x55   : > { %v3341_v28 = vld [vmem:[#allocation2 + $0x30] sm:$0xff]  ;;  %1138 = vrot.lane.b32.xlu0 %v3337_v26, %s3112_s21  ;;  %v3347_v31 = vld [vmem:[#allocation2 + $0x18] sm:$0xff]  ;;  %v3349_v32 = vld [vmem:[#allocation2 + $0x20] sm:$0xff]  ;;  %2784 = vmatpush3.bf16.msra.mxu0 %v1898_v16 }
  0x56   : > { %v3345_v30 = vld [vmem:[#allocation2 + $0x31] sm:$0xff]  ;;  %403 = vst.msk [vmem:[#allocation3 + $0x60] sm:$0xff] %vm246_vm0, %v3341_v28  ;;  %v3356_v34 = vld [vmem:[#allocation2 + $0x39] sm:$0xff]  ;;  %401 = vst.msk [vmem:[#allocation3 + $0x30] sm:$0xff] %vm246_vm0, %v3347_v31  ;;  %2785 = vmatprep.subr.bf16.mxu0 %v1907_v17 }
  0x57   : > { %v3354_v33 = vld [vmem:[#allocation2 + $0x38] sm:$0xff]  ;;  %1044 = vst.msk [vmem:[#allocation3 + $0x38] sm:$0xff] %vm246_vm0, %v3345_v30  ;;  %402 = vst.msk [vmem:[#allocation3 + $0x48] sm:$0xff] %vm246_vm0, %v3349_v32  ;;  %v3370_v38 = vld [vmem:[#allocation2 + $0x21] sm:$0xff] }
  0x58   : > { %v3358_v35 = vld [vmem:[#allocation2 + $0x32] sm:$0xff]  ;;  %v3366_v36 = vld [vmem:[#allocation2 + $0x3a] sm:$0xff]  ;;  %1045 = vst.msk [vmem:[#allocation3 + $0x50] sm:$0xff] %vm246_vm0, %v3356_v34  ;;  %404 = vst.msk [vmem:[#allocation3 + $0x78] sm:$0xff] %vm246_vm0, %v3354_v33  ;;  %1333 = vrot.lane.b32.xlu1 %v3354_v33, %s3113_s27 }
  0x59   : > { %v3368_v37 = vld [vmem:[#allocation2 + $0x19] sm:$0xff]  ;;  %1683 = vst.msk [vmem:[#allocation3 + $0x10] sm:$0xff] %vm246_vm0, %v3358_v35  ;;  %v3378_v39 = vld [vmem:[#allocation2 + $0x48] sm:$0xff]  ;;  %v3380_v40 = vld [vmem:[#allocation2 + $0x50] sm:$0xff]  ;;  %1140 = vrot.lane.b32.xlu0 %v3339_v27, %s3112_s21  ;;  %2786 = vmatpush3.bf16.msra.mxu0 %v1899_v29 }
  0x5a   : > { %v3382_v41 = vld [vmem:[#allocation2 + $0x49] sm:$0xff]  ;;  %1042 = vst.msk [vmem:[#allocation3 + $0x8] sm:$0xff] %vm246_vm0, %v3368_v37  ;;  %1043 = vst.msk [vmem:[#allocation3 + $0x20] sm:$0xff] %vm246_vm0, %v3370_v38  ;;  %v3392_v42 = vld [vmem:[#allocation2 + $0x51] sm:$0xff]  ;;  %2787 = vmatprep.subr.bf16.mxu0 %v1908_v61 }
  0x5b   : > { %1684 = vst.msk [vmem:[#allocation3 + $0x28] sm:$0xff] %vm246_vm0, %v3366_v36  ;;  %v3394_v43 = vld [vmem:[#allocation2 + $0x4a] sm:$0xff]  ;;  %v3396_v44 = vld [vmem:[#allocation2 + $0x52] sm:$0xff]  ;;  %1046 = vst.msk [vmem:[#allocation3 + $0x68] sm:$0xff] %vm246_vm0, %v3382_v41 }
  0x5c   : > { %405 = vst.msk [vmem:[#allocation3 + $0x90] sm:$0xff] %vm246_vm0, %v3378_v39  ;;  %406 = vst.msk [vmem:[#allocation3 + $0xa8] sm:$0xff] %vm246_vm0, %v3380_v40  ;;  %v3406_v45 = vld [vmem:[#allocation2 + $0x60] sm:$0xff]  ;;  %v3408_v46 = vld [vmem:[#allocation2 + $0x68] sm:$0xff]  ;;  %1525 = vrot.lane.b32.xlu1 %v3356_v34, %s3114_s7 }
  0x5d   : > { %v3410_v47 = vld [vmem:[#allocation2 + $0x61] sm:$0xff]  ;;  %1685 = vst.msk [vmem:[#allocation3 + $0x40] sm:$0xff] %vm246_vm0, %v3394_v43  ;;  %1686 = vst.msk [vmem:[#allocation3 + $0x58] sm:$0xff] %vm246_vm0, %v3396_v44  ;;  %v3418_v48 = vld [vmem:[#allocation2 + $0x69] sm:$0xff]  ;;  %1331 = vrot.lane.b32.xlu0 %v3341_v28, %s3113_s27  ;;  %2788 = vmatpush3.bf16.msra.mxu0 %v1900_v9 }
  0x5e   : > { %1047 = vst.msk [vmem:[#allocation3 + $0x80] sm:$0xff] %vm246_vm0, %v3392_v42  ;;  %v3420_v49 = vld [vmem:[#allocation2 + $0x62] sm:$0xff]  ;;  %v3422_v50 = vld [vmem:[#allocation2 + $0x6a] sm:$0xff]  ;;  %1048 = vst.msk [vmem:[#allocation3 + $0x98] sm:$0xff] %vm246_vm0, %v3410_v47 }
  0x5f   : > { %407 = vst.msk [vmem:[#allocation3 + $0xc0] sm:$0xff] %vm246_vm0, %v3406_v45  ;;  %408 = vst.msk [vmem:[#allocation3 + $0xd8] sm:$0xff] %vm246_vm0, %v3408_v46  ;;  %v3433_v52 = vld [vmem:[#allocation2 + $0x78] sm:$0xff]  ;;  %v3435_v53 = vld [vmem:[#allocation2 + $0x80] sm:$0xff] }
  0x60   : > { %v3437_v54 = vld [vmem:[#allocation2 + $0x79] sm:$0xff]  ;;  %1049 = vst.msk [vmem:[#allocation3 + $0xb0] sm:$0xff] %vm246_vm0, %v3418_v48  ;;  %1687 = vst.msk [vmem:[#allocation3 + $0x70] sm:$0xff] %vm246_vm0, %v3420_v49  ;;  %v3447_v55 = vld [vmem:[#allocation2 + $0x81] sm:$0xff]  ;;  %883 = vrot.lane.b32.xlu1 %v3349_v32, %s3114_s7  ;;  %v1911_v32 = vpack.c.bf16 %v1892_v25, %v1891_v22 }
  0x61   : > { %1688 = vst.msk [vmem:[#allocation3 + $0x88] sm:$0xff] %vm246_vm0, %v3422_v50  ;;  %v3449_v56 = vld [vmem:[#allocation2 + $0x7a] sm:$0xff]  ;;  %v3451_v57 = vld [vmem:[#allocation2 + $0x82] sm:$0xff]  ;;  %1050 = vst.msk [vmem:[#allocation3 + $0xc8] sm:$0xff] %vm246_vm0, %v3437_v54  ;;  %1523 = vrot.lane.b32.xlu0 %v3345_v30, %s3114_s7 }
  0x62   : > { %409 = vst.msk [vmem:[#allocation3 + $0xf0] sm:$0xff] %vm246_vm0, %v3433_v52  ;;  %410 = vst.msk [vmem:[#allocation3 + $0x108] sm:$0xff] %vm246_vm0, %v3435_v53  ;;  %v3461_v58 = vld [vmem:[#allocation2 + $0x91] sm:$0xff]  ;;  %v3469_v59 = vld [vmem:[#allocation2 + $0x99] sm:$0xff]  ;;  %2925 = vmatprep.subr.bf16.mxu1 %v1911_v32 }
  0x63   : > { %1689 = vst.msk [vmem:[#allocation3 + $0xa0] sm:$0xff] %vm246_vm0, %v3449_v56  ;;  %1690 = vst.msk [vmem:[#allocation3 + $0xb8] sm:$0xff] %vm246_vm0, %v3451_v57  ;;  %v3477_v63 = vld [vmem:[#allocation2 + $0x92] sm:$0xff]  ;;  %v3479_v0 = vld [vmem:[#allocation2 + $0x9a] sm:$0xff]  ;;  %2926 = vmatpush3.bf16.msra.mxu1 %v1911_v32 }
  0x64   : > { %1051 = vst.msk [vmem:[#allocation3 + $0xe0] sm:$0xff] %vm246_vm0, %v3447_v55  ;;  %1052 = vst.msk [vmem:[#allocation3 + $0xf8] sm:$0xff] %vm246_vm0, %v3461_v58  ;;  %1144 = vrot.lane.b32.xlu1 %v3366_v36, %s3112_s21  ;;  %v3566_v62 = vld [vmem:[#allocation2 + $0xa9] sm:$0xff]  ;;  %v1717_v2 = vld [vmem:[#allocation3 + $0x10] sm:$0xff]  ;;  %2927 = vmatprep.subr.bf16.mxu1 %v1912_v1 }
  0x65   : > { %1053 = vst.msk [vmem:[#allocation3 + $0x110] sm:$0xff] %vm246_vm0, %v3469_v59  ;;  %1691 = vst.msk [vmem:[#allocation3 + $0xd0] sm:$0xff] %vm246_vm0, %v3477_v63  ;;  %881 = vrot.lane.b32.xlu0 %v3347_v31, %s3114_s7  ;;  %v1887_v31 = vld [vmem:[%s4762_s1 + $0xe0] sm:$0xff]  ;;  %v3571_v3 = vld [vmem:[#allocation2 + $0xb1] sm:$0xff] }
  0x66   : > { %1692 = vst.msk [vmem:[#allocation3 + $0xe8] sm:$0xff] %vm246_vm0, %v3479_v0  ;;  %v3573_v4 = vld [vmem:[#allocation2 + $0xaa] sm:$0xff]  ;;  %v3575_v5 = vld [vmem:[#allocation2 + $0xb2] sm:$0xff]  ;;  %1054 = vst.msk [vmem:[#allocation3 + $0x128] sm:$0xff] %vm246_vm0, %v3566_v62 }
  0x67   : > { %v1720_v6 = vld [vmem:[#allocation3 + $0x28] sm:$0xff]  ;;  %v1723_v7 = vld [vmem:[#allocation3 + $0x40] sm:$0xff]  ;;  %v1726_v8 = vld [vmem:[#allocation3 + $0x58] sm:$0xff]  ;;  %1693 = vst.msk [vmem:[#allocation3 + $0x100] sm:$0xff] %vm246_vm0, %v3573_v4  ;;  %2928 = vmatpush3.bf16.msra.mxu1 %v1912_v1 }
  0x68   : > { %501 = vrot.lane.b32.xlu1 %v3370_v38, %s3112_s21  ;;  %v1888_v38 = vld [vmem:[%s4762_s1 + $0xe8] sm:$0xff]  ;;  %1694 = vst.msk [vmem:[#allocation3 + $0x118] sm:$0xff] %vm246_vm0, %v3575_v5  ;;  %1055 = vst.msk [vmem:[#allocation3 + $0x140] sm:$0xff] %vm246_vm0, %v3571_v3  ;;  %v1813_v10 = vpack.c.bf16 %v1720_v6, %v1717_v2  ;;  %v1871_v13 = vld [vmem:[%s4762_s1 + $0x60] sm:$0xff]  ;;  %v1816_v17 = vpack.c.bf16 %v1726_v8, %v1723_v7 }
  0x69   : > { %1142 = vrot.lane.b32.xlu0 %v3358_v35, %s3112_s21  ;;  %v317_v11 = vld [vmem:[%s3231_s14 + $0x78] sm:$0xff]  ;;  %v1909_v12 = vpack.c.bf16 %v1888_v38, %v1887_v31  ;;  %v1890_v16 = vld [vmem:[%s4762_s1 + $0xf8] sm:$0xff]  ;;  %v1873_v20 = vld [vmem:[%s4762_s1 + $0x70] sm:$0xff] }
  0x6a   : > { %v1872_v14 = vld [vmem:[%s4762_s1 + $0x68] sm:$0xff]  ;;  %350 = vst.msk [vmem:[#allocation2 + $0xc9] sm:$0xff] %vm246_vm0, %v317_v11  ;;  %2929 = vmatprep.mubr.msk.bf16.mxu1 %vm246_vm0, %v1813_v10  ;;  %v1910_v19 = vpack.c.bf16 %v1890_v16, %v1889_v15  ;;  %v1874_v21 = vld [vmem:[%s4762_s1 + $0x78] sm:$0xff]  ;;  %v318_v31 = vld [vmem:[%s3231_s14 + $0x80] sm:$0xff] }
  0x6b   : > { %v1901_v18 = vpack.c.bf16 %v1872_v14, %v1871_v13  ;;  %2789 = vmatprep.subr.bf16.mxu0 %v1909_v12  ;;  %2930 = vmatmul.mubr.msk.bf16.vlgmr.msra.gmra.mrb[0].mxu1 %vm246_vm0, %v1816_v17  ;;  %351 = vst.msk [vmem:[#allocation2 + $0xd9] sm:$0xff] %vm246_vm0, %v318_v31  ;;  %v319_v32 = vld [vmem:[%s3231_s14 + $0x88] sm:$0xff]  ;;  %v320_v61 = vld [vmem:[%s3231_s14 + $0x90] sm:$0xff]  ;;  %v321_v38 = vld [vmem:[%s3231_s14 + $0x98] sm:$0xff] }
  0x6c   : > { %1337 = vrot.lane.b32.xlu1 %v3380_v40, %s3113_s27  ;;  %352 = vst.msk [vmem:[#allocation2 + $0xe1] sm:$0xff] %vm246_vm0, %v319_v32  ;;  %353 = vst.msk [vmem:[#allocation2 + $0xf1] sm:$0xff] %vm246_vm0, %v320_v61  ;;  %v1735_v2 = vld [vmem:[#allocation3 + $0xa0] sm:$0xff]  ;;  %v1738_v6 = vld [vmem:[#allocation3 + $0xb8] sm:$0xff] }
  0x6d   : > { %499 = vrot.lane.b32.xlu0 %v3368_v37, %s3112_s21  ;;  %v316_v37 = vld [vmem:[%s3231_s14 + $0x70] sm:$0xff]  ;;  %2790 = vmatpush3.bf16.msra.mxu0 %v1901_v18  ;;  %354 = vst.msk [vmem:[#allocation2 + $0xf9] sm:$0xff] %vm246_vm0, %v321_v38  ;;  %v1822_v7 = vpack.c.bf16 %v1738_v6, %v1735_v2  ;;  %v322_v8 = vld [vmem:[%s3231_s14 + $0xa0] sm:$0xff]  ;;  %v323_v9 = vld [vmem:[%s3231_s14 + $0xa8] sm:$0xff] }
  0x6e   : > { %349 = vst.msk [vmem:[#allocation2 + $0xc1] sm:$0xff] %vm246_vm0, %v316_v37  ;;  %2791 = vmatprep.subr.bf16.mxu0 %v1910_v19  ;;  %355 = vst.msk [vmem:[#allocation2 + $0x109] sm:$0xff] %vm246_vm0, %v322_v8  ;;  %v324_v11 = vld [vmem:[%s3231_s14 + $0xb0] sm:$0xff]  ;;  %v1744_v12 = vld [vmem:[#allocation3 + $0xe8] sm:$0xff] }
  0x6f   : > { %356 = vst.msk [vmem:[#allocation2 + $0x111] sm:$0xff] %vm246_vm0, %v323_v9  ;;  %357 = vst.msk [vmem:[#allocation2 + $0x121] sm:$0xff] %vm246_vm0, %v324_v11  ;;  %v1747_v14 = vld [vmem:[#allocation3 + $0x100] sm:$0xff]  ;;  %v1750_v15 = vld [vmem:[#allocation3 + $0x118] sm:$0xff] }
  0x70   : > { %694 = vrot.lane.b32.xlu1 %v3339_v27, %s3113_s27  ;;  %v1902_v27 = vpack.c.bf16 %v1874_v21, %v1873_v20  ;;  %v1828_v17 = vpack.c.bf16 %v1750_v15, %v1747_v14  ;;  %v3814_v19 = vld [vmem:[#allocation2 + $0xb0] sm:$0xff]  ;;  %v3820_v21 = vld [vmem:[#allocation2 + $0xa8] sm:$0xff] }
  0x71   : > { %1335 = vrot.lane.b32.xlu0 %v3378_v39, %s3113_s27  ;;  %v3627_v25 = vld [vmem:[#allocation2 + $0xc9] sm:$0xff] }
  0x72   : > { %v3637_v29 = vld [vmem:[#allocation2 + $0xca] sm:$0xff]  ;;  %1057 = vst.msk [vmem:[#allocation3 + $0x170] sm:$0xff] %vm246_vm0, %v3627_v25  ;;  %2792 = vmatpush3.bf16.msra.mxu0 %v1902_v27  ;;  %v3657_v51 = vld [vmem:[#allocation2 + $0xd8] sm:$0xff] }
  0x73   : > { %1696 = vst.msk [vmem:[#allocation3 + $0x148] sm:$0xff] %vm246_vm0, %v3637_v29  ;;  %v3661_v60 = vld [vmem:[#allocation2 + $0xe0] sm:$0xff]  ;;  %417 = vst.msk [vmem:[#allocation3 + $0x1b0] sm:$0xff] %vm246_vm0, %v3657_v51  ;;  %v379_v38 = vld [vmem:[#allocation2 + $0x90] sm:$0xff] }
  0x74   : > { %1529 = vrot.lane.b32.xlu1 %v3392_v42, %s3114_s7  ;;  %418 = vst.msk [vmem:[#allocation3 + $0x1c8] sm:$0xff] %vm246_vm0, %v3661_v60  ;;  %411 = vst.msk [vmem:[#allocation3 + $0x120] sm:$0xff] %vm246_vm0, %v379_v38  ;;  %v326_v6 = vld [vmem:[%s3231_s14 + $0xc0] sm:$0xff] }
  0x75   : > { %692 = vrot.lane.b32.xlu0 %v3337_v26, %s3113_s27  ;;  %v3621_v22 = vld [vmem:[#allocation2 + $0xc0] sm:$0xff]  ;;  %v3623_v23 = vld [vmem:[#allocation2 + $0xc8] sm:$0xff]  ;;  %359 = vst.msk [vmem:[#allocation2 + $0x139] sm:$0xff] %vm246_vm0, %v326_v6 }
  0x76   : > { %v3625_v24 = vld [vmem:[#allocation2 + $0xc1] sm:$0xff]  ;;  %415 = vst.msk [vmem:[#allocation3 + $0x180] sm:$0xff] %vm246_vm0, %v3621_v22  ;;  %416 = vst.msk [vmem:[#allocation3 + $0x198] sm:$0xff] %vm246_vm0, %v3623_v23  ;;  %v3783_v10 = vld [vmem:[#allocation2 + $0x10a] sm:$0xff] }
  0x77   : > { %1056 = vst.msk [vmem:[#allocation3 + $0x158] sm:$0xff] %vm246_vm0, %v3625_v24  ;;  %v3635_v26 = vld [vmem:[#allocation2 + $0xc2] sm:$0xff]  ;;  %v3785_v37 = vld [vmem:[#allocation2 + $0x112] sm:$0xff]  ;;  %1701 = vst.msk [vmem:[#allocation3 + $0x1c0] sm:$0xff] %vm246_vm0, %v3783_v10 }
  0x78   : > { %1695 = vst.msk [vmem:[#allocation3 + $0x130] sm:$0xff] %vm246_vm0, %v3635_v26  ;;  %887 = vrot.lane.b32.xlu1 %v3354_v33, %s3114_s7  ;;  %v3675_v33 = vld [vmem:[#allocation2 + $0xe1] sm:$0xff]  ;;  %1702 = vst.msk [vmem:[#allocation3 + $0x1d8] sm:$0xff] %vm246_vm0, %v3785_v37 }
  0x79   : > { %1527 = vrot.lane.b32.xlu0 %v3382_v41, %s3114_s7  ;;  %1059 = vst.msk [vmem:[#allocation3 + $0x1a0] sm:$0xff] %vm246_vm0, %v3675_v33  ;;  %v3825_v31 = vld [vmem:[#allocation2 + $0x121] sm:$0xff] }
  0x7a   : > { %1064 = vst.msk [vmem:[#allocation3 + $0x218] sm:$0xff] %vm246_vm0, %v3825_v31  ;;  %v1756_v38 = vld [vmem:[#allocation3 + $0x148] sm:$0xff] }
  0x7c   : > { %1148 = vrot.lane.b32.xlu1 %v3396_v44, %s3112_s21 }
  0x7d   : > { %885 = vrot.lane.b32.xlu0 %v3341_v28, %s3114_s7  ;;  %v3673_v28 = vld [vmem:[#allocation2 + $0xd9] sm:$0xff] }
  0x7e   : > { %1058 = vst.msk [vmem:[#allocation3 + $0x188] sm:$0xff] %vm246_vm0, %v3673_v28 }
  0x80   : > { %505 = vrot.lane.b32.xlu1 %v3356_v34, %s3112_s21  ;;  %v3691_v34 = vld [vmem:[#allocation2 + $0xe2] sm:$0xff] }
  0x81   : > { %1146 = vrot.lane.b32.xlu0 %v3394_v43, %s3112_s21  ;;  %1698 = vst.msk [vmem:[#allocation3 + $0x178] sm:$0xff] %vm246_vm0, %v3691_v34 }
  0x84   : > { %1341 = vrot.lane.b32.xlu1 %v3408_v46, %s3113_s27 }
  0x85   : > { %503 = vrot.lane.b32.xlu0 %v3345_v30, %s3112_s21  ;;  %v3689_v30 = vld [vmem:[#allocation2 + $0xda] sm:$0xff] }
  0x86   : > { %1697 = vst.msk [vmem:[#allocation3 + $0x160] sm:$0xff] %vm246_vm0, %v3689_v30 }
  0x88   : > { %698 = vrot.lane.b32.xlu1 %v3366_v36, %s3113_s27  ;;  %v1732_v36 = vld [vmem:[#allocation3 + $0x88] sm:$0xff]  ;;  %v1762_v6 = vld [vmem:[#allocation3 + $0x178] sm:$0xff] }
  0x89   : > { %1339 = vrot.lane.b32.xlu0 %v3406_v45, %s3113_s27 }
  0x8c   : > { %1533 = vrot.lane.b32.xlu1 %v3418_v48, %s3114_s7 }
  0x8d   : > { %696 = vrot.lane.b32.xlu0 %v3358_v35, %s3113_s27  ;;  %v1729_v35 = vld [vmem:[#allocation3 + $0x70] sm:$0xff] }
  0x8e   : > { %v1819_v1 = vpack.c.bf16 %v1732_v36, %v1729_v35  ;;  %v380_v35 = vld [vmem:[#allocation2 + $0x98] sm:$0xff] }
  0x8f   : > { %412 = vst.msk [vmem:[#allocation3 + $0x138] sm:$0xff] %vm246_vm0, %v380_v35 }
  0x90   : > { %891 = vrot.lane.b32.xlu1 %v3380_v40, %s3114_s7  ;;  %2933 = vmatprep.mubr.msk.bf16.mxu1 %vm246_vm0, %v1819_v1  ;;  %v3721_v40 = vld [vmem:[#allocation2 + $0xf9] sm:$0xff] }
  0x91   : > { %1531 = vrot.lane.b32.xlu0 %v3410_v47, %s3114_s7  ;;  %2934 = vmatmul.mubr.msk.bf16.gmra.mrb[4].mxu1 %vm246_vm0, %v1822_v7  ;;  %1061 = vst.msk [vmem:[#allocation3 + $0x1d0] sm:$0xff] %vm246_vm0, %v3721_v40  ;;  %v327_v7 = vld [vmem:[%s3231_s14 + $0xc8] sm:$0xff] }
  0x92   : > { %360 = vst.msk [vmem:[#allocation2 + $0x141] sm:$0xff] %vm246_vm0, %v327_v7 }
  0x94   : > { %1152 = vrot.lane.b32.xlu1 %v3422_v50, %s3112_s21 }
  0x95   : > { %889 = vrot.lane.b32.xlu0 %v3378_v39, %s3114_s7  ;;  %v3719_v39 = vld [vmem:[#allocation2 + $0xf1] sm:$0xff] }
  0x96   : > { %1060 = vst.msk [vmem:[#allocation3 + $0x1b8] sm:$0xff] %vm246_vm0, %v3719_v39 }
  0x98   : > { %509 = vrot.lane.b32.xlu1 %v3392_v42, %s3112_s21  ;;  %v3737_v42 = vld [vmem:[#allocation2 + $0xfa] sm:$0xff] }
  0x99   : > { %1150 = vrot.lane.b32.xlu0 %v3420_v49, %s3112_s21  ;;  %1700 = vst.msk [vmem:[#allocation3 + $0x1a8] sm:$0xff] %vm246_vm0, %v3737_v42 }
  0x9c   : > { %1345 = vrot.lane.b32.xlu1 %v3435_v53, %s3113_s27 }
  0x9d   : > { %507 = vrot.lane.b32.xlu0 %v3382_v41, %s3112_s21  ;;  %v3735_v41 = vld [vmem:[#allocation2 + $0xf2] sm:$0xff] }
  0x9e   : > { %1699 = vst.msk [vmem:[#allocation3 + $0x190] sm:$0xff] %vm246_vm0, %v3735_v41 }
  0xa0   : > { %702 = vrot.lane.b32.xlu1 %v3396_v44, %s3113_s27  ;;  %v3763_v44 = vld [vmem:[#allocation2 + $0x90] sm:$0xff] }
  0xa1   : > { %1343 = vrot.lane.b32.xlu0 %v3433_v52, %s3113_s27 }
  0xa4   : > { %1537 = vrot.lane.b32.xlu1 %v3447_v55, %s3114_s7 }
  0xa5   : > { %700 = vrot.lane.b32.xlu0 %v3394_v43, %s3113_s27  ;;  %v3759_v43 = vld [vmem:[#allocation2 + $0x98] sm:$0xff] }
  0xa8   : > { %895 = vrot.lane.b32.xlu1 %v3408_v46, %s3114_s7  ;;  %v3769_v46 = vld [vmem:[#allocation2 + $0x111] sm:$0xff] }
  0xa9   : > { %1535 = vrot.lane.b32.xlu0 %v3437_v54, %s3114_s7  ;;  %1063 = vst.msk [vmem:[#allocation3 + $0x200] sm:$0xff] %vm246_vm0, %v3769_v46 }
  0xac   : > { %1156 = vrot.lane.b32.xlu1 %v3451_v57, %s3112_s21 }
  0xad   : > { %893 = vrot.lane.b32.xlu0 %v3406_v45, %s3114_s7  ;;  %v3767_v45 = vld [vmem:[#allocation2 + $0x109] sm:$0xff] }
  0xae   : > { %1062 = vst.msk [vmem:[#allocation3 + $0x1e8] sm:$0xff] %vm246_vm0, %v3767_v45 }
  0xb0   : > { %513 = vrot.lane.b32.xlu1 %v3418_v48, %s3112_s21  ;;  %v689_v48 = vpop.permute.xlu0 %688 }
  0xb1   : > { %1154 = vrot.lane.b32.xlu0 %v3449_v56, %s3112_s21 }
  0xb4   : > { %1349 = vrot.lane.b32.xlu1 %v3759_v43, %s3113_s27 }
  0xb5   : > { %511 = vrot.lane.b32.xlu0 %v3410_v47, %s3112_s21  ;;  %v496_v47 = vpop.permute.xlu1 %495 }
  0xb6   : > { %592 = vst.msk [vmem:[#allocation3] sm:$0xff] %vm591_vm2, %v496_v47 }
  0xb7   : > { %785 = vst.msk [vmem:[#allocation3] sm:$0xff] %vm784_vm3, %v689_v48 }
  0xb8   : > { %706 = vrot.lane.b32.xlu1 %v3422_v50, %s3113_s27  ;;  %v1741_v50 = vld [vmem:[#allocation3 + $0xd0] sm:$0xff] }
  0xb9   : > { %1347 = vrot.lane.b32.xlu0 %v3763_v44, %s3113_s27  ;;  %v1825_v13 = vpack.c.bf16 %v1744_v12, %v1741_v50 }
  0xbb   : > { %2937 = vmatprep.mubr.msk.bf16.mxu1 %vm246_vm0, %v1825_v13 }
  0xbc   : > { %1541 = vrot.lane.b32.xlu1 %v3469_v59, %s3114_s7  ;;  %2938 = vmatmul.mubr.msk.bf16.gmra.mrb[8].mxu1 %vm246_vm0, %v1828_v17  ;;  %v3885_v17 = vld [vmem:[#allocation2 + $0x141] sm:$0xff] }
  0xbd   : > { %704 = vrot.lane.b32.xlu0 %v3420_v49, %s3113_s27  ;;  %v325_v49 = vld [vmem:[%s3231_s14 + $0xb8] sm:$0xff]  ;;  %1067 = vst.msk [vmem:[#allocation3 + $0x260] sm:$0xff] %vm246_vm0, %v3885_v17 }
  0xbe   : > { %358 = vst.msk [vmem:[#allocation2 + $0x129] sm:$0xff] %vm246_vm0, %v325_v49  ;;  %v498_v16 = vpop.permute.xlu1 %497 }
  0xbf   : > { %593 = vst.msk [vmem:[#allocation3 + $0x18] sm:$0xff] %vm591_vm2, %v498_v16  ;;  %v3883_v16 = vld [vmem:[#allocation2 + $0x139] sm:$0xff] }
  0xc0   : > { %899 = vrot.lane.b32.xlu1 %v3435_v53, %s3114_s7  ;;  %1066 = vst.msk [vmem:[#allocation3 + $0x248] sm:$0xff] %vm246_vm0, %v3883_v16 }
  0xc1   : > { %1539 = vrot.lane.b32.xlu0 %v3461_v58, %s3114_s7 }
  0xc2   : > { %v691_v18 = vpop.permute.xlu1 %690 }
  0xc3   : > { %786 = vst.msk [vmem:[#allocation3 + $0x18] sm:$0xff] %vm784_vm3, %v691_v18  ;;  %v382_v18 = vld [vmem:[#allocation2 + $0xb0] sm:$0xff] }
  0xc4   : > { %1160 = vrot.lane.b32.xlu1 %v3479_v0, %s3112_s21  ;;  %414 = vst.msk [vmem:[#allocation3 + $0x168] sm:$0xff] %vm246_vm0, %v382_v18 }
  0xc5   : > { %897 = vrot.lane.b32.xlu0 %v3433_v52, %s3114_s7  ;;  %v3827_v32 = vld [vmem:[#allocation2 + $0x129] sm:$0xff] }
  0xc6   : > { %1065 = vst.msk [vmem:[#allocation3 + $0x230] sm:$0xff] %vm246_vm0, %v3827_v32  ;;  %v3847_v1 = vld [vmem:[#allocation2 + $0x122] sm:$0xff]  ;;  %v3849_v2 = vld [vmem:[#allocation2 + $0x12a] sm:$0xff] }
  0xc7   : > { %v1139_v53 = vpop.permute.xlu0 %1138  ;;  %1703 = vst.msk [vmem:[#allocation3 + $0x1f0] sm:$0xff] %vm246_vm0, %v3847_v1  ;;  %1704 = vst.msk [vmem:[#allocation3 + $0x208] sm:$0xff] %vm246_vm0, %v3849_v2 }
  0xc8   : > { %1234 = vst.msk [vmem:[#allocation3 + $0x8] sm:$0xff] %vm591_vm2, %v1139_v53  ;;  %517 = vrot.lane.b32.xlu1 %v3447_v55, %s3112_s21  ;;  %v381_v53 = vld [vmem:[#allocation2 + $0xa8] sm:$0xff] }
  0xc9   : > { %1158 = vrot.lane.b32.xlu0 %v3477_v63, %s3112_s21  ;;  %413 = vst.msk [vmem:[#allocation3 + $0x150] sm:$0xff] %vm246_vm0, %v381_v53  ;;  %v331_v53 = vld [vmem:[%s3231_s14 + $0xe8] sm:$0xff] }
  0xca   : > { %v1334_v20 = vpop.permute.xlu1 %1333  ;;  %364 = vst.msk [vmem:[#allocation2 + $0x171] sm:$0xff] %vm246_vm0, %v331_v53 }
  0xcb   : > { %v1141_v52 = vpop.permute.xlu0 %1140 }
  0xcc   : > { %1235 = vst.msk [vmem:[#allocation3 + $0x20] sm:$0xff] %vm591_vm2, %v1141_v52  ;;  %1353 = vrot.lane.b32.xlu1 %v3814_v19, %s3113_s27 }
  0xcd   : > { %515 = vrot.lane.b32.xlu0 %v3437_v54, %s3112_s21  ;;  %1428 = vst.msk [vmem:[#allocation3 + $0x20] sm:$0xff] %vm784_vm3, %v1334_v20  ;;  %v3905_v20 = vld [vmem:[#allocation2 + $0x13a] sm:$0xff] }
  0xce   : > { %v1526_v55 = vpop.permute.xlu1 %1525  ;;  %1705 = vst.msk [vmem:[#allocation3 + $0x220] sm:$0xff] %vm246_vm0, %v3905_v20 }
  0xcf   : > { %v1332_v27 = vpop.permute.xlu0 %1331  ;;  %1620 = vst.msk [vmem:[#allocation3 + $0x20] sm:$0xff] %vm977_vm4, %v1526_v55  ;;  %v328_v55 = vld [vmem:[%s3231_s14 + $0xd0] sm:$0xff] }
  0xd0   : > { %1427 = vst.msk [vmem:[#allocation3 + $0x8] sm:$0xff] %vm784_vm3, %v1332_v27  ;;  %710 = vrot.lane.b32.xlu1 %v3451_v57, %s3113_s27  ;;  %v3907_v27 = vld [vmem:[#allocation2 + $0x142] sm:$0xff] }
  0xd1   : > { %1351 = vrot.lane.b32.xlu0 %v3820_v21, %s3113_s27  ;;  %1706 = vst.msk [vmem:[#allocation3 + $0x238] sm:$0xff] %vm246_vm0, %v3907_v27  ;;  %361 = vst.msk [vmem:[#allocation2 + $0x151] sm:$0xff] %vm246_vm0, %v328_v55 }
  0xd2   : > { %v884_v61 = vpop.permute.xlu1 %883 }
  0xd3   : > { %v1524_v54 = vpop.permute.xlu0 %1523  ;;  %979 = vst.msk [vmem:[#allocation3 + $0x18] sm:$0xff] %vm977_vm4, %v884_v61  ;;  %v1753_v61 = vld [vmem:[#allocation3 + $0x130] sm:$0xff] }
  0xd4   : > { %1619 = vst.msk [vmem:[#allocation3 + $0x8] sm:$0xff] %vm977_vm4, %v1524_v54  ;;  %1545 = vrot.lane.b32.xlu1 %v3571_v3, %s3114_s7  ;;  %v329_v54 = vld [vmem:[%s3231_s14 + $0xd8] sm:$0xff] }
  0xd5   : > { %708 = vrot.lane.b32.xlu0 %v3449_v56, %s3113_s27  ;;  %362 = vst.msk [vmem:[#allocation2 + $0x159] sm:$0xff] %vm246_vm0, %v329_v54 }
  0xd6   : > { %v1145_v57 = vpop.permute.xlu1 %1144  ;;  %v1719_v56 = vld [vmem:[#allocation3 + $0x20] sm:$0xff] }
  0xd7   : > { %v882_v36 = vpop.permute.xlu0 %881  ;;  %1237 = vst.msk [vmem:[#allocation3 + $0x50] sm:$0xff] %vm591_vm2, %v1145_v57  ;;  %v1831_v57 = vpack.c.bf16 %v1756_v38, %v1753_v61 }
  0xd8   : > { %978 = vst.msk [vmem:[#allocation3] sm:$0xff] %vm977_vm4, %v882_v36  ;;  %903 = vrot.lane.b32.xlu1 %v3759_v43, %s3114_s7 }
  0xd9   : > { %1543 = vrot.lane.b32.xlu0 %v3566_v62, %s3114_s7  ;;  %2941 = vmatprep.mubr.msk.bf16.mxu1 %vm246_vm0, %v1831_v57  ;;  %v3998_v57 = vld [vmem:[#allocation2 + $0xf0] sm:$0xff] }
  0xda   : > { %v502_v48 = vpop.permute.xlu1 %501  ;;  %v1718_v11 = vld [vmem:[#allocation3 + $0x18] sm:$0xff] }
  0xdb   : > { %v1143_v8 = vpop.permute.xlu0 %1142  ;;  %v1716_v9 = vld [vmem:[#allocation3 + $0x8] sm:$0xff]  ;;  %595 = vst.msk [vmem:[#allocation3 + $0x48] sm:$0xff] %vm591_vm2, %v502_v48 }
  0xdc   : > { %1236 = vst.msk [vmem:[#allocation3 + $0x38] sm:$0xff] %vm591_vm2, %v1143_v8  ;;  %v1812_v47 = vpack.c.bf16 %v1719_v56, %v1716_v9  ;;  %1164 = vrot.lane.b32.xlu1 %v3575_v5, %s3112_s21  ;;  %v1759_v56 = vld [vmem:[#allocation3 + $0x160] sm:$0xff] }
  0xdd   : > { %901 = vrot.lane.b32.xlu0 %v3763_v44, %s3114_s7  ;;  %v1834_v9 = vpack.c.bf16 %v1762_v6, %v1759_v56 }
  0xde   : > { %1998 = vmatprep.mubr.bf16.mxu0 %v1812_v47  ;;  %v1338_v12 = vpop.permute.xlu1 %1337 }
  0xdf   : > { %v500_v43 = vpop.permute.xlu0 %499  ;;  %v1715_v49 = vld [vmem:[#allocation3] sm:$0xff]  ;;  %1430 = vst.msk [vmem:[#allocation3 + $0x50] sm:$0xff] %vm784_vm3, %v1338_v12  ;;  %2942 = vmatmul.mubr.msk.bf16.gmra.mrb[12].mxu1 %vm246_vm0, %v1834_v9 }
  0xe0   : > { %594 = vst.msk [vmem:[#allocation3 + $0x30] sm:$0xff] %vm591_vm2, %v500_v43  ;;  %v1811_v50 = vpack.c.bf16 %v1718_v11, %v1715_v49  ;;  %521 = vrot.lane.b32.xlu1 %v3469_v59, %s3112_s21 }
  0xe1   : > { %1162 = vrot.lane.b32.xlu0 %v3573_v4, %s3112_s21 }
  0xe2   : > { %1999 = vmatmul.mubr.bf16.vlgmr.msra.gmra.mrb[0].mxu0 %v1811_v50  ;;  %v695_v13 = vpop.permute.xlu1 %694 }
  0xe3   : > { %v1336_v44 = vpop.permute.xlu0 %1335  ;;  %788 = vst.msk [vmem:[#allocation3 + $0x48] sm:$0xff] %vm784_vm3, %v695_v13  ;;  %v3945_v13 = vld [vmem:[#allocation2 + $0x159] sm:$0xff] }
  0xe4   : > { %1429 = vst.msk [vmem:[#allocation3 + $0x38] sm:$0xff] %vm784_vm3, %v1336_v44  ;;  %1357 = vrot.lane.b32.xlu1 %v3623_v23, %s3113_s27  ;;  %v3943_v44 = vld [vmem:[#allocation2 + $0x151] sm:$0xff] }
  0xe5   : > { %519 = vrot.lane.b32.xlu0 %v3461_v58, %s3112_s21  ;;  %1068 = vst.msk [vmem:[#allocation3 + $0x278] sm:$0xff] %vm246_vm0, %v3943_v44  ;;  %1069 = vst.msk [vmem:[#allocation3 + $0x290] sm:$0xff] %vm246_vm0, %v3945_v13 }
  0xe6   : > { %v1530_v15 = vpop.permute.xlu1 %1529 }
  0xe7   : > { %v693_v14 = vpop.permute.xlu0 %692  ;;  %1622 = vst.msk [vmem:[#allocation3 + $0x50] sm:$0xff] %vm977_vm4, %v1530_v15 }
  0xe8   : > { %787 = vst.msk [vmem:[#allocation3 + $0x30] sm:$0xff] %vm784_vm3, %v693_v14  ;;  %714 = vrot.lane.b32.xlu1 %v3479_v0, %s3113_s27 }
  0xe9   : > { %1355 = vrot.lane.b32.xlu0 %v3621_v22, %s3113_s27 }
  0xea   : > { %v888_v59 = vpop.permute.xlu1 %887 }
  0xeb   : > { %v1528_v58 = vpop.permute.xlu0 %1527  ;;  %981 = vst.msk [vmem:[#allocation3 + $0x48] sm:$0xff] %vm977_vm4, %v888_v59 }
  0xec   : > { %1621 = vst.msk [vmem:[#allocation3 + $0x38] sm:$0xff] %vm977_vm4, %v1528_v58  ;;  %1549 = vrot.lane.b32.xlu1 %v3627_v25, %s3114_s7  ;;  %v3963_v58 = vld [vmem:[#allocation2 + $0x152] sm:$0xff] }
  0xed   : > { %712 = vrot.lane.b32.xlu0 %v3477_v63, %s3113_s27  ;;  %1707 = vst.msk [vmem:[#allocation3 + $0x250] sm:$0xff] %vm246_vm0, %v3963_v58 }
  0xee   : > { %v1149_v0 = vpop.permute.xlu1 %1148  ;;  %v1725_v63 = vld [vmem:[#allocation3 + $0x50] sm:$0xff] }
  0xef   : > { %v886_v52 = vpop.permute.xlu0 %885  ;;  %1239 = vst.msk [vmem:[#allocation3 + $0x80] sm:$0xff] %vm591_vm2, %v1149_v0 }
  0xf0   : > { %980 = vst.msk [vmem:[#allocation3 + $0x30] sm:$0xff] %vm977_vm4, %v886_v52  ;;  %907 = vrot.lane.b32.xlu1 %v3814_v19, %s3114_s7 }
  0xf1   : > { %1547 = vrot.lane.b32.xlu0 %v3625_v24, %s3114_s7 }
  0xf2   : > { %v506_v8 = vpop.permute.xlu1 %505  ;;  %v1724_v19 = vld [vmem:[#allocation3 + $0x48] sm:$0xff] }
  0xf3   : > { %v1147_v35 = vpop.permute.xlu0 %1146  ;;  %v1722_v36 = vld [vmem:[#allocation3 + $0x38] sm:$0xff]  ;;  %597 = vst.msk [vmem:[#allocation3 + $0x78] sm:$0xff] %vm591_vm2, %v506_v8 }
  0xf4   : > { %1238 = vst.msk [vmem:[#allocation3 + $0x68] sm:$0xff] %vm591_vm2, %v1147_v35  ;;  %v1815_v7 = vpack.c.bf16 %v1725_v63, %v1722_v36  ;;  %1168 = vrot.lane.b32.xlu1 %v3637_v29, %s3112_s21  ;;  %v3992_v35 = vld [vmem:[#allocation2 + $0xf8] sm:$0xff] }
  0xf5   : > { %905 = vrot.lane.b32.xlu0 %v3820_v21, %s3114_s7 }
  0xf6   : > { %2006 = vmatprep.mubr.bf16.mxu0 %v1815_v7  ;;  %v1342_v43 = vpop.permute.xlu1 %1341  ;;  %v4005_v7 = vld [vmem:[#allocation2 + $0x171] sm:$0xff] }
  0xf7   : > { %v504_v47 = vpop.permute.xlu0 %503  ;;  %v1721_v48 = vld [vmem:[#allocation3 + $0x30] sm:$0xff]  ;;  %1432 = vst.msk [vmem:[#allocation3 + $0x80] sm:$0xff] %vm784_vm3, %v1342_v43 }
  0xf8   : > { %596 = vst.msk [vmem:[#allocation3 + $0x60] sm:$0xff] %vm591_vm2, %v504_v47  ;;  %v1814_v11 = vpack.c.bf16 %v1724_v19, %v1721_v48  ;;  %525 = vrot.lane.b32.xlu1 %v3571_v3, %s3112_s21  ;;  %v1765_v43 = vld [vmem:[#allocation3 + $0x190] sm:$0xff] }
  0xf9   : > { %1166 = vrot.lane.b32.xlu0 %v3635_v26, %s3112_s21  ;;  %1071 = vst.msk [vmem:[#allocation3 + $0x2c0] sm:$0xff] %vm246_vm0, %v4005_v7 }
  0xfa   : > { %2007 = vmatmul.mubr.bf16.gmra.mrb[4].mxu0 %v1814_v11  ;;  %v699_v49 = vpop.permute.xlu1 %698  ;;  %v333_v11 = vld [vmem:[%s3231_s14 + $0xf8] sm:$0xff] }
  0xfb   : > { %v1340_v21 = vpop.permute.xlu0 %1339  ;;  %790 = vst.msk [vmem:[#allocation3 + $0x78] sm:$0xff] %vm784_vm3, %v699_v49 }
  0xfc   : > { %1431 = vst.msk [vmem:[#allocation3 + $0x68] sm:$0xff] %vm784_vm3, %v1340_v21  ;;  %1361 = vrot.lane.b32.xlu1 %v3661_v60, %s3113_s27  ;;  %v1768_v21 = vld [vmem:[#allocation3 + $0x1a8] sm:$0xff] }
  0xfd   : > { %523 = vrot.lane.b32.xlu0 %v3566_v62, %s3112_s21  ;;  %366 = vst.msk [vmem:[#allocation2 + $0x189] sm:$0xff] %vm246_vm0, %v333_v11 }
  0xfe   : > { %v1534_v12 = vpop.permute.xlu1 %1533 }
  0xff   : > { %v697_v50 = vpop.permute.xlu0 %696  ;;  %1624 = vst.msk [vmem:[#allocation3 + $0x80] sm:$0xff] %vm977_vm4, %v1534_v12  ;;  %v1837_v12 = vpack.c.bf16 %v1768_v21, %v1765_v43  ;;  %v1789_v43 = vld [vmem:[#allocation3 + $0x250] sm:$0xff] }
 0x100   : > { %789 = vst.msk [vmem:[#allocation3 + $0x60] sm:$0xff] %vm784_vm3, %v697_v50  ;;  %718 = vrot.lane.b32.xlu1 %v3575_v5, %s3113_s27  ;;  %v3965_v5 = vld [vmem:[#allocation2 + $0x15a] sm:$0xff] }
 0x101   : > { %1359 = vrot.lane.b32.xlu0 %v3657_v51, %s3113_s27  ;;  %1708 = vst.msk [vmem:[#allocation3 + $0x268] sm:$0xff] %vm246_vm0, %v3965_v5  ;;  %2945 = vmatprep.mubr.msk.bf16.mxu1 %vm246_vm0, %v1837_v12 }
 0x102   : > { %v892_v3 = vpop.permute.xlu1 %891 }
 0x103   : > { %v1532_v62 = vpop.permute.xlu0 %1531  ;;  %983 = vst.msk [vmem:[#allocation3 + $0x78] sm:$0xff] %vm977_vm4, %v892_v3  ;;  %v1774_v3 = vld [vmem:[#allocation3 + $0x1d8] sm:$0xff] }
 0x104   : > { %1623 = vst.msk [vmem:[#allocation3 + $0x68] sm:$0xff] %vm977_vm4, %v1532_v62  ;;  %1553 = vrot.lane.b32.xlu1 %v3675_v33, %s3114_s7  ;;  %v1771_v62 = vld [vmem:[#allocation3 + $0x1c0] sm:$0xff] }
 0x105   : > { %716 = vrot.lane.b32.xlu0 %v3573_v4, %s3113_s27  ;;  %v330_v4 = vld [vmem:[%s3231_s14 + $0xe0] sm:$0xff] }
 0x106   : > { %v1153_v15 = vpop.permute.xlu1 %1152  ;;  %v1731_v59 = vld [vmem:[#allocation3 + $0x80] sm:$0xff]  ;;  %363 = vst.msk [vmem:[#allocation2 + $0x169] sm:$0xff] %vm246_vm0, %v330_v4 }
 0x107   : > { %v890_v14 = vpop.permute.xlu0 %889  ;;  %1241 = vst.msk [vmem:[#allocation3 + $0xb0] sm:$0xff] %vm591_vm2, %v1153_v15 }
 0x108   : > { %982 = vst.msk [vmem:[#allocation3 + $0x60] sm:$0xff] %vm977_vm4, %v890_v14  ;;  %911 = vrot.lane.b32.xlu1 %v3623_v23, %s3114_s7  ;;  %v1792_v21 = vld [vmem:[#allocation3 + $0x268] sm:$0xff] }
 0x109   : > { %1551 = vrot.lane.b32.xlu0 %v3673_v28, %s3114_s7  ;;  %v1849_v12 = vpack.c.bf16 %v1792_v21, %v1789_v43  ;;  %v390_v43 = vld [vmem:[#allocation2 + $0x110] sm:$0xff] }
 0x10a   : > { %v510_v63 = vpop.permute.xlu1 %509  ;;  %v1730_v55 = vld [vmem:[#allocation3 + $0x78] sm:$0xff]  ;;  %422 = vst.msk [vmem:[#allocation3 + $0x228] sm:$0xff] %vm246_vm0, %v390_v43 }
 0x10b   : > { %v1151_v18 = vpop.permute.xlu0 %1150  ;;  %v1728_v52 = vld [vmem:[#allocation3 + $0x68] sm:$0xff]  ;;  %599 = vst.msk [vmem:[#allocation3 + $0xa8] sm:$0xff] %vm591_vm2, %v510_v63 }
 0x10c   : > { %1240 = vst.msk [vmem:[#allocation3 + $0x98] sm:$0xff] %vm591_vm2, %v1151_v18  ;;  %v1818_v0 = vpack.c.bf16 %v1731_v59, %v1728_v52  ;;  %1172 = vrot.lane.b32.xlu1 %v3691_v34, %s3112_s21  ;;  %v1840_v59 = vpack.c.bf16 %v1774_v3, %v1771_v62 }
 0x10d   : > { %909 = vrot.lane.b32.xlu0 %v3621_v22, %s3114_s7  ;;  %v4003_v6 = vld [vmem:[#allocation2 + $0x169] sm:$0xff] }
 0x10e   : > { %2014 = vmatprep.mubr.bf16.mxu0 %v1818_v0  ;;  %v1346_v38 = vpop.permute.xlu1 %1345  ;;  %1070 = vst.msk [vmem:[#allocation3 + $0x2a8] sm:$0xff] %vm246_vm0, %v4003_v6  ;;  %v4023_v47 = vld [vmem:[#allocation2 + $0x16a] sm:$0xff]  ;;  %2946 = vmatmul.mubr.msk.bf16.gmra.mrb[16].mxu1 %vm246_vm0, %v1840_v59 }
 0x10f   : > { %v508_v23 = vpop.permute.xlu0 %507  ;;  %v1727_v54 = vld [vmem:[#allocation3 + $0x60] sm:$0xff]  ;;  %1434 = vst.msk [vmem:[#allocation3 + $0xb0] sm:$0xff] %vm784_vm3, %v1346_v38  ;;  %v1780_v38 = vld [vmem:[#allocation3 + $0x208] sm:$0xff] }
 0x110   : > { %598 = vst.msk [vmem:[#allocation3 + $0x90] sm:$0xff] %vm591_vm2, %v508_v23  ;;  %v1817_v61 = vpack.c.bf16 %v1730_v55, %v1727_v54  ;;  %529 = vrot.lane.b32.xlu1 %v3627_v25, %s3112_s21  ;;  %v4054_v0 = vld [vmem:[#allocation2 + $0x110] sm:$0xff]  ;;  %v4060_v55 = vld [vmem:[#allocation2 + $0x108] sm:$0xff] }
 0x111   : > { %1170 = vrot.lane.b32.xlu0 %v3689_v30, %s3112_s21  ;;  %1709 = vst.msk [vmem:[#allocation3 + $0x280] sm:$0xff] %vm246_vm0, %v4023_v47 }
 0x112   : > { %2015 = vmatmul.mubr.bf16.gmra.mrb[8].mxu0 %v1817_v61  ;;  %v703_v36 = vpop.permute.xlu1 %702  ;;  %v4067_v61 = vld [vmem:[#allocation2 + $0x189] sm:$0xff] }
 0x113   : > { %v1344_v22 = vpop.permute.xlu0 %1343  ;;  %792 = vst.msk [vmem:[#allocation3 + $0xa8] sm:$0xff] %vm784_vm3, %v703_v36 }
 0x114   : > { %1433 = vst.msk [vmem:[#allocation3 + $0x98] sm:$0xff] %vm784_vm3, %v1344_v22  ;;  %1365 = vrot.lane.b32.xlu1 %v3992_v35, %s3113_s27 }
 0x115   : > { %527 = vrot.lane.b32.xlu0 %v3625_v24, %s3112_s21  ;;  %1073 = vst.msk [vmem:[#allocation3 + $0x2f0] sm:$0xff] %vm246_vm0, %v4067_v61 }
 0x116   : > { %v1538_v25 = vpop.permute.xlu1 %1537 }
 0x117   : > { %v701_v56 = vpop.permute.xlu0 %700  ;;  %1626 = vst.msk [vmem:[#allocation3 + $0xb0] sm:$0xff] %vm977_vm4, %v1538_v25  ;;  %v1786_v25 = vld [vmem:[#allocation3 + $0x238] sm:$0xff] }
 0x118   : > { %791 = vst.msk [vmem:[#allocation3 + $0x90] sm:$0xff] %vm784_vm3, %v701_v56  ;;  %722 = vrot.lane.b32.xlu1 %v3637_v29, %s3113_s27  ;;  %v4025_v29 = vld [vmem:[#allocation2 + $0x172] sm:$0xff] }
 0x119   : > { %1363 = vrot.lane.b32.xlu0 %v3998_v57, %s3113_s27  ;;  %1710 = vst.msk [vmem:[#allocation3 + $0x298] sm:$0xff] %vm246_vm0, %v4025_v29  ;;  %v1783_v56 = vld [vmem:[#allocation3 + $0x220] sm:$0xff] }
 0x11a   : > { %v896_v8 = vpop.permute.xlu1 %895  ;;  %v1795_v62 = vld [vmem:[#allocation3 + $0x280] sm:$0xff] }
 0x11b   : > { %v1536_v24 = vpop.permute.xlu0 %1535  ;;  %985 = vst.msk [vmem:[#allocation3 + $0xa8] sm:$0xff] %vm977_vm4, %v896_v8  ;;  %v1846_v8 = vpack.c.bf16 %v1786_v25, %v1783_v56 }
 0x11c   : > { %1625 = vst.msk [vmem:[#allocation3 + $0x98] sm:$0xff] %vm977_vm4, %v1536_v24  ;;  %1557 = vrot.lane.b32.xlu1 %v3721_v40, %s3114_s7 }
 0x11d   : > { %720 = vrot.lane.b32.xlu0 %v3635_v26, %s3113_s27  ;;  %v332_v26 = vld [vmem:[%s3231_s14 + $0xf0] sm:$0xff] }
 0x11e   : > { %v1157_v19 = vpop.permute.xlu1 %1156  ;;  %v1737_v48 = vld [vmem:[#allocation3 + $0xb0] sm:$0xff]  ;;  %365 = vst.msk [vmem:[#allocation2 + $0x181] sm:$0xff] %vm246_vm0, %v332_v26  ;;  %v4091_v26 = vld [vmem:[#allocation2 + $0x18a] sm:$0xff] }
 0x11f   : > { %v894_v9 = vpop.permute.xlu0 %893  ;;  %1243 = vst.msk [vmem:[#allocation3 + $0xe0] sm:$0xff] %vm591_vm2, %v1157_v19 }
 0x120   : > { %984 = vst.msk [vmem:[#allocation3 + $0x90] sm:$0xff] %vm977_vm4, %v894_v9  ;;  %915 = vrot.lane.b32.xlu1 %v3661_v60, %s3114_s7  ;;  %v388_v9 = vld [vmem:[#allocation2 + $0xf8] sm:$0xff]  ;;  %v1798_v3 = vld [vmem:[#allocation3 + $0x298] sm:$0xff] }
 0x121   : > { %1555 = vrot.lane.b32.xlu0 %v3719_v39, %s3114_s7  ;;  %420 = vst.msk [vmem:[#allocation3 + $0x1f8] sm:$0xff] %vm246_vm0, %v388_v9  ;;  %1712 = vst.msk [vmem:[#allocation3 + $0x2c8] sm:$0xff] %vm246_vm0, %v4091_v26  ;;  %v1852_v59 = vpack.c.bf16 %v1798_v3, %v1795_v62  ;;  %v2408_v3 = vld [vmem:[%s4764_s3] sm:$0xff] }
 0x122   : > { %v514_v15 = vpop.permute.xlu1 %513  ;;  %v1736_v60 = vld [vmem:[#allocation3 + $0xa8] sm:$0xff] }
 0x123   : > { %v1155_v49 = vpop.permute.xlu0 %1154  ;;  %v1734_v50 = vld [vmem:[#allocation3 + $0x98] sm:$0xff]  ;;  %601 = vst.msk [vmem:[#allocation3 + $0xd8] sm:$0xff] %vm591_vm2, %v514_v15 }
 0x124   : > { %1242 = vst.msk [vmem:[#allocation3 + $0xc8] sm:$0xff] %vm591_vm2, %v1155_v49  ;;  %v1821_v14 = vpack.c.bf16 %v1737_v48, %v1734_v50  ;;  %1176 = vrot.lane.b32.xlu1 %v3737_v42, %s3112_s21 }
 0x125   : > { %913 = vrot.lane.b32.xlu0 %v3657_v51, %s3114_s7  ;;  %v4065_v54 = vld [vmem:[#allocation2 + $0x181] sm:$0xff] }
 0x126   : > { %2022 = vmatprep.mubr.bf16.mxu0 %v1821_v14  ;;  %v1350_v52 = vpop.permute.xlu1 %1349  ;;  %1072 = vst.msk [vmem:[#allocation3 + $0x2d8] sm:$0xff] %vm246_vm0, %v4065_v54 }
 0x127   : > { %v512_v4 = vpop.permute.xlu0 %511  ;;  %v1733_v53 = vld [vmem:[#allocation3 + $0x90] sm:$0xff]  ;;  %1436 = vst.msk [vmem:[#allocation3 + $0xe0] sm:$0xff] %vm784_vm3, %v1350_v52 }
 0x128   : > { %600 = vst.msk [vmem:[#allocation3 + $0xc0] sm:$0xff] %vm591_vm2, %v512_v4  ;;  %v1820_v18 = vpack.c.bf16 %v1736_v60, %v1733_v53  ;;  %533 = vrot.lane.b32.xlu1 %v3675_v33, %s3112_s21  ;;  %v1681_v60 = vld [vmem:[#allocation2 + $0x19a] sm:$0xff]  ;;  %v1682_v4 = vld [vmem:[#allocation2 + $0x1a2] sm:$0xff] }
 0x129   : > { %1174 = vrot.lane.b32.xlu0 %v3735_v41, %s3112_s21  ;;  %1713 = vst.msk [vmem:[#allocation3 + $0x2e0] sm:$0xff] %vm246_vm0, %v1681_v60  ;;  %1714 = vst.msk [vmem:[#allocation3 + $0x2f8] sm:$0xff] %vm246_vm0, %v1682_v4 }
 0x12a   : > { %2023 = vmatmul.mubr.bf16.gmra.mrb[12].mxu0 %v1820_v18  ;;  %v707_v63 = vpop.permute.xlu1 %706 }
 0x12b   : > { %v1348_v51 = vpop.permute.xlu0 %1347  ;;  %794 = vst.msk [vmem:[#allocation3 + $0xd8] sm:$0xff] %vm784_vm3, %v707_v63  ;;  %v1804_v63 = vld [vmem:[#allocation3 + $0x2c8] sm:$0xff] }
 0x12c   : > { %1435 = vst.msk [vmem:[#allocation3 + $0xc8] sm:$0xff] %vm784_vm3, %v1348_v51  ;;  %1369 = vrot.lane.b32.xlu1 %v4054_v0, %s3113_s27 }
 0x12d   : > { %531 = vrot.lane.b32.xlu0 %v3673_v28, %s3112_s21  ;;  %v1777_v28 = vld [vmem:[#allocation3 + $0x1f0] sm:$0xff] }
 0x12e   : > { %v1542_v33 = vpop.permute.xlu1 %1541  ;;  %v1843_v36 = vpack.c.bf16 %v1780_v38, %v1777_v28 }
 0x12f   : > { %v705_v23 = vpop.permute.xlu0 %704  ;;  %1628 = vst.msk [vmem:[#allocation3 + $0xe0] sm:$0xff] %vm977_vm4, %v1542_v33  ;;  %v4118_v33 = vld [vmem:[#allocation2 + $0x128] sm:$0xff] }
 0x130   : > { %793 = vst.msk [vmem:[#allocation3 + $0xc0] sm:$0xff] %vm784_vm3, %v705_v23  ;;  %726 = vrot.lane.b32.xlu1 %v3691_v34, %s3113_s27  ;;  %2949 = vmatprep.mubr.msk.bf16.mxu1 %vm246_vm0, %v1843_v36  ;;  %v387_v34 = vld [vmem:[#allocation2 + $0xf0] sm:$0xff]  ;;  %v1810_v36 = vld [vmem:[#allocation3 + $0x2f8] sm:$0xff] }
 0x131   : > { %1367 = vrot.lane.b32.xlu0 %v4060_v55, %s3113_s27  ;;  %2950 = vmatmul.mubr.msk.bf16.gmra.mrb[20].mxu1 %vm246_vm0, %v1846_v8  ;;  %419 = vst.msk [vmem:[#allocation3 + $0x1e0] sm:$0xff] %vm246_vm0, %v387_v34 }
 0x132   : > { %v900_v24 = vpop.permute.xlu1 %899  ;;  %2953 = vmatprep.mubr.msk.bf16.mxu1 %vm246_vm0, %v1849_v12 }
 0x133   : > { %v1540_v22 = vpop.permute.xlu0 %1539  ;;  %987 = vst.msk [vmem:[#allocation3 + $0xd8] sm:$0xff] %vm977_vm4, %v900_v24 }
 0x134   : > { %1627 = vst.msk [vmem:[#allocation3 + $0xc8] sm:$0xff] %vm977_vm4, %v1540_v22  ;;  %1561 = vrot.lane.b32.xlu1 %v3769_v46, %s3114_s7  ;;  %v1807_v22 = vld [vmem:[#allocation3 + $0x2e0] sm:$0xff] }
 0x135   : > { %724 = vrot.lane.b32.xlu0 %v3689_v30, %s3113_s27  ;;  %v4089_v30 = vld [vmem:[#allocation2 + $0x182] sm:$0xff]  ;;  %v1858_v56 = vpack.c.bf16 %v1810_v36, %v1807_v22 }
 0x136   : > { %v1161_v48 = vpop.permute.xlu1 %1160  ;;  %v1743_v11 = vld [vmem:[#allocation3 + $0xe0] sm:$0xff]  ;;  %1711 = vst.msk [vmem:[#allocation3 + $0x2b0] sm:$0xff] %vm246_vm0, %v4089_v30  ;;  %v392_v22 = vld [vmem:[#allocation2 + $0x128] sm:$0xff] }
 0x137   : > { %v898_v19 = vpop.permute.xlu0 %897  ;;  %1245 = vst.msk [vmem:[#allocation3 + $0x110] sm:$0xff] %vm591_vm2, %v1161_v48 }
 0x138   : > { %986 = vst.msk [vmem:[#allocation3 + $0xc0] sm:$0xff] %vm977_vm4, %v898_v19  ;;  %919 = vrot.lane.b32.xlu1 %v3992_v35, %s3114_s7 }
 0x139   : > { %1559 = vrot.lane.b32.xlu0 %v3767_v45, %s3114_s7  ;;  %2954 = vmatmul.mubr.msk.bf16.gmra.mrb[24].mxu1 %vm246_vm0, %v1852_v59  ;;  %424 = vst.msk [vmem:[#allocation3 + $0x258] sm:$0xff] %vm246_vm0, %v392_v22 }
 0x13a   : > { %v518_v15 = vpop.permute.xlu1 %517  ;;  %v1742_v35 = vld [vmem:[#allocation3 + $0xd8] sm:$0xff] }
 0x13b   : > { %v1159_v49 = vpop.permute.xlu0 %1158  ;;  %v1740_v50 = vld [vmem:[#allocation3 + $0xc8] sm:$0xff]  ;;  %603 = vst.msk [vmem:[#allocation3 + $0x108] sm:$0xff] %vm591_vm2, %v518_v15 }
 0x13c   : > { %1244 = vst.msk [vmem:[#allocation3 + $0xf8] sm:$0xff] %vm591_vm2, %v1159_v49  ;;  %v1824_v14 = vpack.c.bf16 %v1743_v11, %v1740_v50  ;;  %1180 = vrot.lane.b32.xlu1 %v3785_v37, %s3112_s21  ;;  %v389_v11 = vld [vmem:[#allocation2 + $0x108] sm:$0xff] }
 0x13d   : > { %917 = vrot.lane.b32.xlu0 %v3998_v57, %s3114_s7  ;;  %v1801_v51 = vld [vmem:[#allocation3 + $0x2b0] sm:$0xff]  ;;  %421 = vst.msk [vmem:[#allocation3 + $0x210] sm:$0xff] %vm246_vm0, %v389_v11 }
 0x13e   : > { %2030 = vmatprep.mubr.bf16.mxu0 %v1824_v14  ;;  %v1354_v52 = vpop.permute.xlu1 %1353  ;;  %v1855_v28 = vpack.c.bf16 %v1804_v63, %v1801_v51  ;;  %v4129_v24 = vpop.f32.mrb[0].mxu1  ;;  %v2409_v14 = vld [vmem:[%s4764_s3 + $0x8] sm:$0xff]  ;;  %v4188_v63 = vld [vmem:[#allocation2 + $0x138] sm:$0xff] }
 0x13f   : > { %v516_v53 = vpop.permute.xlu0 %515  ;;  %v1739_v18 = vld [vmem:[#allocation3 + $0xc0] sm:$0xff]  ;;  %1438 = vst.msk [vmem:[#allocation3 + $0x110] sm:$0xff] %vm784_vm3, %v1354_v52  ;;  %v4133_v34 = vpop.f32.mrb[1].mxu1  ;;  %v2412_v15 = vpack.c.bf16 %v2409_v14, %v2408_v3  ;;  %v4182_v52 = vld [vmem:[#allocation2 + $0x140] sm:$0xff] }
 0x140   : > { %602 = vst.msk [vmem:[#allocation3 + $0xf0] sm:$0xff] %vm591_vm2, %v516_v53  ;;  %v1823_v57 = vpack.c.bf16 %v1742_v35, %v1739_v18  ;;  %537 = vrot.lane.b32.xlu1 %v3721_v40, %s3112_s21  ;;  %2957 = vmatprep.mubr.msk.bf16.mxu1 %vm246_vm0, %v1855_v28  ;;  %v4125_v40 = vld [vmem:[#allocation2 + $0x120] sm:$0xff]  ;;  %v2411_v53 = vld [vmem:[%s4764_s3 + $0x18] sm:$0xff]  ;;  %v4238_v3 = vld [vmem:[#allocation2 + $0x150] sm:$0xff] }
 0x141   : > { %1178 = vrot.lane.b32.xlu0 %v3783_v10, %s3112_s21  ;;  %2958 = vmatmul.mubr.msk.bf16.gmra.mrb[28].mxu1 %vm246_vm0, %v1858_v56 }
 0x142   : > { %2031 = vmatmul.mubr.bf16.gmra.mrb[16].mxu0 %v1823_v57  ;;  %v711_v38 = vpop.permute.xlu1 %710  ;;  %2961 = vmatprep.subr.bf16.mxu1 %v2412_v15 }
 0x143   : > { %v1352_v23 = vpop.permute.xlu0 %1351  ;;  %796 = vst.msk [vmem:[#allocation3 + $0x108] sm:$0xff] %vm784_vm3, %v711_v38  ;;  %2962 = vmatpush3.bf16.msra.mxu1 %v2412_v15  ;;  %v391_v38 = vld [vmem:[#allocation2 + $0x120] sm:$0xff]  ;;  %v393_v15 = vld [vmem:[#allocation2 + $0x138] sm:$0xff] }
 0x144   : > { %1437 = vst.msk [vmem:[#allocation3 + $0xf8] sm:$0xff] %vm784_vm3, %v1352_v23  ;;  %1373 = vrot.lane.b32.xlu1 %v4118_v33, %s3113_s27 }
 0x145   : > { %535 = vrot.lane.b32.xlu0 %v3719_v39, %s3112_s21  ;;  %v4138_v39 = vpop.f32.mrb[2].mxu1  ;;  %423 = vst.msk [vmem:[#allocation3 + $0x240] sm:$0xff] %vm246_vm0, %v391_v38  ;;  %425 = vst.msk [vmem:[#allocation3 + $0x270] sm:$0xff] %vm246_vm0, %v393_v15 }
 0x146   : > { %v1546_v8 = vpop.permute.xlu1 %1545  ;;  %v4142_v9 = vpop.f32.mrb[3].mxu1 }
 0x147   : > { %v709_v25 = vpop.permute.xlu0 %708  ;;  %1630 = vst.msk [vmem:[#allocation3 + $0x110] sm:$0xff] %vm977_vm4, %v1546_v8 }
 0x148   : > { %795 = vst.msk [vmem:[#allocation3 + $0xf0] sm:$0xff] %vm784_vm3, %v709_v25  ;;  %730 = vrot.lane.b32.xlu1 %v3737_v42, %s3113_s27 }
 0x149   : > { %1371 = vrot.lane.b32.xlu0 %v4125_v40, %s3113_s27 }
 0x14a   : > { %v904_v48 = vpop.permute.xlu1 %903 }
 0x14b   : > { %v1544_v19 = vpop.permute.xlu0 %1543  ;;  %989 = vst.msk [vmem:[#allocation3 + $0x108] sm:$0xff] %vm977_vm4, %v904_v48 }
 0x14c   : > { %1629 = vst.msk [vmem:[#allocation3 + $0xf8] sm:$0xff] %vm977_vm4, %v1544_v19  ;;  %1565 = vrot.lane.b32.xlu1 %v3827_v32, %s3114_s7 }
 0x14d   : > { %728 = vrot.lane.b32.xlu0 %v3735_v41, %s3113_s27 }
 0x14e   : > { %v1165_v42 = vpop.permute.xlu1 %1164  ;;  %v1749_v41 = vld [vmem:[#allocation3 + $0x110] sm:$0xff] }
 0x14f   : > { %v902_v21 = vpop.permute.xlu0 %901  ;;  %1247 = vst.msk [vmem:[#allocation3 + $0x140] sm:$0xff] %vm591_vm2, %v1165_v42 }
 0x150   : > { %988 = vst.msk [vmem:[#allocation3 + $0xf0] sm:$0xff] %vm977_vm4, %v902_v21  ;;  %923 = vrot.lane.b32.xlu1 %v4054_v0, %s3114_s7 }
 0x151   : > { %1563 = vrot.lane.b32.xlu0 %v3825_v31, %s3114_s7 }
 0x152   : > { %v522_v62 = vpop.permute.xlu1 %521  ;;  %v1748_v0 = vld [vmem:[#allocation3 + $0x108] sm:$0xff] }
 0x153   : > { %v1163_v49 = vpop.permute.xlu0 %1162  ;;  %v1746_v50 = vld [vmem:[#allocation3 + $0xf8] sm:$0xff]  ;;  %605 = vst.msk [vmem:[#allocation3 + $0x138] sm:$0xff] %vm591_vm2, %v522_v62 }
 0x154   : > { %1246 = vst.msk [vmem:[#allocation3 + $0x128] sm:$0xff] %vm591_vm2, %v1163_v49  ;;  %v1827_v12 = vpack.c.bf16 %v1749_v41, %v1746_v50  ;;  %1184 = vrot.lane.b32.xlu1 %v3849_v2, %s3112_s21 }
 0x155   : > { %921 = vrot.lane.b32.xlu0 %v4060_v55, %s3114_s7  ;;  %v2410_v55 = vld [vmem:[%s4764_s3 + $0x10] sm:$0xff] }
 0x156   : > { %2038 = vmatprep.mubr.bf16.mxu0 %v1827_v12  ;;  %v1358_v35 = vpop.permute.xlu1 %1357  ;;  %v2413_v18 = vpack.c.bf16 %v2411_v53, %v2410_v55  ;;  %v4232_v12 = vld [vmem:[#allocation2 + $0x158] sm:$0xff] }
 0x157   : > { %v520_v59 = vpop.permute.xlu0 %519  ;;  %v1745_v60 = vld [vmem:[#allocation3 + $0xf0] sm:$0xff]  ;;  %1440 = vst.msk [vmem:[#allocation3 + $0x140] sm:$0xff] %vm784_vm3, %v1358_v35 }
 0x158   : > { %604 = vst.msk [vmem:[#allocation3 + $0x120] sm:$0xff] %vm591_vm2, %v520_v59  ;;  %v1826_v4 = vpack.c.bf16 %v1748_v0, %v1745_v60  ;;  %541 = vrot.lane.b32.xlu1 %v3769_v46, %s3112_s21  ;;  %2963 = vmatprep.subr.bf16.mxu1 %v2413_v18  ;;  %v394_v59 = vld [vmem:[#allocation2 + $0x140] sm:$0xff] }
 0x159   : > { %1182 = vrot.lane.b32.xlu0 %v3847_v1, %s3112_s21  ;;  %2964 = vmatpush3.bf16.msra.mxu1 %v2413_v18  ;;  %426 = vst.msk [vmem:[#allocation3 + $0x288] sm:$0xff] %vm246_vm0, %v394_v59  ;;  %v1914_v59 = vlaneseq }
 0x15a   : > { %2039 = vmatmul.mubr.bf16.gmra.mrb[20].mxu0 %v1826_v4  ;;  %v715_v51 = vpop.permute.xlu1 %714 }
 0x15b   : > { %v1356_v57 = vpop.permute.xlu0 %1355  ;;  %798 = vst.msk [vmem:[#allocation3 + $0x138] sm:$0xff] %vm784_vm3, %v715_v51 }
 0x15c   : > { %1439 = vst.msk [vmem:[#allocation3 + $0x128] sm:$0xff] %vm784_vm3, %v1356_v57  ;;  %1377 = vrot.lane.b32.xlu1 %v4182_v52, %s3113_s27 }
 0x15d   : > { %539 = vrot.lane.b32.xlu0 %v3767_v45, %s3112_s21 }
 0x15e   : > { %v1550_v46 = vpop.permute.xlu1 %1549 }
 0x15f   : > { %v713_v23 = vpop.permute.xlu0 %712  ;;  %1632 = vst.msk [vmem:[#allocation3 + $0x140] sm:$0xff] %vm977_vm4, %v1550_v46  ;;  %v4274_v46 = vld [vmem:[#allocation2 + $0x170] sm:$0xff] }
 0x160   : > { %797 = vst.msk [vmem:[#allocation3 + $0x120] sm:$0xff] %vm784_vm3, %v713_v23  ;;  %734 = vrot.lane.b32.xlu1 %v3785_v37, %s3113_s27 }
 0x161   : > { %1375 = vrot.lane.b32.xlu0 %v4188_v63, %s3113_s27 }
 0x162   : > { %v908_v28 = vpop.permute.xlu1 %907 }
 0x163   : > { %v1548_v45 = vpop.permute.xlu0 %1547  ;;  %991 = vst.msk [vmem:[#allocation3 + $0x138] sm:$0xff] %vm977_vm4, %v908_v28  ;;  %v4280_v28 = vld [vmem:[#allocation2 + $0x168] sm:$0xff] }
 0x164   : > { %1631 = vst.msk [vmem:[#allocation3 + $0x128] sm:$0xff] %vm977_vm4, %v1548_v45  ;;  %1569 = vrot.lane.b32.xlu1 %v3885_v17, %s3114_s7  ;;  %v4210_v56 = vpop.f32.mrb[4].mxu1 }
 0x165   : > { %732 = vrot.lane.b32.xlu0 %v3783_v10, %s3113_s27  ;;  %v4214_v25 = vpop.f32.mrb[5].mxu1 }
 0x166   : > { %v1169_v37 = vpop.permute.xlu1 %1168  ;;  %v1755_v10 = vld [vmem:[#allocation3 + $0x140] sm:$0xff]  ;;  %v4216_v48 = vpop.f32.mrb[6].mxu1 }
 0x167   : > { %v906_v36 = vpop.permute.xlu0 %905  ;;  %1249 = vst.msk [vmem:[#allocation3 + $0x170] sm:$0xff] %vm591_vm2, %v1169_v37  ;;  %v4219_v21 = vpop.f32.mrb[7].mxu1  ;;  %v396_v37 = vld [vmem:[#allocation2 + $0x158] sm:$0xff] }
 0x168   : > { %990 = vst.msk [vmem:[#allocation3 + $0x120] sm:$0xff] %vm977_vm4, %v906_v36  ;;  %927 = vrot.lane.b32.xlu1 %v4118_v33, %s3114_s7  ;;  %v395_v36 = vld [vmem:[#allocation2 + $0x150] sm:$0xff] }
 0x169   : > { %1567 = vrot.lane.b32.xlu0 %v3883_v16, %s3114_s7  ;;  %427 = vst.msk [vmem:[#allocation3 + $0x2a0] sm:$0xff] %vm246_vm0, %v395_v36  ;;  %428 = vst.msk [vmem:[#allocation3 + $0x2b8] sm:$0xff] %vm246_vm0, %v396_v37 }
 0x16a   : > { %v526_v43 = vpop.permute.xlu1 %525  ;;  %v1754_v42 = vld [vmem:[#allocation3 + $0x138] sm:$0xff] }
 0x16b   : > { %v1167_v8 = vpop.permute.xlu0 %1166  ;;  %v1752_v19 = vld [vmem:[#allocation3 + $0x128] sm:$0xff]  ;;  %607 = vst.msk [vmem:[#allocation3 + $0x168] sm:$0xff] %vm591_vm2, %v526_v43 }
 0x16c   : > { %1248 = vst.msk [vmem:[#allocation3 + $0x158] sm:$0xff] %vm591_vm2, %v1167_v8  ;;  %v1830_v11 = vpack.c.bf16 %v1755_v10, %v1752_v19  ;;  %1188 = vrot.lane.b32.xlu1 %v3907_v27, %s3112_s21 }
 0x16d   : > { %925 = vrot.lane.b32.xlu0 %v4125_v40, %s3114_s7 }
 0x16e   : > { %2046 = vmatprep.mubr.bf16.mxu0 %v1830_v11  ;;  %v1362_v50 = vpop.permute.xlu1 %1361 }
 0x16f   : > { %v524_v33 = vpop.permute.xlu0 %523  ;;  %v1751_v41 = vld [vmem:[#allocation3 + $0x120] sm:$0xff]  ;;  %1442 = vst.msk [vmem:[#allocation3 + $0x170] sm:$0xff] %vm784_vm3, %v1362_v50 }
 0x170   : > { %606 = vst.msk [vmem:[#allocation3 + $0x150] sm:$0xff] %vm591_vm2, %v524_v33  ;;  %v1829_v49 = vpack.c.bf16 %v1754_v42, %v1751_v41  ;;  %545 = vrot.lane.b32.xlu1 %v3827_v32, %s3112_s21 }
 0x171   : > { %1186 = vrot.lane.b32.xlu0 %v3905_v20, %s3112_s21 }
 0x172   : > { %2047 = vmatmul.mubr.bf16.gmra.mrb[24].mxu0 %v1829_v49  ;;  %v719_v62 = vpop.permute.xlu1 %718 }
 0x173   : > { %v1360_v40 = vpop.permute.xlu0 %1359  ;;  %800 = vst.msk [vmem:[#allocation3 + $0x168] sm:$0xff] %vm784_vm3, %v719_v62 }
 0x174   : > { %1441 = vst.msk [vmem:[#allocation3 + $0x158] sm:$0xff] %vm784_vm3, %v1360_v40  ;;  %1381 = vrot.lane.b32.xlu1 %v4232_v12, %s3113_s27 }
 0x175   : > { %543 = vrot.lane.b32.xlu0 %v3825_v31, %s3112_s21 }
 0x176   : > { %v1554_v32 = vpop.permute.xlu1 %1553 }
 0x177   : > { %v717_v14 = vpop.permute.xlu0 %716  ;;  %1634 = vst.msk [vmem:[#allocation3 + $0x170] sm:$0xff] %vm977_vm4, %v1554_v32  ;;  %v4324_v32 = vld [vmem:[#allocation2 + $0x188] sm:$0xff] }
 0x178   : > { %799 = vst.msk [vmem:[#allocation3 + $0x150] sm:$0xff] %vm784_vm3, %v717_v14  ;;  %738 = vrot.lane.b32.xlu1 %v3849_v2, %s3113_s27 }
 0x179   : > { %1379 = vrot.lane.b32.xlu0 %v4238_v3, %s3113_s27 }
 0x17a   : > { %v912_v0 = vpop.permute.xlu1 %911 }
 0x17b   : > { %v1552_v31 = vpop.permute.xlu0 %1551  ;;  %993 = vst.msk [vmem:[#allocation3 + $0x168] sm:$0xff] %vm977_vm4, %v912_v0  ;;  %v4330_v0 = vld [vmem:[#allocation2 + $0x180] sm:$0xff] }
 0x17c   : > { %1633 = vst.msk [vmem:[#allocation3 + $0x158] sm:$0xff] %vm977_vm4, %v1552_v31  ;;  %1573 = vrot.lane.b32.xlu1 %v3945_v13, %s3114_s7 }
 0x17d   : > { %736 = vrot.lane.b32.xlu0 %v3847_v1, %s3113_s27 }
 0x17e   : > { %v1173_v2 = vpop.permute.xlu1 %1172  ;;  %v1761_v1 = vld [vmem:[#allocation3 + $0x170] sm:$0xff] }
 0x17f   : > { %v910_v60 = vpop.permute.xlu0 %909  ;;  %1251 = vst.msk [vmem:[#allocation3 + $0x1a0] sm:$0xff] %vm591_vm2, %v1173_v2  ;;  %v1915_v2 = vshrl.u32 %v1914_v59, 7 }
 0x180   : > { %992 = vst.msk [vmem:[#allocation3 + $0x150] sm:$0xff] %vm977_vm4, %v910_v60  ;;  %931 = vrot.lane.b32.xlu1 %v4182_v52, %s3114_s7 }
 0x181   : > { %1571 = vrot.lane.b32.xlu0 %v3943_v44, %s3114_s7 }
 0x182   : > { %v530_v53 = vpop.permute.xlu1 %529  ;;  %v1760_v18 = vld [vmem:[#allocation3 + $0x168] sm:$0xff] }
 0x183   : > { %v1171_v4 = vpop.permute.xlu0 %1170  ;;  %v1758_v35 = vld [vmem:[#allocation3 + $0x158] sm:$0xff]  ;;  %609 = vst.msk [vmem:[#allocation3 + $0x198] sm:$0xff] %vm591_vm2, %v530_v53 }
 0x184   : > { %1250 = vst.msk [vmem:[#allocation3 + $0x188] sm:$0xff] %vm591_vm2, %v1171_v4  ;;  %v1833_v55 = vpack.c.bf16 %v1761_v1, %v1758_v35  ;;  %1192 = vrot.lane.b32.xlu1 %v3965_v5, %s3112_s21  ;;  %v397_v1 = vld [vmem:[#allocation2 + $0x168] sm:$0xff]  ;;  %v398_v4 = vld [vmem:[#allocation2 + $0x170] sm:$0xff] }
 0x185   : > { %929 = vrot.lane.b32.xlu0 %v4188_v63, %s3114_s7  ;;  %429 = vst.msk [vmem:[#allocation3 + $0x2d0] sm:$0xff] %vm246_vm0, %v397_v1  ;;  %430 = vst.msk [vmem:[#allocation3 + $0x2e8] sm:$0xff] %vm246_vm0, %v398_v4 }
 0x186   : > { %2054 = vmatprep.mubr.bf16.mxu0 %v1833_v55  ;;  %v1366_v23 = vpop.permute.xlu1 %1365  ;;  %v1916_v55 = vsub.s32 0, %v1915_v2 }
 0x187   : > { %v528_v57 = vpop.permute.xlu0 %527  ;;  %v1757_v51 = vld [vmem:[#allocation3 + $0x150] sm:$0xff]  ;;  %1444 = vst.msk [vmem:[#allocation3 + $0x1a0] sm:$0xff] %vm784_vm3, %v1366_v23 }
 0x188   : > { %608 = vst.msk [vmem:[#allocation3 + $0x180] sm:$0xff] %vm591_vm2, %v528_v57  ;;  %v1832_v52 = vpack.c.bf16 %v1760_v18, %v1757_v51  ;;  %549 = vrot.lane.b32.xlu1 %v3885_v17, %s3112_s21 }
 0x189   : > { %1190 = vrot.lane.b32.xlu0 %v3963_v58, %s3112_s21 }
 0x18a   : > { %2055 = vmatmul.mubr.bf16.gmra.mrb[28].mxu0 %v1832_v52  ;;  %v723_v45 = vpop.permute.xlu1 %722 }
 0x18b   : > { %v1364_v63 = vpop.permute.xlu0 %1363  ;;  %802 = vst.msk [vmem:[#allocation3 + $0x198] sm:$0xff] %vm784_vm3, %v723_v45 }
 0x18c   : > { %1443 = vst.msk [vmem:[#allocation3 + $0x188] sm:$0xff] %vm784_vm3, %v1364_v63  ;;  %1385 = vrot.lane.b32.xlu1 %v4274_v46, %s3113_s27 }
 0x18d   : > { %547 = vrot.lane.b32.xlu0 %v3883_v16, %s3112_s21 }
 0x18e   : > { %v1558_v17 = vpop.permute.xlu1 %1557 }
 0x18f   : > { %v721_v38 = vpop.permute.xlu0 %720  ;;  %1636 = vst.msk [vmem:[#allocation3 + $0x1a0] sm:$0xff] %vm977_vm4, %v1558_v17  ;;  %v4302_v8 = vpop.f32.mrb[8].mxu1 }
 0x190   : > { %801 = vst.msk [vmem:[#allocation3 + $0x180] sm:$0xff] %vm784_vm3, %v721_v38  ;;  %742 = vrot.lane.b32.xlu1 %v3907_v27, %s3113_s27  ;;  %v4306_v19 = vpop.f32.mrb[9].mxu1 }
 0x191   : > { %1383 = vrot.lane.b32.xlu0 %v4280_v28, %s3113_s27  ;;  %v4308_v42 = vpop.f32.mrb[10].mxu1 }
 0x192   : > { %v916_v22 = vpop.permute.xlu1 %915  ;;  %v4311_v49 = vpop.f32.mrb[11].mxu1 }
 0x193   : > { %v1556_v16 = vpop.permute.xlu0 %1555  ;;  %995 = vst.msk [vmem:[#allocation3 + $0x198] sm:$0xff] %vm977_vm4, %v916_v22 }
 0x194   : > { %1635 = vst.msk [vmem:[#allocation3 + $0x188] sm:$0xff] %vm977_vm4, %v1556_v16  ;;  %1577 = vrot.lane.b32.xlu1 %v4005_v7, %s3114_s7  ;;  %v2322_v16 = vsub.s32 1, %v1915_v2 }
 0x195   : > { %740 = vrot.lane.b32.xlu0 %v3905_v20, %s3113_s27 }
 0x196   : > { %v1177_v27 = vpop.permute.xlu1 %1176  ;;  %v1767_v20 = vld [vmem:[#allocation3 + $0x1a0] sm:$0xff] }
 0x197   : > { %v914_v10 = vpop.permute.xlu0 %913  ;;  %1253 = vst.msk [vmem:[#allocation3 + $0x1d0] sm:$0xff] %vm591_vm2, %v1177_v27 }
 0x198   : > { %994 = vst.msk [vmem:[#allocation3 + $0x180] sm:$0xff] %vm977_vm4, %v914_v10  ;;  %935 = vrot.lane.b32.xlu1 %v4232_v12, %s3114_s7 }
 0x199   : > { %1575 = vrot.lane.b32.xlu0 %v4003_v6, %s3114_s7 }
 0x19a   : > { %v534_v41 = vpop.permute.xlu1 %533  ;;  %v1766_v50 = vld [vmem:[#allocation3 + $0x198] sm:$0xff] }
 0x19b   : > { %v1175_v11 = vpop.permute.xlu0 %1174  ;;  %v1764_v43 = vld [vmem:[#allocation3 + $0x188] sm:$0xff]  ;;  %611 = vst.msk [vmem:[#allocation3 + $0x1c8] sm:$0xff] %vm591_vm2, %v534_v41 }
 0x19c   : > { %1252 = vst.msk [vmem:[#allocation3 + $0x1b8] sm:$0xff] %vm591_vm2, %v1175_v11  ;;  %v1836_v33 = vpack.c.bf16 %v1767_v20, %v1764_v43  ;;  %1196 = vrot.lane.b32.xlu1 %v4025_v29, %s3112_s21  ;;  %v2358_v20 = vsub.s32 2, %v1915_v2 }
 0x19d   : > { %933 = vrot.lane.b32.xlu0 %v4238_v3, %s3114_s7 }
 0x19e   : > { %2062 = vmatprep.mubr.bf16.mxu0 %v1836_v33  ;;  %v1370_v14 = vpop.permute.xlu1 %1369  ;;  %v1298_v33 = vld [vmem:[#allocation2 + $0x1a0] sm:$0xff] }
 0x19f   : > { %v532_v40 = vpop.permute.xlu0 %531  ;;  %v1763_v12 = vld [vmem:[#allocation3 + $0x180] sm:$0xff]  ;;  %1446 = vst.msk [vmem:[#allocation3 + $0x1d0] sm:$0xff] %vm784_vm3, %v1370_v14 }
 0x1a0   : > { %610 = vst.msk [vmem:[#allocation3 + $0x1b0] sm:$0xff] %vm591_vm2, %v532_v40  ;;  %v1835_v62 = vpack.c.bf16 %v1766_v50, %v1763_v12  ;;  %553 = vrot.lane.b32.xlu1 %v3945_v13, %s3112_s21 }
 0x1a1   : > { %1194 = vrot.lane.b32.xlu0 %v4023_v47, %s3112_s21 }
 0x1a2   : > { %2063 = vmatmul.mubr.bf16.gmra.mrb[32].mxu0 %v1835_v62  ;;  %v727_v31 = vpop.permute.xlu1 %726 }
 0x1a3   : > { %v1368_v3 = vpop.permute.xlu0 %1367  ;;  %804 = vst.msk [vmem:[#allocation3 + $0x1c8] sm:$0xff] %vm784_vm3, %v727_v31 }
 0x1a4   : > { %1445 = vst.msk [vmem:[#allocation3 + $0x1b8] sm:$0xff] %vm784_vm3, %v1368_v3  ;;  %1389 = vrot.lane.b32.xlu1 %v4324_v32, %s3113_s27 }
 0x1a5   : > { %551 = vrot.lane.b32.xlu0 %v3943_v44, %s3112_s21 }
 0x1a6   : > { %v1562_v13 = vpop.permute.xlu1 %1561 }
 0x1a7   : > { %v725_v15 = vpop.permute.xlu0 %724  ;;  %1638 = vst.msk [vmem:[#allocation3 + $0x1d0] sm:$0xff] %vm977_vm4, %v1562_v13 }
 0x1a8   : > { %803 = vst.msk [vmem:[#allocation3 + $0x1b0] sm:$0xff] %vm784_vm3, %v725_v15  ;;  %746 = vrot.lane.b32.xlu1 %v3965_v5, %s3113_s27  ;;  %v1490_v15 = vld [vmem:[#allocation2 + $0x1a1] sm:$0xff] }
 0x1a9   : > { %1387 = vrot.lane.b32.xlu0 %v4330_v0, %s3113_s27 }
 0x1aa   : > { %v920_v60 = vpop.permute.xlu1 %919 }
 0x1ab   : > { %v1560_v44 = vpop.permute.xlu0 %1559  ;;  %997 = vst.msk [vmem:[#allocation3 + $0x1c8] sm:$0xff] %vm977_vm4, %v920_v60 }
 0x1ac   : > { %1637 = vst.msk [vmem:[#allocation3 + $0x1b8] sm:$0xff] %vm977_vm4, %v1560_v44  ;;  %1581 = vrot.lane.b32.xlu1 %v4067_v61, %s3114_s7  ;;  %v1913_v61 = vld [vmem:[%s4763_s2] sm:$0x7] }
 0x1ad   : > { %744 = vrot.lane.b32.xlu0 %v3963_v58, %s3113_s27  ;;  %v4361_v23 = vrot.slane %v1913_v61, %v1916_v55  ;;  %v4373_v27 = vrot.slane %v1913_v61, %v2322_v16  ;;  %v4383_v40 = vrot.slane %v1913_v61, %v2358_v20  ;;  %v1489_v44 = vld [vmem:[#allocation2 + $0x199] sm:$0xff] }
 0x1ae   : > { %v1181_v5 = vpop.permute.xlu1 %1180  ;;  %v1773_v58 = vld [vmem:[#allocation3 + $0x1d0] sm:$0xff] }
 0x1af   : > { %v918_v35 = vpop.permute.xlu0 %917  ;;  %1255 = vst.msk [vmem:[#allocation3 + $0x200] sm:$0xff] %vm591_vm2, %v1181_v5 }
 0x1b0   : > { %996 = vst.msk [vmem:[#allocation3 + $0x1b0] sm:$0xff] %vm977_vm4, %v918_v35  ;;  %939 = vrot.lane.b32.xlu1 %v4274_v46, %s3114_s7 }
 0x1b1   : > { %1579 = vrot.lane.b32.xlu0 %v4065_v54, %s3114_s7 }
 0x1b2   : > { %v538_v51 = vpop.permute.xlu1 %537  ;;  %v1772_v52 = vld [vmem:[#allocation3 + $0x1c8] sm:$0xff] }
 0x1b3   : > { %v1179_v53 = vpop.permute.xlu0 %1178  ;;  %v1770_v18 = vld [vmem:[#allocation3 + $0x1b8] sm:$0xff]  ;;  %613 = vst.msk [vmem:[#allocation3 + $0x1f8] sm:$0xff] %vm591_vm2, %v538_v51 }
 0x1b4   : > { %1254 = vst.msk [vmem:[#allocation3 + $0x1e8] sm:$0xff] %vm591_vm2, %v1179_v53  ;;  %v1839_v57 = vpack.c.bf16 %v1773_v58, %v1770_v18  ;;  %1200 = vrot.lane.b32.xlu1 %v4091_v26, %s3112_s21 }
 0x1b5   : > { %937 = vrot.lane.b32.xlu0 %v4280_v28, %s3114_s7  ;;  %v2793_v54 = vpop.f32.mrb[0].mxu0 }
 0x1b6   : > { %v2794_v63 = vpop.f32.mrb[1].mxu0  ;;  %2070 = vmatprep.mubr.bf16.mxu0 %v1839_v57  ;;  %v1374_v36 = vpop.permute.xlu1 %1373 }
 0x1b7   : > { %v2795_v46 = vadd.f32 %v2794_v63, %v2793_v54  ;;  %v536_v45 = vpop.permute.xlu0 %535  ;;  %v2796_v38 = vpop.f32.mrb[2].mxu0  ;;  %v1769_v17 = vld [vmem:[#allocation3 + $0x1b0] sm:$0xff]  ;;  %1448 = vst.msk [vmem:[#allocation3 + $0x200] sm:$0xff] %vm784_vm3, %v1374_v36 }
 0x1b8   : > { %612 = vst.msk [vmem:[#allocation3 + $0x1e0] sm:$0xff] %vm591_vm2, %v536_v45  ;;  %v2797_v22 = vpop.f32.mrb[3].mxu0  ;;  %v1838_v28 = vpack.c.bf16 %v1772_v52, %v1769_v17  ;;  %557 = vrot.lane.b32.xlu1 %v4005_v7, %s3112_s21  ;;  %v1297_v7 = vld [vmem:[#allocation2 + $0x198] sm:$0xff] }
 0x1b9   : > { %v2798_v37 = vadd.f32 %v2797_v22, %v2796_v38  ;;  %1198 = vrot.lane.b32.xlu0 %v4089_v30, %s3112_s21  ;;  %v2001_v10 = vadd.f32 %v2795_v46, %v4361_v23 }
 0x1ba   : > { %2071 = vmatmul.mubr.bf16.gmra.mrb[36].mxu0 %v1838_v28  ;;  %v731_v30 = vpop.permute.xlu1 %730 }
 0x1bb   : > { %v2162_v26 = vadd.f32 %v4133_v34, %v2001_v10  ;;  %v1372_v11 = vpop.permute.xlu0 %1371  ;;  %v2004_v43 = vadd.f32 %v2798_v37, %v4361_v23  ;;  %806 = vst.msk [vmem:[#allocation3 + $0x1f8] sm:$0xff] %vm784_vm3, %v731_v30 }
 0x1bc   : > { %1447 = vst.msk [vmem:[#allocation3 + $0x1e8] sm:$0xff] %vm784_vm3, %v1372_v11  ;;  %1393 = vrot.lane.b32.xlu1 %v1298_v33, %s3113_s27 }
 0x1bd   : > { %v2288_v41 = vmax.f32 %v2162_v26, 0.0  ;;  %v2165_v50 = vadd.f32 %v4142_v9, %v2004_v43  ;;  %555 = vrot.lane.b32.xlu0 %v4003_v6, %s3112_s21  ;;  %s2776_s21 = sshll.u32 %s4775_s22, 8 }
 0x1be   : > { %v1566_v14 = vpop.permute.xlu1 %1565  ;;  %s4602_s12 = scalar_lea.vmem %s4766_s5, %s2776_s21 }
 0x1bf   : > { %v2324_v34 = vmul.f32 %v4373_v27, %v2288_v41  ;;  %v2289_v12 = vmax.f32 %v2165_v50, 0.0  ;;  %v729_v62 = vpop.permute.xlu0 %728  ;;  %1640 = vst.msk [vmem:[#allocation3 + $0x200] sm:$0xff] %vm977_vm4, %v1566_v14 }
 0x1c0   : > { %805 = vst.msk [vmem:[#allocation3 + $0x1e0] sm:$0xff] %vm784_vm3, %v729_v62  ;;  %750 = vrot.lane.b32.xlu1 %v4025_v29, %s3113_s27 }
 0x1c1   : > { %v2325_v3 = vmul.f32 %v4373_v27, %v2289_v12  ;;  %1391 = vrot.lane.b32.xlu0 %v1297_v7, %s3113_s27  ;;  %v2360_v6 = vadd.f32 %v4383_v40, %v2324_v34 }
 0x1c2   : > { %v924_v13 = vpop.permute.xlu1 %923 }
 0x1c3   : > { %v2361_v9 = vadd.f32 %v4383_v40, %v2325_v3  ;;  %v1564_v31 = vpop.permute.xlu0 %1563  ;;  %999 = vst.msk [vmem:[#allocation3 + $0x1f8] sm:$0xff] %vm977_vm4, %v924_v13 }
 0x1c4   : > { %1639 = vst.msk [vmem:[#allocation3 + $0x1e8] sm:$0xff] %vm977_vm4, %v1564_v31  ;;  %1585 = vrot.lane.b32.xlu1 %v1490_v15, %s3114_s7 }
 0x1c5   : > { %v2392_v59 = vpack.c.bf16 %v2361_v9, %v2360_v6  ;;  %748 = vrot.lane.b32.xlu0 %v4023_v47, %s3113_s27  ;;  %v4404_v47 = vpop.f32.mrb[12].mxu1 }
 0x1c6   : > { %v1185_v29 = vpop.permute.xlu1 %1184  ;;  %v1779_v2 = vld [vmem:[#allocation3 + $0x200] sm:$0xff]  ;;  %v4406_v35 = vpop.f32.mrb[13].mxu1 }
 0x1c7   : > { %v922_v60 = vpop.permute.xlu0 %921  ;;  %2965 = vmatprep.mubr.msk.bf16.mxu1 %vm246_vm0, %v2392_v59  ;;  %1257 = vst.msk [vmem:[#allocation3 + $0x230] sm:$0xff] %vm591_vm2, %v1185_v29  ;;  %v4409_v55 = vpop.f32.mrb[14].mxu1 }
 0x1c8   : > { %998 = vst.msk [vmem:[#allocation3 + $0x1e0] sm:$0xff] %vm977_vm4, %v922_v60  ;;  %943 = vrot.lane.b32.xlu1 %v4324_v32, %s3114_s7  ;;  %v4414_v32 = vpop.f32.mrb[15].mxu1 }
 0x1c9   : > { %1583 = vrot.lane.b32.xlu0 %v1489_v44, %s3114_s7 }
 0x1ca   : > { %v542_v58 = vpop.permute.xlu1 %541  ;;  %v1778_v53 = vld [vmem:[#allocation3 + $0x1f8] sm:$0xff] }
 0x1cb   : > { %v1183_v1 = vpop.permute.xlu0 %1182  ;;  %v1776_v4 = vld [vmem:[#allocation3 + $0x1e8] sm:$0xff]  ;;  %615 = vst.msk [vmem:[#allocation3 + $0x228] sm:$0xff] %vm591_vm2, %v542_v58 }
 0x1cc   : > { %1256 = vst.msk [vmem:[#allocation3 + $0x218] sm:$0xff] %vm591_vm2, %v1183_v1  ;;  %v1842_v5 = vpack.c.bf16 %v1779_v2, %v1776_v4 }
 0x1cd   : > { %941 = vrot.lane.b32.xlu0 %v4330_v0, %s3114_s7  ;;  %v2799_v61 = vpop.f32.mrb[4].mxu0 }
 0x1ce   : > { %v2800_v18 = vpop.f32.mrb[5].mxu0  ;;  %2078 = vmatprep.mubr.bf16.mxu0 %v1842_v5  ;;  %v1378_v45 = vpop.permute.xlu1 %1377 }
 0x1cf   : > { %v2801_v57 = vadd.f32 %v2800_v18, %v2799_v61  ;;  %v540_v51 = vpop.permute.xlu0 %539  ;;  %v2802_v54 = vpop.f32.mrb[6].mxu0  ;;  %v1775_v52 = vld [vmem:[#allocation3 + $0x1e0] sm:$0xff]  ;;  %1450 = vst.msk [vmem:[#allocation3 + $0x230] sm:$0xff] %vm784_vm3, %v1378_v45 }
 0x1d0   : > { %614 = vst.msk [vmem:[#allocation3 + $0x210] sm:$0xff] %vm591_vm2, %v540_v51  ;;  %v2803_v63 = vpop.f32.mrb[7].mxu0  ;;  %v1841_v46 = vpack.c.bf16 %v1778_v53, %v1775_v52 }
 0x1d1   : > { %v2009_v38 = vadd.f32 %v2801_v57, %v4361_v23  ;;  %v2804_v0 = vadd.f32 %v2803_v63, %v2802_v54 }
 0x1d2   : > { %2079 = vmatmul.mubr.bf16.gmra.mrb[40].mxu0 %v1841_v46  ;;  %v735_v28 = vpop.permute.xlu1 %734 }
 0x1d3   : > { %v2170_v17 = vadd.f32 %v4129_v24, %v2009_v38  ;;  %v2012_v16 = vadd.f32 %v2804_v0, %v4361_v23  ;;  %v1376_v22 = vpop.permute.xlu0 %1375  ;;  %808 = vst.msk [vmem:[#allocation3 + $0x228] sm:$0xff] %vm784_vm3, %v735_v28 }
 0x1d4   : > { %1449 = vst.msk [vmem:[#allocation3 + $0x218] sm:$0xff] %vm784_vm3, %v1376_v22 }
 0x1d5   : > { %v2290_v36 = vmax.f32 %v2170_v17, 0.0  ;;  %v2173_v37 = vadd.f32 %v4138_v39, %v2012_v16 }
 0x1d6   : > { %v1570_v11 = vpop.permute.xlu1 %1569 }
 0x1d7   : > { %v2326_v10 = vmul.f32 %v4373_v27, %v2290_v36  ;;  %v2291_v26 = vmax.f32 %v2173_v37, 0.0  ;;  %v733_v20 = vpop.permute.xlu0 %732  ;;  %1642 = vst.msk [vmem:[#allocation3 + $0x230] sm:$0xff] %vm977_vm4, %v1570_v11 }
 0x1d8   : > { %807 = vst.msk [vmem:[#allocation3 + $0x210] sm:$0xff] %vm784_vm3, %v733_v20 }
 0x1d9   : > { %v2327_v24 = vmul.f32 %v4373_v27, %v2291_v26  ;;  %v2362_v43 = vadd.f32 %v4383_v40, %v2326_v10 }
 0x1da   : > { %v928_v39 = vpop.permute.xlu1 %927 }
 0x1db   : > { %v2363_v33 = vadd.f32 %v4383_v40, %v2327_v24  ;;  %v1568_v30 = vpop.permute.xlu0 %1567  ;;  %1001 = vst.msk [vmem:[#allocation3 + $0x228] sm:$0xff] %vm977_vm4, %v928_v39 }
 0x1dc   : > { %1641 = vst.msk [vmem:[#allocation3 + $0x218] sm:$0xff] %vm977_vm4, %v1568_v30 }
 0x1dd   : > { %v2393_v41 = vpack.c.bf16 %v2363_v33, %v2362_v43 }
 0x1de   : > { %v1189_v7 = vpop.permute.xlu1 %1188  ;;  %v1785_v34 = vld [vmem:[#allocation3 + $0x230] sm:$0xff] }
 0x1df   : > { %v926_v50 = vpop.permute.xlu0 %925  ;;  %2966 = vmatmul.mubr.msk.bf16.vlgmr.msra.gmra.mrb[32].mxu1 %vm246_vm0, %v2393_v41  ;;  %1259 = vst.msk [vmem:[#allocation3 + $0x260] sm:$0xff] %vm591_vm2, %v1189_v7 }
 0x1e0   : > { %1000 = vst.msk [vmem:[#allocation3 + $0x210] sm:$0xff] %vm977_vm4, %v926_v50 }
 0x1e1   : > { %v4456_v28 = vpop.f32.mrb[16].mxu1 }
 0x1e2   : > { %v546_v3 = vpop.permute.xlu1 %545  ;;  %v1784_v9 = vld [vmem:[#allocation3 + $0x228] sm:$0xff]  ;;  %v4458_v10 = vpop.f32.mrb[17].mxu1 }
 0x1e3   : > { %v1187_v12 = vpop.permute.xlu0 %1186  ;;  %v1782_v62 = vld [vmem:[#allocation3 + $0x218] sm:$0xff]  ;;  %617 = vst.msk [vmem:[#allocation3 + $0x258] sm:$0xff] %vm591_vm2, %v546_v3  ;;  %v4461_v11 = vpop.f32.mrb[18].mxu1 }
 0x1e4   : > { %1258 = vst.msk [vmem:[#allocation3 + $0x248] sm:$0xff] %vm591_vm2, %v1187_v12  ;;  %v1845_v14 = vpack.c.bf16 %v1785_v34, %v1782_v62  ;;  %v4464_v33 = vpop.f32.mrb[19].mxu1 }
 0x1e5   : > { %v2805_v6 = vpop.f32.mrb[8].mxu0 }
 0x1e6   : > { %v2806_v31 = vpop.f32.mrb[9].mxu0  ;;  %2086 = vmatprep.mubr.bf16.mxu0 %v1845_v14  ;;  %v1382_v2 = vpop.permute.xlu1 %1381 }
 0x1e7   : > { %v2807_v15 = vadd.f32 %v2806_v31, %v2805_v6  ;;  %v544_v13 = vpop.permute.xlu0 %543  ;;  %v2808_v59 = vpop.f32.mrb[10].mxu0  ;;  %v1781_v44 = vld [vmem:[#allocation3 + $0x210] sm:$0xff]  ;;  %1452 = vst.msk [vmem:[#allocation3 + $0x260] sm:$0xff] %vm784_vm3, %v1382_v2 }
 0x1e8   : > { %616 = vst.msk [vmem:[#allocation3 + $0x240] sm:$0xff] %vm591_vm2, %v544_v13  ;;  %v2809_v60 = vpop.f32.mrb[11].mxu0  ;;  %v1844_v29 = vpack.c.bf16 %v1784_v9, %v1781_v44 }
 0x1e9   : > { %v2810_v1 = vadd.f32 %v2809_v60, %v2808_v59  ;;  %v2017_v4 = vadd.f32 %v2807_v15, %v4361_v23 }
 0x1ea   : > { %2087 = vmatmul.mubr.bf16.gmra.mrb[44].mxu0 %v1844_v29  ;;  %v739_v53 = vpop.permute.xlu1 %738 }
 0x1eb   : > { %v2178_v5 = vadd.f32 %v4214_v25, %v2017_v4  ;;  %v1380_v58 = vpop.permute.xlu0 %1379  ;;  %v2020_v61 = vadd.f32 %v2810_v1, %v4361_v23  ;;  %810 = vst.msk [vmem:[#allocation3 + $0x258] sm:$0xff] %vm784_vm3, %v739_v53 }
 0x1ec   : > { %1451 = vst.msk [vmem:[#allocation3 + $0x248] sm:$0xff] %vm784_vm3, %v1380_v58 }
 0x1ed   : > { %v2292_v18 = vmax.f32 %v2178_v5, 0.0  ;;  %v2181_v57 = vadd.f32 %v4219_v21, %v2020_v61 }
 0x1ee   : > { %v1574_v63 = vpop.permute.xlu1 %1573 }
 0x1ef   : > { %v2328_v51 = vmul.f32 %v4373_v27, %v2292_v18  ;;  %v2293_v54 = vmax.f32 %v2181_v57, 0.0  ;;  %v737_v52 = vpop.permute.xlu0 %736  ;;  %1644 = vst.msk [vmem:[#allocation3 + $0x260] sm:$0xff] %vm977_vm4, %v1574_v63 }
 0x1f0   : > { %809 = vst.msk [vmem:[#allocation3 + $0x240] sm:$0xff] %vm784_vm3, %v737_v52 }
 0x1f1   : > { %v2329_v25 = vmul.f32 %v4373_v27, %v2293_v54  ;;  %v2364_v46 = vadd.f32 %v4383_v40, %v2328_v51 }
 0x1f2   : > { %v932_v21 = vpop.permute.xlu1 %931 }
 0x1f3   : > { %v2365_v45 = vadd.f32 %v4383_v40, %v2329_v25  ;;  %v1572_v38 = vpop.permute.xlu0 %1571  ;;  %1003 = vst.msk [vmem:[#allocation3 + $0x258] sm:$0xff] %vm977_vm4, %v932_v21 }
 0x1f4   : > { %1643 = vst.msk [vmem:[#allocation3 + $0x248] sm:$0xff] %vm977_vm4, %v1572_v38 }
 0x1f5   : > { %v2394_v0 = vpack.c.bf16 %v2365_v45, %v2364_v46 }
 0x1f6   : > { %v1193_v16 = vpop.permute.xlu1 %1192  ;;  %v1791_v22 = vld [vmem:[#allocation3 + $0x260] sm:$0xff] }
 0x1f7   : > { %v930_v17 = vpop.permute.xlu0 %929  ;;  %2969 = vmatprep.mubr.msk.bf16.mxu1 %vm246_vm0, %v2394_v0  ;;  %1261 = vst.msk [vmem:[#allocation3 + $0x290] sm:$0xff] %vm591_vm2, %v1193_v16 }
 0x1f8   : > { %1002 = vst.msk [vmem:[#allocation3 + $0x240] sm:$0xff] %vm977_vm4, %v930_v17 }
 0x1fa   : > { %v550_v20 = vpop.permute.xlu1 %549  ;;  %v1790_v43 = vld [vmem:[#allocation3 + $0x258] sm:$0xff] }
 0x1fb   : > { %v1191_v36 = vpop.permute.xlu0 %1190  ;;  %v1788_v37 = vld [vmem:[#allocation3 + $0x248] sm:$0xff]  ;;  %619 = vst.msk [vmem:[#allocation3 + $0x288] sm:$0xff] %vm591_vm2, %v550_v20 }
 0x1fc   : > { %1260 = vst.msk [vmem:[#allocation3 + $0x278] sm:$0xff] %vm591_vm2, %v1191_v36  ;;  %v1848_v26 = vpack.c.bf16 %v1791_v22, %v1788_v37 }
 0x1fd   : > { %v2811_v24 = vpop.f32.mrb[12].mxu0 }
 0x1fe   : > { %v2812_v30 = vpop.f32.mrb[13].mxu0  ;;  %2094 = vmatprep.mubr.bf16.mxu0 %v1848_v26  ;;  %v1386_v62 = vpop.permute.xlu1 %1385 }
 0x1ff   : > { %v2813_v39 = vadd.f32 %v2812_v30, %v2811_v24  ;;  %v548_v41 = vpop.permute.xlu0 %547  ;;  %v2814_v50 = vpop.f32.mrb[14].mxu0  ;;  %v1787_v7 = vld [vmem:[#allocation3 + $0x240] sm:$0xff]  ;;  %1454 = vst.msk [vmem:[#allocation3 + $0x290] sm:$0xff] %vm784_vm3, %v1386_v62 }
 0x200   : > { %618 = vst.msk [vmem:[#allocation3 + $0x270] sm:$0xff] %vm591_vm2, %v548_v41  ;;  %v2815_v34 = vpop.f32.mrb[15].mxu0  ;;  %v1847_v12 = vpack.c.bf16 %v1790_v43, %v1787_v7 }
 0x201   : > { %v2025_v14 = vadd.f32 %v2813_v39, %v4361_v23  ;;  %v2816_v3 = vadd.f32 %v2815_v34, %v2814_v50 }
 0x202   : > { %2095 = vmatmul.mubr.bf16.gmra.mrb[48].mxu0 %v1847_v12  ;;  %v743_v15 = vpop.permute.xlu1 %742 }
 0x203   : > { %v2186_v6 = vadd.f32 %v4210_v56, %v2025_v14  ;;  %v2028_v9 = vadd.f32 %v2816_v3, %v4361_v23  ;;  %v1384_v31 = vpop.permute.xlu0 %1383  ;;  %812 = vst.msk [vmem:[#allocation3 + $0x288] sm:$0xff] %vm784_vm3, %v743_v15 }
 0x204   : > { %1453 = vst.msk [vmem:[#allocation3 + $0x278] sm:$0xff] %vm784_vm3, %v1384_v31 }
 0x205   : > { %v2294_v13 = vmax.f32 %v2186_v6, 0.0  ;;  %v2189_v59 = vadd.f32 %v4216_v48, %v2028_v9  ;;  %v4503_v6 = vpop.f32.mrb[20].mxu1 }
 0x206   : > { %v1578_v2 = vpop.permute.xlu1 %1577  ;;  %v4506_v31 = vpop.f32.mrb[21].mxu1 }
 0x207   : > { %v2330_v44 = vmul.f32 %v4373_v27, %v2294_v13  ;;  %v2295_v60 = vmax.f32 %v2189_v59, 0.0  ;;  %v741_v29 = vpop.permute.xlu0 %740  ;;  %1646 = vst.msk [vmem:[#allocation3 + $0x290] sm:$0xff] %vm977_vm4, %v1578_v2  ;;  %v4509_v13 = vpop.f32.mrb[22].mxu1 }
 0x208   : > { %811 = vst.msk [vmem:[#allocation3 + $0x270] sm:$0xff] %vm784_vm3, %v741_v29 }
 0x209   : > { %v2331_v56 = vmul.f32 %v4373_v27, %v2295_v60  ;;  %v2366_v1 = vadd.f32 %v4383_v40, %v2330_v44  ;;  %v4512_v44 = vpop.f32.mrb[23].mxu1 }
 0x20a   : > { %v936_v48 = vpop.permute.xlu1 %935 }
 0x20b   : > { %v2367_v4 = vadd.f32 %v4383_v40, %v2331_v56  ;;  %v1576_v5 = vpop.permute.xlu0 %1575  ;;  %1005 = vst.msk [vmem:[#allocation3 + $0x288] sm:$0xff] %vm977_vm4, %v936_v48 }
 0x20c   : > { %1645 = vst.msk [vmem:[#allocation3 + $0x278] sm:$0xff] %vm977_vm4, %v1576_v5  ;;  %v4514_v60 = vpop.f32.mrb[24].mxu1 }
 0x20d   : > { %v2395_v58 = vpack.c.bf16 %v2367_v4, %v2366_v1  ;;  %v4516_v56 = vpop.f32.mrb[25].mxu1 }
 0x20e   : > { %v1197_v53 = vpop.permute.xlu1 %1196  ;;  %v1797_v18 = vld [vmem:[#allocation3 + $0x290] sm:$0xff]  ;;  %v4519_v5 = vpop.f32.mrb[26].mxu1 }
 0x20f   : > { %v934_v61 = vpop.permute.xlu0 %933  ;;  %2970 = vmatmul.mubr.msk.bf16.gmra.mrb[36].mxu1 %vm246_vm0, %v2395_v58  ;;  %1263 = vst.msk [vmem:[#allocation3 + $0x2c0] sm:$0xff] %vm591_vm2, %v1197_v53 }
 0x210   : > { %1004 = vst.msk [vmem:[#allocation3 + $0x270] sm:$0xff] %vm977_vm4, %v934_v61  ;;  %v4522_v61 = vpop.f32.mrb[27].mxu1 }
 0x212   : > { %v554_v52 = vpop.permute.xlu1 %553  ;;  %v1796_v25 = vld [vmem:[#allocation3 + $0x288] sm:$0xff] }
 0x213   : > { %v1195_v57 = vpop.permute.xlu0 %1194  ;;  %v1794_v51 = vld [vmem:[#allocation3 + $0x278] sm:$0xff]  ;;  %621 = vst.msk [vmem:[#allocation3 + $0x2b8] sm:$0xff] %vm591_vm2, %v554_v52 }
 0x214   : > { %1262 = vst.msk [vmem:[#allocation3 + $0x2a8] sm:$0xff] %vm591_vm2, %v1195_v57  ;;  %v1851_v54 = vpack.c.bf16 %v1797_v18, %v1794_v51  ;;  %v4524_v18 = vpop.f32.mrb[28].mxu1 }
 0x215   : > { %v2817_v63 = vpop.f32.mrb[16].mxu0 }
 0x216   : > { %v2818_v46 = vpop.f32.mrb[17].mxu0  ;;  %2102 = vmatprep.mubr.bf16.mxu0 %v1851_v54  ;;  %v1390_v22 = vpop.permute.xlu1 %1389 }
 0x217   : > { %v2819_v45 = vadd.f32 %v2818_v46, %v2817_v63  ;;  %v552_v38 = vpop.permute.xlu0 %551  ;;  %v2820_v21 = vpop.f32.mrb[18].mxu0  ;;  %v1793_v0 = vld [vmem:[#allocation3 + $0x270] sm:$0xff]  ;;  %1456 = vst.msk [vmem:[#allocation3 + $0x2c0] sm:$0xff] %vm784_vm3, %v1390_v22 }
 0x218   : > { %620 = vst.msk [vmem:[#allocation3 + $0x2a0] sm:$0xff] %vm591_vm2, %v552_v38  ;;  %v2821_v17 = vpop.f32.mrb[19].mxu0  ;;  %v1850_v16 = vpack.c.bf16 %v1796_v25, %v1793_v0 }
 0x219   : > { %v2822_v36 = vadd.f32 %v2821_v17, %v2820_v21  ;;  %v2033_v37 = vadd.f32 %v2819_v45, %v4361_v23  ;;  %v4529_v21 = vpop.f32.mrb[29].mxu1 }
 0x21a   : > { %2103 = vmatmul.mubr.bf16.gmra.mrb[52].mxu0 %v1850_v16  ;;  %v747_v43 = vpop.permute.xlu1 %746  ;;  %v4531_v0 = vpop.f32.mrb[30].mxu1 }
 0x21b   : > { %v2194_v26 = vadd.f32 %v4306_v19, %v2033_v37  ;;  %v1388_v20 = vpop.permute.xlu0 %1387  ;;  %v2036_v24 = vadd.f32 %v2822_v36, %v4361_v23  ;;  %814 = vst.msk [vmem:[#allocation3 + $0x2b8] sm:$0xff] %vm784_vm3, %v747_v43  ;;  %v4535_v36 = vpop.f32.mrb[31].mxu1 }
 0x21c   : > { %1455 = vst.msk [vmem:[#allocation3 + $0x2a8] sm:$0xff] %vm784_vm3, %v1388_v20 }
 0x21d   : > { %v2296_v30 = vmax.f32 %v2194_v26, 0.0  ;;  %v2197_v39 = vadd.f32 %v4311_v49, %v2036_v24 }
 0x21e   : > { %v1582_v34 = vpop.permute.xlu1 %1581 }
 0x21f   : > { %v2332_v41 = vmul.f32 %v4373_v27, %v2296_v30  ;;  %v2297_v50 = vmax.f32 %v2197_v39, 0.0  ;;  %v745_v7 = vpop.permute.xlu0 %744  ;;  %1648 = vst.msk [vmem:[#allocation3 + $0x2c0] sm:$0xff] %vm977_vm4, %v1582_v34 }
 0x220   : > { %813 = vst.msk [vmem:[#allocation3 + $0x2a0] sm:$0xff] %vm784_vm3, %v745_v7 }
 0x221   : > { %v2333_v19 = vmul.f32 %v4373_v27, %v2297_v50  ;;  %v2368_v12 = vadd.f32 %v4383_v40, %v2332_v41 }
 0x222   : > { %v940_v49 = vpop.permute.xlu1 %939 }
 0x223   : > { %v2369_v62 = vadd.f32 %v4383_v40, %v2333_v19  ;;  %v1580_v14 = vpop.permute.xlu0 %1579  ;;  %1007 = vst.msk [vmem:[#allocation3 + $0x2b8] sm:$0xff] %vm977_vm4, %v940_v49 }
 0x224   : > { %1647 = vst.msk [vmem:[#allocation3 + $0x2a8] sm:$0xff] %vm977_vm4, %v1580_v14 }
 0x225   : > { %v2396_v3 = vpack.c.bf16 %v2369_v62, %v2368_v12 }
 0x226   : > { %v1201_v15 = vpop.permute.xlu1 %1200  ;;  %v1803_v59 = vld [vmem:[#allocation3 + $0x2c0] sm:$0xff] }
 0x227   : > { %v938_v9 = vpop.permute.xlu0 %937  ;;  %2973 = vmatprep.mubr.msk.bf16.mxu1 %vm246_vm0, %v2396_v3  ;;  %1265 = vst.msk [vmem:[#allocation3 + $0x2f0] sm:$0xff] %vm591_vm2, %v1201_v15 }
 0x228   : > { %1006 = vst.msk [vmem:[#allocation3 + $0x2a0] sm:$0xff] %vm977_vm4, %v938_v9 }
 0x22a   : > { %v558_v4 = vpop.permute.xlu1 %557  ;;  %v1802_v58 = vld [vmem:[#allocation3 + $0x2b8] sm:$0xff] }
 0x22b   : > { %v1199_v29 = vpop.permute.xlu0 %1198  ;;  %v1800_v2 = vld [vmem:[#allocation3 + $0x2a8] sm:$0xff]  ;;  %623 = vst.msk [vmem:[#allocation3 + $0x2e8] sm:$0xff] %vm591_vm2, %v558_v4 }
 0x22c   : > { %1264 = vst.msk [vmem:[#allocation3 + $0x2d8] sm:$0xff] %vm591_vm2, %v1199_v29  ;;  %v1854_v1 = vpack.c.bf16 %v1803_v59, %v1800_v2 }
 0x22d   : > { %v2823_v48 = vpop.f32.mrb[20].mxu0 }
 0x22e   : > { %v2824_v53 = vpop.f32.mrb[21].mxu0  ;;  %2110 = vmatprep.mubr.bf16.mxu0 %v1854_v1  ;;  %v1394_v46 = vpop.permute.xlu1 %1393 }
 0x22f   : > { %v2825_v57 = vadd.f32 %v2824_v53, %v2823_v48  ;;  %v556_v51 = vpop.permute.xlu0 %555  ;;  %v2826_v54 = vpop.f32.mrb[22].mxu0  ;;  %v1799_v52 = vld [vmem:[#allocation3 + $0x2a0] sm:$0xff]  ;;  %1458 = vst.msk [vmem:[#allocation3 + $0x2f0] sm:$0xff] %vm784_vm3, %v1394_v46 }
 0x230   : > { %622 = vst.msk [vmem:[#allocation3 + $0x2d0] sm:$0xff] %vm591_vm2, %v556_v51  ;;  %v2827_v63 = vpop.f32.mrb[23].mxu0  ;;  %v1853_v25 = vpack.c.bf16 %v1802_v58, %v1799_v52 }
 0x231   : > { %v2041_v45 = vadd.f32 %v2825_v57, %v4361_v23  ;;  %v2828_v38 = vadd.f32 %v2827_v63, %v2826_v54 }
 0x232   : > { %2111 = vmatmul.mubr.bf16.gmra.mrb[56].mxu0 %v1853_v25  ;;  %v751_v37 = vpop.permute.xlu1 %750 }
 0x233   : > { %v2202_v17 = vadd.f32 %v4302_v8, %v2041_v45  ;;  %v2044_v16 = vadd.f32 %v2828_v38, %v4361_v23  ;;  %v1392_v22 = vpop.permute.xlu0 %1391  ;;  %816 = vst.msk [vmem:[#allocation3 + $0x2e8] sm:$0xff] %vm784_vm3, %v751_v37 }
 0x234   : > { %1457 = vst.msk [vmem:[#allocation3 + $0x2d8] sm:$0xff] %vm784_vm3, %v1392_v22 }
 0x235   : > { %v2298_v26 = vmax.f32 %v2202_v17, 0.0  ;;  %v2205_v20 = vadd.f32 %v4308_v42, %v2044_v16 }
 0x236   : > { %v1586_v8 = vpop.permute.xlu1 %1585 }
 0x237   : > { %v2334_v24 = vmul.f32 %v4373_v27, %v2298_v26  ;;  %v2299_v43 = vmax.f32 %v2205_v20, 0.0  ;;  %v749_v30 = vpop.permute.xlu0 %748  ;;  %1650 = vst.msk [vmem:[#allocation3 + $0x2f0] sm:$0xff] %vm977_vm4, %v1586_v8 }
 0x238   : > { %815 = vst.msk [vmem:[#allocation3 + $0x2d0] sm:$0xff] %vm784_vm3, %v749_v30 }
 0x239   : > { %v2335_v39 = vmul.f32 %v4373_v27, %v2299_v43  ;;  %v2370_v41 = vadd.f32 %v4383_v40, %v2334_v24 }
 0x23a   : > { %v944_v42 = vpop.permute.xlu1 %943 }
 0x23b   : > { %v2371_v50 = vadd.f32 %v4383_v40, %v2335_v39  ;;  %v1584_v7 = vpop.permute.xlu0 %1583  ;;  %1009 = vst.msk [vmem:[#allocation3 + $0x2e8] sm:$0xff] %vm977_vm4, %v944_v42 }
 0x23c   : > { %1649 = vst.msk [vmem:[#allocation3 + $0x2d8] sm:$0xff] %vm977_vm4, %v1584_v7 }
 0x23d   : > { %v2397_v34 = vpack.c.bf16 %v2371_v50, %v2370_v41 }
 0x23e   : > { %v1809_v12 = vld [vmem:[#allocation3 + $0x2f0] sm:$0xff] }
 0x23f   : > { %v942_v19 = vpop.permute.xlu0 %941  ;;  %2974 = vmatmul.mubr.msk.bf16.gmra.mrb[40].mxu1 %vm246_vm0, %v2397_v34 }
 0x240   : > { %1008 = vst.msk [vmem:[#allocation3 + $0x2d0] sm:$0xff] %vm977_vm4, %v942_v19 }
 0x242   : > { %v1808_v3 = vld [vmem:[#allocation3 + $0x2e8] sm:$0xff] }
 0x243   : > { %v1806_v62 = vld [vmem:[#allocation3 + $0x2d8] sm:$0xff] }
 0x244   : > { %v1857_v14 = vpack.c.bf16 %v1809_v12, %v1806_v62 }
 0x245   : > { %v2829_v49 = vpop.f32.mrb[24].mxu0 }
 0x246   : > { %v2830_v9 = vpop.f32.mrb[25].mxu0  ;;  %2118 = vmatprep.mubr.bf16.mxu0 %v1857_v14 }
 0x247   : > { %v2831_v15 = vadd.f32 %v2830_v9, %v2829_v49  ;;  %v2832_v59 = vpop.f32.mrb[26].mxu0  ;;  %v1805_v29 = vld [vmem:[#allocation3 + $0x2d0] sm:$0xff] }
 0x248   : > { %v2833_v2 = vpop.f32.mrb[27].mxu0  ;;  %v1856_v1 = vpack.c.bf16 %v1808_v3, %v1805_v29 }
 0x249   : > { %v2834_v4 = vadd.f32 %v2833_v2, %v2832_v59  ;;  %v2049_v48 = vadd.f32 %v2831_v15, %v4361_v23 }
 0x24a   : > { %2119 = vmatmul.mubr.bf16.gmra.mrb[60].mxu0 %v1856_v1 }
 0x24b   : > { %v2210_v58 = vadd.f32 %v4406_v35, %v2049_v48  ;;  %v2052_v53 = vadd.f32 %v2834_v4, %v4361_v23 }
 0x24d   : > { %v2300_v57 = vmax.f32 %v2210_v58, 0.0  ;;  %v2213_v51 = vadd.f32 %v4414_v32, %v2052_v53 }
 0x24f   : > { %v2336_v54 = vmul.f32 %v4373_v27, %v2300_v57  ;;  %v2301_v52 = vmax.f32 %v2213_v51, 0.0 }
 0x251   : > { %v2337_v63 = vmul.f32 %v4373_v27, %v2301_v52  ;;  %v2372_v25 = vadd.f32 %v4383_v40, %v2336_v54 }
 0x253   : > { %v2373_v46 = vadd.f32 %v4383_v40, %v2337_v63 }
 0x255   : > { %v2398_v45 = vpack.c.bf16 %v2373_v46, %v2372_v25 }
 0x257   : > { %2977 = vmatprep.mubr.msk.bf16.mxu1 %vm246_vm0, %v2398_v45 }
 0x25d   : > { %v2835_v38 = vpop.f32.mrb[28].mxu0 }
 0x25e   : > { %v2836_v17 = vpop.f32.mrb[29].mxu0 }
 0x25f   : > { %v2837_v35 = vadd.f32 %v2836_v17, %v2835_v38  ;;  %v2838_v16 = vpop.f32.mrb[30].mxu0 }
 0x260   : > { %v2839_v22 = vpop.f32.mrb[31].mxu0 }
 0x261   : > { %v2057_v37 = vadd.f32 %v2837_v35, %v4361_v23  ;;  %v2840_v32 = vadd.f32 %v2839_v22, %v2838_v16 }
 0x263   : > { %v2218_v26 = vadd.f32 %v4404_v47, %v2057_v37  ;;  %v2060_v20 = vadd.f32 %v2840_v32, %v4361_v23 }
 0x265   : > { %v2302_v24 = vmax.f32 %v2218_v26, 0.0  ;;  %v2221_v43 = vadd.f32 %v4409_v55, %v2060_v20 }
 0x267   : > { %v2338_v30 = vmul.f32 %v4373_v27, %v2302_v24  ;;  %v2303_v8 = vmax.f32 %v2221_v43, 0.0 }
 0x269   : > { %v2339_v39 = vmul.f32 %v4373_v27, %v2303_v8  ;;  %v2374_v41 = vadd.f32 %v4383_v40, %v2338_v30 }
 0x26b   : > { %v2375_v50 = vadd.f32 %v4383_v40, %v2339_v39 }
 0x26d   : > { %v2399_v7 = vpack.c.bf16 %v2375_v50, %v2374_v41  ;;  %v4596_v50 = vld [vmem:[%s4765_s4] ss:$0 sm:$0xff] }
 0x26f   : > { %2978 = vmatmul.mubr.msk.bf16.gmra.mrb[44].mxu1 %vm246_vm0, %v2399_v7 }
 0x275   : > { %v2841_v42 = vpop.f32.mrb[32].mxu0 }
 0x276   : > { %v2842_v34 = vpop.f32.mrb[33].mxu0 }
 0x277   : > { %v2843_v47 = vadd.f32 %v2842_v34, %v2841_v42  ;;  %v2844_v19 = vpop.f32.mrb[34].mxu0 }
 0x278   : > { %v2845_v12 = vpop.f32.mrb[35].mxu0 }
 0x279   : > { %v2846_v62 = vadd.f32 %v2845_v12, %v2844_v19  ;;  %v2065_v55 = vadd.f32 %v2843_v47, %v4361_v23 }
 0x27b   : > { %v2226_v14 = vadd.f32 %v4458_v10, %v2065_v55  ;;  %v2068_v49 = vadd.f32 %v2846_v62, %v4361_v23 }
 0x27d   : > { %v2304_v3 = vmax.f32 %v2226_v14, 0.0  ;;  %v2229_v9 = vadd.f32 %v4464_v33, %v2068_v49 }
 0x27f   : > { %v2340_v15 = vmul.f32 %v4373_v27, %v2304_v3  ;;  %v2305_v59 = vmax.f32 %v2229_v9, 0.0 }
 0x281   : > { %v2341_v29 = vmul.f32 %v4373_v27, %v2305_v59  ;;  %v2376_v2 = vadd.f32 %v4383_v40, %v2340_v15 }
 0x283   : > { %v2377_v1 = vadd.f32 %v4383_v40, %v2341_v29 }
 0x285   : > { %v2400_v4 = vpack.c.bf16 %v2377_v1, %v2376_v2 }
 0x287   : > { %2981 = vmatprep.mubr.msk.bf16.mxu1 %vm246_vm0, %v2400_v4 }
 0x28d   : > { %v2847_v48 = vpop.f32.mrb[36].mxu0 }
 0x28e   : > { %v2848_v58 = vpop.f32.mrb[37].mxu0 }
 0x28f   : > { %v2849_v10 = vadd.f32 %v2848_v58, %v2847_v48  ;;  %v2850_v53 = vpop.f32.mrb[38].mxu0 }
 0x290   : > { %v2851_v57 = vpop.f32.mrb[39].mxu0 }
 0x291   : > { %v2073_v51 = vadd.f32 %v2849_v10, %v4361_v23  ;;  %v2852_v33 = vadd.f32 %v2851_v57, %v2850_v53 }
 0x293   : > { %v2234_v54 = vadd.f32 %v4456_v28, %v2073_v51  ;;  %v2076_v52 = vadd.f32 %v2852_v33, %v4361_v23 }
 0x295   : > { %v2306_v63 = vmax.f32 %v2234_v54, 0.0  ;;  %v2237_v25 = vadd.f32 %v4461_v11, %v2076_v52 }
 0x297   : > { %v2342_v46 = vmul.f32 %v4373_v27, %v2306_v63  ;;  %v2307_v45 = vmax.f32 %v2237_v25, 0.0 }
 0x299   : > { %v2343_v38 = vmul.f32 %v4373_v27, %v2307_v45  ;;  %v2378_v17 = vadd.f32 %v4383_v40, %v2342_v46 }
 0x29b   : > { %v2379_v35 = vadd.f32 %v4383_v40, %v2343_v38 }
 0x29d   : > { %v2401_v16 = vpack.c.bf16 %v2379_v35, %v2378_v17 }
 0x29f   : > { %2982 = vmatmul.mubr.msk.bf16.gmra.mrb[48].mxu1 %vm246_vm0, %v2401_v16 }
 0x2a5   : > { %v2853_v22 = vpop.f32.mrb[40].mxu0 }
 0x2a6   : > { %v2854_v28 = vpop.f32.mrb[41].mxu0 }
 0x2a7   : > { %v2855_v37 = vadd.f32 %v2854_v28, %v2853_v22  ;;  %v2856_v32 = vpop.f32.mrb[42].mxu0 }
 0x2a8   : > { %v2857_v26 = vpop.f32.mrb[43].mxu0 }
 0x2a9   : > { %v2081_v11 = vadd.f32 %v2855_v37, %v4361_v23  ;;  %v2858_v20 = vadd.f32 %v2857_v26, %v2856_v32 }
 0x2ab   : > { %v2242_v24 = vadd.f32 %v4506_v31, %v2081_v11  ;;  %v2084_v43 = vadd.f32 %v2858_v20, %v4361_v23 }
 0x2ad   : > { %v2308_v30 = vmax.f32 %v2242_v24, 0.0  ;;  %v2245_v8 = vadd.f32 %v4512_v44, %v2084_v43 }
 0x2af   : > { %v2344_v39 = vmul.f32 %v4373_v27, %v2308_v30  ;;  %v2309_v41 = vmax.f32 %v2245_v8, 0.0 }
 0x2b1   : > { %v2345_v7 = vmul.f32 %v4373_v27, %v2309_v41  ;;  %v2380_v44 = vadd.f32 %v4383_v40, %v2344_v39 }
 0x2b2   : > { %v2967_v31 = vpop.f32.mrb[32].mxu1 }
 0x2b3   : > { %v2381_v42 = vadd.f32 %v4383_v40, %v2345_v7  ;;  %v2512_v34 = vadd.f32 %v2967_v31, %v4596_v50  ;;  %v2503_v47 = vpop.f32.mrb[33].mxu1 }
 0x2b4   : > { %v2504_v19 = vadd.f32 %v4596_v50, %v2503_v47  ;;  %v2968_v12 = vpop.f32.mrb[34].mxu1 }
 0x2b5   : > { %v2402_v62 = vpack.c.bf16 %v2381_v42, %v2380_v44  ;;  %2633 = vst.msk [vmem:[%s4602_s12 + $0x10] sm:$0xff] %vm2630_vm5, %v2512_v34  ;;  %v2515_v55 = vadd.f32 %v2968_v12, %v4596_v50  ;;  %v2506_v14 = vpop.f32.mrb[35].mxu1 }
 0x2b6   : > { %2631 = vst.msk [vmem:[%s4602_s12] sm:$0xff] %vm2630_vm5, %v2504_v19  ;;  %v2507_v49 = vadd.f32 %v4596_v50, %v2506_v14 }
 0x2b7   : > { %2634 = vst.msk [vmem:[%s4602_s12 + $0x18] sm:$0xff] %vm2630_vm5, %v2515_v55  ;;  %2985 = vmatprep.mubr.msk.bf16.mxu1 %vm246_vm0, %v2402_v62 }
 0x2b8   : > { %2632 = vst.msk [vmem:[%s4602_s12 + $0x8] sm:$0xff] %vm2630_vm5, %v2507_v49 }
 0x2bd   : > { %v2859_v3 = vpop.f32.mrb[44].mxu0 }
 0x2be   : > { %v2860_v9 = vpop.f32.mrb[45].mxu0 }
 0x2bf   : > { %v2861_v15 = vadd.f32 %v2860_v9, %v2859_v3  ;;  %v2862_v59 = vpop.f32.mrb[46].mxu0 }
 0x2c0   : > { %v2863_v29 = vpop.f32.mrb[47].mxu0 }
 0x2c1   : > { %v2089_v2 = vadd.f32 %v2861_v15, %v4361_v23  ;;  %v2864_v1 = vadd.f32 %v2863_v29, %v2862_v59 }
 0x2c3   : > { %v2250_v4 = vadd.f32 %v4503_v6, %v2089_v2  ;;  %v2092_v48 = vadd.f32 %v2864_v1, %v4361_v23 }
 0x2c5   : > { %v2310_v58 = vmax.f32 %v2250_v4, 0.0  ;;  %v2253_v10 = vadd.f32 %v4509_v13, %v2092_v48 }
 0x2c7   : > { %v2346_v53 = vmul.f32 %v4373_v27, %v2310_v58  ;;  %v2311_v57 = vmax.f32 %v2253_v10, 0.0 }
 0x2c9   : > { %v2347_v51 = vmul.f32 %v4373_v27, %v2311_v57  ;;  %v2382_v33 = vadd.f32 %v4383_v40, %v2346_v53 }
 0x2cb   : > { %v2383_v54 = vadd.f32 %v4383_v40, %v2347_v51 }
 0x2cd   : > { %v2403_v52 = vpack.c.bf16 %v2383_v54, %v2382_v33 }
 0x2cf   : > { %2986 = vmatmul.mubr.msk.bf16.gmra.mrb[52].mxu1 %vm246_vm0, %v2403_v52 }
 0x2d5   : > { %v2865_v63 = vpop.f32.mrb[48].mxu0 }
 0x2d6   : > { %v2866_v25 = vpop.f32.mrb[49].mxu0 }
 0x2d7   : > { %v2867_v6 = vadd.f32 %v2866_v25, %v2865_v63  ;;  %v2868_v46 = vpop.f32.mrb[50].mxu0 }
 0x2d8   : > { %v2869_v45 = vpop.f32.mrb[51].mxu0 }
 0x2d9   : > { %v2097_v38 = vadd.f32 %v2867_v6, %v4361_v23  ;;  %v2870_v13 = vadd.f32 %v2869_v45, %v2868_v46 }
 0x2db   : > { %v2258_v17 = vadd.f32 %v4516_v56, %v2097_v38  ;;  %v2100_v35 = vadd.f32 %v2870_v13, %v4361_v23 }
 0x2dd   : > { %v2312_v16 = vmax.f32 %v2258_v17, 0.0  ;;  %v2261_v22 = vadd.f32 %v4522_v61, %v2100_v35 }
 0x2df   : > { %v2348_v28 = vmul.f32 %v4373_v27, %v2312_v16  ;;  %v2313_v37 = vmax.f32 %v2261_v22, 0.0 }
 0x2e1   : > { %v2349_v32 = vmul.f32 %v4373_v27, %v2313_v37  ;;  %v2384_v11 = vadd.f32 %v4383_v40, %v2348_v28 }
 0x2e2   : > { %v2971_v26 = vpop.f32.mrb[36].mxu1 }
 0x2e3   : > { %v2385_v20 = vadd.f32 %v4383_v40, %v2349_v32  ;;  %v2528_v56 = vadd.f32 %v2971_v26, %v4596_v50  ;;  %v2519_v24 = vpop.f32.mrb[37].mxu1 }
 0x2e4   : > { %v2520_v43 = vadd.f32 %v4596_v50, %v2519_v24  ;;  %v2972_v30 = vpop.f32.mrb[38].mxu1 }
 0x2e5   : > { %2637 = vst.msk [vmem:[%s4602_s12 + $0x30] sm:$0xff] %vm2630_vm5, %v2528_v56  ;;  %v2531_v61 = vadd.f32 %v2972_v30, %v4596_v50  ;;  %v2522_v8 = vpop.f32.mrb[39].mxu1  ;;  %v2404_v39 = vpack.c.bf16 %v2385_v20, %v2384_v11 }
 0x2e6   : > { %2635 = vst.msk [vmem:[%s4602_s12 + $0x20] sm:$0xff] %vm2630_vm5, %v2520_v43  ;;  %v2523_v41 = vadd.f32 %v4596_v50, %v2522_v8 }
 0x2e7   : > { %2638 = vst.msk [vmem:[%s4602_s12 + $0x38] sm:$0xff] %vm2630_vm5, %v2531_v61  ;;  %2989 = vmatprep.mubr.msk.bf16.mxu1 %vm246_vm0, %v2404_v39 }
 0x2e8   : > { %2636 = vst.msk [vmem:[%s4602_s12 + $0x28] sm:$0xff] %vm2630_vm5, %v2523_v41 }
 0x2ed   : > { %v2871_v7 = vpop.f32.mrb[52].mxu0 }
 0x2ee   : > { %v2872_v31 = vpop.f32.mrb[53].mxu0 }
 0x2ef   : > { %v2873_v44 = vadd.f32 %v2872_v31, %v2871_v7  ;;  %v2874_v42 = vpop.f32.mrb[54].mxu0 }
 0x2f0   : > { %v2875_v34 = vpop.f32.mrb[55].mxu0 }
 0x2f1   : > { %v2105_v47 = vadd.f32 %v2873_v44, %v4361_v23  ;;  %v2876_v19 = vadd.f32 %v2875_v34, %v2874_v42 }
 0x2f3   : > { %v2266_v12 = vadd.f32 %v4514_v60, %v2105_v47  ;;  %v2108_v62 = vadd.f32 %v2876_v19, %v4361_v23 }
 0x2f5   : > { %v2314_v55 = vmax.f32 %v2266_v12, 0.0  ;;  %v2269_v14 = vadd.f32 %v4519_v5, %v2108_v62 }
 0x2f7   : > { %v2350_v49 = vmul.f32 %v4373_v27, %v2314_v55  ;;  %v2315_v3 = vmax.f32 %v2269_v14, 0.0 }
 0x2f9   : > { %v2351_v9 = vmul.f32 %v4373_v27, %v2315_v3  ;;  %v2386_v15 = vadd.f32 %v4383_v40, %v2350_v49 }
 0x2fb   : > { %v2387_v59 = vadd.f32 %v4383_v40, %v2351_v9 }
 0x2fd   : > { %v2405_v29 = vpack.c.bf16 %v2387_v59, %v2386_v15 }
 0x2ff   : > { %2990 = vmatmul.mubr.msk.bf16.gmra.mrb[56].mxu1 %vm246_vm0, %v2405_v29 }
 0x305   : > { %v2877_v2 = vpop.f32.mrb[56].mxu0 }
 0x306   : > { %v2878_v1 = vpop.f32.mrb[57].mxu0 }
 0x307   : > { %v2879_v60 = vadd.f32 %v2878_v1, %v2877_v2  ;;  %v2880_v4 = vpop.f32.mrb[58].mxu0 }
 0x308   : > { %v2881_v48 = vpop.f32.mrb[59].mxu0 }
 0x309   : > { %v2113_v58 = vadd.f32 %v2879_v60, %v4361_v23  ;;  %v2882_v5 = vadd.f32 %v2881_v48, %v2880_v4 }
 0x30b   : > { %v2274_v10 = vadd.f32 %v4529_v21, %v2113_v58  ;;  %v2116_v53 = vadd.f32 %v2882_v5, %v4361_v23 }
 0x30d   : > { %v2316_v57 = vmax.f32 %v2274_v10, 0.0  ;;  %v2277_v51 = vadd.f32 %v4535_v36, %v2116_v53 }
 0x30f   : > { %v2352_v33 = vmul.f32 %v4373_v27, %v2316_v57  ;;  %v2317_v54 = vmax.f32 %v2277_v51, 0.0 }
 0x311   : > { %v2353_v52 = vmul.f32 %v4373_v27, %v2317_v54  ;;  %v2388_v25 = vadd.f32 %v4383_v40, %v2352_v33 }
 0x312   : > { %v2975_v63 = vpop.f32.mrb[40].mxu1 }
 0x313   : > { %v2389_v6 = vadd.f32 %v4383_v40, %v2353_v52  ;;  %v2544_v21 = vadd.f32 %v2975_v63, %v4596_v50  ;;  %v2535_v46 = vpop.f32.mrb[41].mxu1 }
 0x314   : > { %v2536_v45 = vadd.f32 %v4596_v50, %v2535_v46  ;;  %v2976_v38 = vpop.f32.mrb[42].mxu1 }
 0x315   : > { %2641 = vst.msk [vmem:[%s4602_s12 + $0x50] sm:$0xff] %vm2630_vm5, %v2544_v21  ;;  %v2547_v36 = vadd.f32 %v2976_v38, %v4596_v50  ;;  %v2538_v13 = vpop.f32.mrb[43].mxu1  ;;  %v2406_v17 = vpack.c.bf16 %v2389_v6, %v2388_v25 }
 0x316   : > { %2639 = vst.msk [vmem:[%s4602_s12 + $0x40] sm:$0xff] %vm2630_vm5, %v2536_v45  ;;  %v2539_v35 = vadd.f32 %v4596_v50, %v2538_v13 }
 0x317   : > { %2642 = vst.msk [vmem:[%s4602_s12 + $0x58] sm:$0xff] %vm2630_vm5, %v2547_v36  ;;  %2993 = vmatprep.mubr.msk.bf16.mxu1 %vm246_vm0, %v2406_v17 }
 0x318   : > { %2640 = vst.msk [vmem:[%s4602_s12 + $0x48] sm:$0xff] %vm2630_vm5, %v2539_v35 }
 0x31d   : > { %v2883_v16 = vpop.f32.mrb[60].mxu0 }
 0x31e   : > { %v2884_v22 = vpop.f32.mrb[61].mxu0 }
 0x31f   : > { %v2885_v28 = vadd.f32 %v2884_v22, %v2883_v16  ;;  %v2886_v37 = vpop.f32.mrb[62].mxu0 }
 0x320   : > { %v2887_v32 = vpop.f32.mrb[63].mxu0 }
 0x321   : > { %v2121_v26 = vadd.f32 %v2885_v28, %v4361_v23  ;;  %v2888_v11 = vadd.f32 %v2887_v32, %v2886_v37 }
 0x323   : > { %v2282_v20 = vadd.f32 %v4524_v18, %v2121_v26  ;;  %v2124_v56 = vadd.f32 %v2888_v11, %v4361_v23 }
 0x325   : > { %v2318_v24 = vmax.f32 %v2282_v20, 0.0  ;;  %v2285_v43 = vadd.f32 %v4531_v0, %v2124_v56 }
 0x327   : > { %v2354_v30 = vmul.f32 %v4373_v27, %v2318_v24  ;;  %v2319_v61 = vmax.f32 %v2285_v43, 0.0 }
 0x329   : > { %v2355_v8 = vmul.f32 %v4373_v27, %v2319_v61  ;;  %v2390_v39 = vadd.f32 %v4383_v40, %v2354_v30 }
 0x32b   : > { %v2391_v41 = vadd.f32 %v4383_v40, %v2355_v8 }
 0x32d   : > { %v2407_v7 = vpack.c.bf16 %v2391_v41, %v2390_v39 }
 0x32f   : > { %2994 = vmatmul.mubr.msk.bf16.gmra.mrb[60].mxu1 %vm246_vm0, %v2407_v7 }
 0x342   : > { %v2979_v18 = vpop.f32.mrb[44].mxu1 }
 0x343   : > { %v2560_v23 = vadd.f32 %v2979_v18, %v4596_v50  ;;  %v2551_v0 = vpop.f32.mrb[45].mxu1 }
 0x344   : > { %v2552_v31 = vadd.f32 %v4596_v50, %v2551_v0  ;;  %v2980_v44 = vpop.f32.mrb[46].mxu1 }
 0x345   : > { %2645 = vst.msk [vmem:[%s4602_s12 + $0x70] sm:$0xff] %vm2630_vm5, %v2560_v23  ;;  %v2563_v27 = vadd.f32 %v2980_v44, %v4596_v50  ;;  %v2554_v42 = vpop.f32.mrb[47].mxu1 }
 0x346   : > { %2643 = vst.msk [vmem:[%s4602_s12 + $0x60] sm:$0xff] %vm2630_vm5, %v2552_v31  ;;  %v2555_v40 = vadd.f32 %v4596_v50, %v2554_v42 }
 0x347   : > { %2646 = vst.msk [vmem:[%s4602_s12 + $0x78] sm:$0xff] %vm2630_vm5, %v2563_v27 }
 0x348   : > { %2644 = vst.msk [vmem:[%s4602_s12 + $0x68] sm:$0xff] %vm2630_vm5, %v2555_v40 }
 0x372   : > { %v2983_v34 = vpop.f32.mrb[48].mxu1 }
 0x373   : > { %v2576_v47 = vadd.f32 %v2983_v34, %v4596_v50  ;;  %v2567_v19 = vpop.f32.mrb[49].mxu1 }
 0x374   : > { %v2568_v12 = vadd.f32 %v4596_v50, %v2567_v19  ;;  %v2984_v62 = vpop.f32.mrb[50].mxu1 }
 0x375   : > { %2649 = vst.msk [vmem:[%s4602_s12 + $0x90] sm:$0xff] %vm2630_vm5, %v2576_v47  ;;  %v2579_v55 = vadd.f32 %v2984_v62, %v4596_v50  ;;  %v2570_v14 = vpop.f32.mrb[51].mxu1 }
 0x376   : > { %2647 = vst.msk [vmem:[%s4602_s12 + $0x80] sm:$0xff] %vm2630_vm5, %v2568_v12  ;;  %v2571_v49 = vadd.f32 %v4596_v50, %v2570_v14 }
 0x377   : > { %2650 = vst.msk [vmem:[%s4602_s12 + $0x98] sm:$0xff] %vm2630_vm5, %v2579_v55 }
 0x378   : > { %2648 = vst.msk [vmem:[%s4602_s12 + $0x88] sm:$0xff] %vm2630_vm5, %v2571_v49 }
 0x3a2   : > { %v2987_v3 = vpop.f32.mrb[52].mxu1 }
 0x3a3   : > { %v2592_v9 = vadd.f32 %v2987_v3, %v4596_v50  ;;  %v2583_v15 = vpop.f32.mrb[53].mxu1 }
 0x3a4   : > { %v2584_v59 = vadd.f32 %v4596_v50, %v2583_v15  ;;  %v2988_v29 = vpop.f32.mrb[54].mxu1 }
 0x3a5   : > { %2653 = vst.msk [vmem:[%s4602_s12 + $0xb0] sm:$0xff] %vm2630_vm5, %v2592_v9  ;;  %v2595_v2 = vadd.f32 %v2988_v29, %v4596_v50  ;;  %v2586_v1 = vpop.f32.mrb[55].mxu1 }
 0x3a6   : > { %2651 = vst.msk [vmem:[%s4602_s12 + $0xa0] sm:$0xff] %vm2630_vm5, %v2584_v59  ;;  %v2587_v60 = vadd.f32 %v4596_v50, %v2586_v1 }
 0x3a7   : > { %2654 = vst.msk [vmem:[%s4602_s12 + $0xb8] sm:$0xff] %vm2630_vm5, %v2595_v2 }
 0x3a8   : > { %2652 = vst.msk [vmem:[%s4602_s12 + $0xa8] sm:$0xff] %vm2630_vm5, %v2587_v60 }
 0x3d2   : > { %v2991_v4 = vpop.f32.mrb[56].mxu1 }
 0x3d3   : > { %v2608_v48 = vadd.f32 %v2991_v4, %v4596_v50  ;;  %v2599_v58 = vpop.f32.mrb[57].mxu1 }
 0x3d4   : > { %v2600_v5 = vadd.f32 %v4596_v50, %v2599_v58  ;;  %v2992_v10 = vpop.f32.mrb[58].mxu1 }
 0x3d5   : > { %2657 = vst.msk [vmem:[%s4602_s12 + $0xd0] sm:$0xff] %vm2630_vm5, %v2608_v48  ;;  %v2611_v53 = vadd.f32 %v2992_v10, %v4596_v50  ;;  %v2602_v57 = vpop.f32.mrb[59].mxu1 }
 0x3d6   : > { %2655 = vst.msk [vmem:[%s4602_s12 + $0xc0] sm:$0xff] %vm2630_vm5, %v2600_v5  ;;  %v2603_v51 = vadd.f32 %v4596_v50, %v2602_v57 }
 0x3d7   : > { %2658 = vst.msk [vmem:[%s4602_s12 + $0xd8] sm:$0xff] %vm2630_vm5, %v2611_v53 }
 0x3d8   : > { %2656 = vst.msk [vmem:[%s4602_s12 + $0xc8] sm:$0xff] %vm2630_vm5, %v2603_v51 }
 0x402   : > { %v2995_v33 = vpop.f32.mrb[60].mxu1 }
 0x403   : > { %v2624_v54 = vadd.f32 %v2995_v33, %v4596_v50  ;;  %v2615_v52 = vpop.f32.mrb[61].mxu1 }
 0x404   : > { %v2616_v63 = vadd.f32 %v4596_v50, %v2615_v52  ;;  %v2996_v25 = vpop.f32.mrb[62].mxu1 }
 0x405   : > { %2661 = vst.msk [vmem:[%s4602_s12 + $0xf0] sm:$0xff] %vm2630_vm5, %v2624_v54  ;;  %v2627_v6 = vadd.f32 %v2996_v25, %v4596_v50  ;;  %v2618_v21 = vpop.f32.mrb[63].mxu1 }
 0x406   : > { %2659 = vst.msk [vmem:[%s4602_s12 + $0xe0] sm:$0xff] %vm2630_vm5, %v2616_v63  ;;  %v2619_v46 = vadd.f32 %v4596_v50, %v2618_v21 }
 0x407   : > { %2662 = vst.msk [vmem:[%s4602_s12 + $0xf8] sm:$0xff] %vm2630_vm5, %v2627_v6 }
 0x408   : > { %2660 = vst.msk [vmem:[%s4602_s12 + $0xe8] sm:$0xff] %vm2630_vm5, %v2619_v46 }
 0x409 PF: > { %p15_p8 = scmp.ge.s32.totalorder %s3167_s23, 4   ;;  %s4770_s18 = smov %s3098_s19 }
 0x40a   : > { %s4771_s19 = smov %s3102_s20  ;;  %s4772_s20 = smov %s3177_s26 }
 0x40b   : > { %s4773_s21 = smov %s3167_s23  ;;  %17 = sbr.rel (!%p15_p8) target bundleno = 3 (0x3), region = 82 }
 0x412   :  { %2684 = vsyncpa [#allocation5], 1 }
 0x413   :  { %2686 = vsyncpa [#allocation5 + $0x1], 1 }

</bundles_post_ra>
